<compile_context>
chip_gen: v7x
topology: tpu7x:2x2x1
jax: 0.10.0
libtpu: 0.0.40
codegen_flags: <defaults>
</compile_context>

<pallas_src>
import jax
import jax.numpy as jnp
from jax.experimental import pallas as pl
from jax.experimental.pallas import tpu as pltpu

K = 10          # conv kernel size
S = 2           # conv stride
C_IN = 3
C_OUT = 32
N_CLASSES = 10
BATCH_TILE = 8  # images per grid step (multiple of 8)


def fused_cnn_kernel(pat_ref, wc_ref, bc_ref, wfa_ref, mask_ref, sel_ref, bf_ref, o_ref):
    # pat_ref : (B, 300, 144) bf16  im2col patches for B images
    # wc_ref  : (32, 300)     bf16  conv weight (out_ch, in_ch*K*K)
    # bc_ref  : (32, 1)       f32   conv bias
    # wfa_ref : (144, 320)    bf16  fc weight permuted: wfa[pos, k*32+oc] = fc_w[k, oc*144+pos]
    # mask_ref: (32, 320)     f32   mask[oc, j] = (j % 32 == oc)
    # sel_ref : (320, 10)     f32   sel[j, k]   = (j // 32 == k)
    # bf_ref  : (1, 10)       f32   fc bias
    # o_ref   : (B, 10)       f32   logits
    wc = wc_ref[...]
    bc = bc_ref[...]
    wfa = wfa_ref[...]
    mask = mask_ref[...]
    sel = sel_ref[...]
    bf = bf_ref[...]

    B = pat_ref.shape[0]
    rows = []
    for b in range(B):                                   # static, unrolled
        # Conv as MXU matmul: (32,300) @ (300,144) -> (32,144), f32 accumulate.
        acc = jnp.dot(wc, pat_ref[b], preferred_element_type=jnp.float32)
        act = jnp.maximum(acc + bc, 0.0).astype(jnp.bfloat16)          # bias + ReLU
        # FC on the MXU. torch's view(-1,4608) flatten index is oc*144+pos, so
        #   big[oc, k*32+oc'] = sum_pos act[oc,pos] * fc_w[k, oc'*144+pos]
        # and logits[k] = sum_oc big[oc, k*32+oc]  (block-diagonal trace),
        # extracted with the precomputed 0/1 mask + selector matmul.
        big = jnp.dot(act, wfa, preferred_element_type=jnp.float32)    # (32, 320)
        col = jnp.sum(big * mask, axis=0, keepdims=True)               # (1, 320)
        rows.append(jnp.dot(col, sel, preferred_element_type=jnp.float32) + bf)  # (1, 10)
    o_ref[...] = jnp.concatenate(rows, axis=0)                         # (B, 10), one store


def im2col_transposed(x):
    """(N, C, H, W) -> (N, C*K*K, OH*OW).
    Feature index = c*K*K + kh*K + kw, matching torch Conv2d weight flatten;
    spatial index = oh*OW + ow, matching torch's conv-output flatten."""
    N, C, H, W = x.shape
    OH = (H - K) // S + 1
    OW = (W - K) // S + 1
    cols = []
    for kh in range(K):
        for kw in range(K):
            cols.append(x[:, :, kh:kh + S * OH:S, kw:kw + S * OW:S])   # (N, C, OH, OW)
    cols = jnp.stack(cols, axis=2)                                     # (N, C, K*K, OH, OW)
    return cols.reshape(N, C * K * K, OH * OW), OH, OW


def simple_cnn32_forward(x, conv_w, conv_b, fc_w, fc_b, *, batch_tile=BATCH_TILE):
    """x: (N, 3, 32, 32) f32 -> (N, 10) f32. Matches the PyTorch module (bf16 matmuls)."""
    N = x.shape[0]
    B = batch_tile
    G = (N + B - 1) // B
    Npad = G * B

    patches, OH, OW = im2col_transposed(x.astype(jnp.bfloat16))        # (N, 300, 144) bf16
    P = OH * OW                                                        # 144
    R = C_IN * K * K                                                   # 300
    KC = N_CLASSES * C_OUT                                             # 320
    if Npad != N:
        patches = jnp.pad(patches, ((0, Npad - N), (0, 0), (0, 0)))

    wc = conv_w.reshape(C_OUT, R).astype(jnp.bfloat16)                 # (32, 300)
    bc = conv_b.reshape(C_OUT, 1).astype(jnp.float32)                  # (32, 1)
    # wfa[pos, k*32 + oc] = fc_w[k, oc*144 + pos]  (free wrapper-side permutation)
    wfa = (fc_w.reshape(N_CLASSES, C_OUT, P)
               .transpose(2, 0, 1)
               .reshape(P, KC)
               .astype(jnp.bfloat16))                                  # (144, 320)
    bf = fc_b.reshape(1, N_CLASSES).astype(jnp.float32)                # (1, 10)

    oc_i = jax.lax.broadcasted_iota(jnp.int32, (C_OUT, KC), 0)
    j_i = jax.lax.broadcasted_iota(jnp.int32, (C_OUT, KC), 1)
    mask = (j_i % C_OUT == oc_i).astype(jnp.float32)                   # (32, 320)
    sel = (jnp.arange(KC)[:, None] // C_OUT ==
           jnp.arange(N_CLASSES)[None, :]).astype(jnp.float32)         # (320, 10)

    out = pl.pallas_call(
        fused_cnn_kernel,
        out_shape=jax.ShapeDtypeStruct((Npad, N_CLASSES), jnp.float32),
        grid=(G,),
        in_specs=[
            pl.BlockSpec((B, R, P), lambda g: (g, 0, 0)),
            pl.BlockSpec((C_OUT, R), lambda g: (0, 0)),
            pl.BlockSpec((C_OUT, 1), lambda g: (0, 0)),
            pl.BlockSpec((P, KC), lambda g: (0, 0)),
            pl.BlockSpec((C_OUT, KC), lambda g: (0, 0)),
            pl.BlockSpec((KC, N_CLASSES), lambda g: (0, 0)),
            pl.BlockSpec((1, N_CLASSES), lambda g: (0, 0)),
        ],
        out_specs=pl.BlockSpec((B, N_CLASSES), lambda g: (g, 0)),
        compiler_params=pltpu.CompilerParams(
            dimension_semantics=("parallel",)),
    )(patches, wc, bc, wfa, mask, sel, bf)
    return out[:N]


if __name__ == "__main__":
    key = jax.random.PRNGKey(0)
    k_x, k_cw, k_cb, k_fw, k_fb = jax.random.split(key, 5)

    # Module-implied shapes: input (N, 3, 32, 32) -> conv out (N, 32, 12, 12)
    # -> flatten 144*32 = 4608 -> logits (N, 10). N=16 keeps the test small while
    # giving grid = 16/8 = 2 steps (even, >= 2, so both v7x TensorCores get work).
    N = 16
    x = jax.random.normal(k_x, (N, 3, 32, 32), dtype=jnp.float32)

    conv_w = jax.random.normal(k_cw, (32, 3, 10, 10), dtype=jnp.float32) * 0.05
    conv_b = jax.random.normal(k_cb, (32,), dtype=jnp.float32) * 0.05
    fc_w = jax.random.normal(k_fw, (10, 144 * 32), dtype=jnp.float32) * 0.02
    fc_b = jax.random.normal(k_fb, (10,), dtype=jnp.float32) * 0.02

    out = simple_cnn32_forward(x, conv_w, conv_b, fc_w, fc_b)
    jax.block_until_ready(out)
    assert out.shape == (N, 10) and out.dtype == jnp.float32
    print("KERNEL_OK")
</pallas_src>

<mosaic_0001>
module attributes {stable_mosaic.version = 11 : i64} {
  func.func @fused_cnn_kernel(%arg0: i32, %arg1: memref<8x300x144xbf16, #tpu.memory_space<vmem>>, %arg2: memref<32x300xbf16, #tpu.memory_space<vmem>>, %arg3: memref<32x1xf32, #tpu.memory_space<vmem>>, %arg4: memref<144x320xbf16, #tpu.memory_space<vmem>>, %arg5: memref<32x320xf32, #tpu.memory_space<vmem>>, %arg6: memref<320x10xf32, #tpu.memory_space<vmem>>, %arg7: memref<1x10xf32, #tpu.memory_space<vmem>>, %arg8: memref<8x10xf32, #tpu.memory_space<vmem>>) attributes {dimension_semantics = [#tpu.dimension_semantics<parallel>], iteration_bounds = array<i64: 2>, scalar_prefetch = 0 : i64, scratch_operands = 0 : i64, tpu.core_type = #tpu.core_type<tc>, window_params = [{transform_indices = @transform_0, window_bounds = array<i64: 8, 300, 144>}, {pipeline_mode = #tpu.pipeline_mode<synchronous>, transform_indices = @transform_1, window_bounds = array<i64: 32, 300>}, {pipeline_mode = #tpu.pipeline_mode<synchronous>, transform_indices = @transform_2, window_bounds = array<i64: 32, 1>}, {pipeline_mode = #tpu.pipeline_mode<synchronous>, transform_indices = @transform_3, window_bounds = array<i64: 144, 320>}, {pipeline_mode = #tpu.pipeline_mode<synchronous>, transform_indices = @transform_4, window_bounds = array<i64: 32, 320>}, {pipeline_mode = #tpu.pipeline_mode<synchronous>, transform_indices = @transform_5, window_bounds = array<i64: 320, 10>}, {pipeline_mode = #tpu.pipeline_mode<synchronous>, transform_indices = @transform_6, window_bounds = array<i64: 1, 10>}, {transform_indices = @transform_7, window_bounds = array<i64: 8, 10>}]} {
    %c0 = arith.constant 0 : index
    %c0_0 = arith.constant 0 : index
    %0 = vector.load %arg2[%c0, %c0_0] : memref<32x300xbf16, #tpu.memory_space<vmem>>, vector<32x300xbf16>
    %c0_1 = arith.constant 0 : index
    %c0_2 = arith.constant 0 : index
    %1 = vector.load %arg3[%c0_1, %c0_2] : memref<32x1xf32, #tpu.memory_space<vmem>>, vector<32x1xf32>
    %c0_3 = arith.constant 0 : index
    %c0_4 = arith.constant 0 : index
    %2 = vector.load %arg4[%c0_3, %c0_4] : memref<144x320xbf16, #tpu.memory_space<vmem>>, vector<144x320xbf16>
    %c0_5 = arith.constant 0 : index
    %c0_6 = arith.constant 0 : index
    %3 = vector.load %arg5[%c0_5, %c0_6] : memref<32x320xf32, #tpu.memory_space<vmem>>, vector<32x320xf32>
    %c0_7 = arith.constant 0 : index
    %c0_8 = arith.constant 0 : index
    %4 = vector.load %arg6[%c0_7, %c0_8] : memref<320x10xf32, #tpu.memory_space<vmem>>, vector<320x10xf32>
    %c0_9 = arith.constant 0 : index
    %c0_10 = arith.constant 0 : index
    %5 = vector.load %arg7[%c0_9, %c0_10] : memref<1x10xf32, #tpu.memory_space<vmem>>, vector<1x10xf32>
    %c0_11 = arith.constant 0 : index
    %c0_12 = arith.constant 0 : index
    %c0_13 = arith.constant 0 : index
    %6 = vector.load %arg1[%c0_11, %c0_12, %c0_13] : memref<8x300x144xbf16, #tpu.memory_space<vmem>>, vector<1x300x144xbf16>
    %7 = vector.shape_cast %6 : vector<1x300x144xbf16> to vector<300x144xbf16>
    %cst = arith.constant dense<0.000000e+00> : vector<32x144xf32>
    %8 = tpu.matmul %0, %7, %cst {dimension_numbers = #tpu.dot_dimension_numbers<[1], [0], [0], [1], [0, 0, 1, 1], [], []>} : vector<32x300xbf16>, vector<300x144xbf16>, vector<32x144xf32> -> vector<32x144xf32>
    %9 = vector.broadcast %1 : vector<32x1xf32> to vector<32x144xf32>
    %10 = arith.addf %8, %9 : vector<32x144xf32>
    %cst_14 = arith.constant 0.000000e+00 : f32
    %11 = vector.broadcast %cst_14 : f32 to vector<32x144xf32>
    %12 = arith.maximumf %10, %11 : vector<32x144xf32>
    %13 = arith.truncf %12 : vector<32x144xf32> to vector<32x144xbf16>
    %cst_15 = arith.constant dense<0.000000e+00> : vector<32x320xf32>
    %14 = tpu.matmul %13, %2, %cst_15 {dimension_numbers = #tpu.dot_dimension_numbers<[1], [0], [0], [1], [0, 0, 1, 1], [], []>} : vector<32x144xbf16>, vector<144x320xbf16>, vector<32x320xf32> -> vector<32x320xf32>
    %15 = arith.mulf %14, %3 : vector<32x320xf32>
    %cst_16 = arith.constant dense<0.000000e+00> : vector<320xf32>
    %16 = vector.multi_reduction <add>, %15, %cst_16 [0] : vector<32x320xf32> to vector<320xf32>
    %17 = vector.shape_cast %16 : vector<320xf32> to vector<1x320xf32>
    %cst_17 = arith.constant dense<0.000000e+00> : vector<1x10xf32>
    %18 = tpu.matmul %17, %4, %cst_17 {dimension_numbers = #tpu.dot_dimension_numbers<[1], [0], [0], [1], [0, 0, 1, 1], [], []>} : vector<1x320xf32>, vector<320x10xf32>, vector<1x10xf32> -> vector<1x10xf32>
    %19 = arith.addf %18, %5 : vector<1x10xf32>
    %c1 = arith.constant 1 : index
    %c0_18 = arith.constant 0 : index
    %c0_19 = arith.constant 0 : index
    %20 = vector.load %arg1[%c1, %c0_18, %c0_19] : memref<8x300x144xbf16, #tpu.memory_space<vmem>>, vector<1x300x144xbf16>
    %21 = vector.shape_cast %20 : vector<1x300x144xbf16> to vector<300x144xbf16>
    %cst_20 = arith.constant dense<0.000000e+00> : vector<32x144xf32>
    %22 = tpu.matmul %0, %21, %cst_20 {dimension_numbers = #tpu.dot_dimension_numbers<[1], [0], [0], [1], [0, 0, 1, 1], [], []>} : vector<32x300xbf16>, vector<300x144xbf16>, vector<32x144xf32> -> vector<32x144xf32>
    %23 = vector.broadcast %1 : vector<32x1xf32> to vector<32x144xf32>
    %24 = arith.addf %22, %23 : vector<32x144xf32>
    %cst_21 = arith.constant 0.000000e+00 : f32
    %25 = vector.broadcast %cst_21 : f32 to vector<32x144xf32>
    %26 = arith.maximumf %24, %25 : vector<32x144xf32>
    %27 = arith.truncf %26 : vector<32x144xf32> to vector<32x144xbf16>
    %cst_22 = arith.constant dense<0.000000e+00> : vector<32x320xf32>
    %28 = tpu.matmul %27, %2, %cst_22 {dimension_numbers = #tpu.dot_dimension_numbers<[1], [0], [0], [1], [0, 0, 1, 1], [], []>} : vector<32x144xbf16>, vector<144x320xbf16>, vector<32x320xf32> -> vector<32x320xf32>
    %29 = arith.mulf %28, %3 : vector<32x320xf32>
    %cst_23 = arith.constant dense<0.000000e+00> : vector<320xf32>
    %30 = vector.multi_reduction <add>, %29, %cst_23 [0] : vector<32x320xf32> to vector<320xf32>
    %31 = vector.shape_cast %30 : vector<320xf32> to vector<1x320xf32>
    %cst_24 = arith.constant dense<0.000000e+00> : vector<1x10xf32>
    %32 = tpu.matmul %31, %4, %cst_24 {dimension_numbers = #tpu.dot_dimension_numbers<[1], [0], [0], [1], [0, 0, 1, 1], [], []>} : vector<1x320xf32>, vector<320x10xf32>, vector<1x10xf32> -> vector<1x10xf32>
    %33 = arith.addf %32, %5 : vector<1x10xf32>
    %c2 = arith.constant 2 : index
    %c0_25 = arith.constant 0 : index
    %c0_26 = arith.constant 0 : index
    %34 = vector.load %arg1[%c2, %c0_25, %c0_26] : memref<8x300x144xbf16, #tpu.memory_space<vmem>>, vector<1x300x144xbf16>
    %35 = vector.shape_cast %34 : vector<1x300x144xbf16> to vector<300x144xbf16>
    %cst_27 = arith.constant dense<0.000000e+00> : vector<32x144xf32>
    %36 = tpu.matmul %0, %35, %cst_27 {dimension_numbers = #tpu.dot_dimension_numbers<[1], [0], [0], [1], [0, 0, 1, 1], [], []>} : vector<32x300xbf16>, vector<300x144xbf16>, vector<32x144xf32> -> vector<32x144xf32>
    %37 = vector.broadcast %1 : vector<32x1xf32> to vector<32x144xf32>
    %38 = arith.addf %36, %37 : vector<32x144xf32>
    %cst_28 = arith.constant 0.000000e+00 : f32
    %39 = vector.broadcast %cst_28 : f32 to vector<32x144xf32>
    %40 = arith.maximumf %38, %39 : vector<32x144xf32>
    %41 = arith.truncf %40 : vector<32x144xf32> to vector<32x144xbf16>
    %cst_29 = arith.constant dense<0.000000e+00> : vector<32x320xf32>
    %42 = tpu.matmul %41, %2, %cst_29 {dimension_numbers = #tpu.dot_dimension_numbers<[1], [0], [0], [1], [0, 0, 1, 1], [], []>} : vector<32x144xbf16>, vector<144x320xbf16>, vector<32x320xf32> -> vector<32x320xf32>
    %43 = arith.mulf %42, %3 : vector<32x320xf32>
    %cst_30 = arith.constant dense<0.000000e+00> : vector<320xf32>
    %44 = vector.multi_reduction <add>, %43, %cst_30 [0] : vector<32x320xf32> to vector<320xf32>
    %45 = vector.shape_cast %44 : vector<320xf32> to vector<1x320xf32>
    %cst_31 = arith.constant dense<0.000000e+00> : vector<1x10xf32>
    %46 = tpu.matmul %45, %4, %cst_31 {dimension_numbers = #tpu.dot_dimension_numbers<[1], [0], [0], [1], [0, 0, 1, 1], [], []>} : vector<1x320xf32>, vector<320x10xf32>, vector<1x10xf32> -> vector<1x10xf32>
    %47 = arith.addf %46, %5 : vector<1x10xf32>
    %c3 = arith.constant 3 : index
    %c0_32 = arith.constant 0 : index
    %c0_33 = arith.constant 0 : index
    %48 = vector.load %arg1[%c3, %c0_32, %c0_33] : memref<8x300x144xbf16, #tpu.memory_space<vmem>>, vector<1x300x144xbf16>
    %49 = vector.shape_cast %48 : vector<1x300x144xbf16> to vector<300x144xbf16>
    %cst_34 = arith.constant dense<0.000000e+00> : vector<32x144xf32>
    %50 = tpu.matmul %0, %49, %cst_34 {dimension_numbers = #tpu.dot_dimension_numbers<[1], [0], [0], [1], [0, 0, 1, 1], [], []>} : vector<32x300xbf16>, vector<300x144xbf16>, vector<32x144xf32> -> vector<32x144xf32>
    %51 = vector.broadcast %1 : vector<32x1xf32> to vector<32x144xf32>
    %52 = arith.addf %50, %51 : vector<32x144xf32>
    %cst_35 = arith.constant 0.000000e+00 : f32
    %53 = vector.broadcast %cst_35 : f32 to vector<32x144xf32>
    %54 = arith.maximumf %52, %53 : vector<32x144xf32>
    %55 = arith.truncf %54 : vector<32x144xf32> to vector<32x144xbf16>
    %cst_36 = arith.constant dense<0.000000e+00> : vector<32x320xf32>
    %56 = tpu.matmul %55, %2, %cst_36 {dimension_numbers = #tpu.dot_dimension_numbers<[1], [0], [0], [1], [0, 0, 1, 1], [], []>} : vector<32x144xbf16>, vector<144x320xbf16>, vector<32x320xf32> -> vector<32x320xf32>
    %57 = arith.mulf %56, %3 : vector<32x320xf32>
    %cst_37 = arith.constant dense<0.000000e+00> : vector<320xf32>
    %58 = vector.multi_reduction <add>, %57, %cst_37 [0] : vector<32x320xf32> to vector<320xf32>
    %59 = vector.shape_cast %58 : vector<320xf32> to vector<1x320xf32>
    %cst_38 = arith.constant dense<0.000000e+00> : vector<1x10xf32>
    %60 = tpu.matmul %59, %4, %cst_38 {dimension_numbers = #tpu.dot_dimension_numbers<[1], [0], [0], [1], [0, 0, 1, 1], [], []>} : vector<1x320xf32>, vector<320x10xf32>, vector<1x10xf32> -> vector<1x10xf32>
    %61 = arith.addf %60, %5 : vector<1x10xf32>
    %c4 = arith.constant 4 : index
    %c0_39 = arith.constant 0 : index
    %c0_40 = arith.constant 0 : index
    %62 = vector.load %arg1[%c4, %c0_39, %c0_40] : memref<8x300x144xbf16, #tpu.memory_space<vmem>>, vector<1x300x144xbf16>
    %63 = vector.shape_cast %62 : vector<1x300x144xbf16> to vector<300x144xbf16>
    %cst_41 = arith.constant dense<0.000000e+00> : vector<32x144xf32>
    %64 = tpu.matmul %0, %63, %cst_41 {dimension_numbers = #tpu.dot_dimension_numbers<[1], [0], [0], [1], [0, 0, 1, 1], [], []>} : vector<32x300xbf16>, vector<300x144xbf16>, vector<32x144xf32> -> vector<32x144xf32>
    %65 = vector.broadcast %1 : vector<32x1xf32> to vector<32x144xf32>
    %66 = arith.addf %64, %65 : vector<32x144xf32>
    %cst_42 = arith.constant 0.000000e+00 : f32
    %67 = vector.broadcast %cst_42 : f32 to vector<32x144xf32>
    %68 = arith.maximumf %66, %67 : vector<32x144xf32>
    %69 = arith.truncf %68 : vector<32x144xf32> to vector<32x144xbf16>
    %cst_43 = arith.constant dense<0.000000e+00> : vector<32x320xf32>
    %70 = tpu.matmul %69, %2, %cst_43 {dimension_numbers = #tpu.dot_dimension_numbers<[1], [0], [0], [1], [0, 0, 1, 1], [], []>} : vector<32x144xbf16>, vector<144x320xbf16>, vector<32x320xf32> -> vector<32x320xf32>
    %71 = arith.mulf %70, %3 : vector<32x320xf32>
    %cst_44 = arith.constant dense<0.000000e+00> : vector<320xf32>
    %72 = vector.multi_reduction <add>, %71, %cst_44 [0] : vector<32x320xf32> to vector<320xf32>
    %73 = vector.shape_cast %72 : vector<320xf32> to vector<1x320xf32>
    %cst_45 = arith.constant dense<0.000000e+00> : vector<1x10xf32>
    %74 = tpu.matmul %73, %4, %cst_45 {dimension_numbers = #tpu.dot_dimension_numbers<[1], [0], [0], [1], [0, 0, 1, 1], [], []>} : vector<1x320xf32>, vector<320x10xf32>, vector<1x10xf32> -> vector<1x10xf32>
    %75 = arith.addf %74, %5 : vector<1x10xf32>
    %c5 = arith.constant 5 : index
    %c0_46 = arith.constant 0 : index
    %c0_47 = arith.constant 0 : index
    %76 = vector.load %arg1[%c5, %c0_46, %c0_47] : memref<8x300x144xbf16, #tpu.memory_space<vmem>>, vector<1x300x144xbf16>
    %77 = vector.shape_cast %76 : vector<1x300x144xbf16> to vector<300x144xbf16>
    %cst_48 = arith.constant dense<0.000000e+00> : vector<32x144xf32>
    %78 = tpu.matmul %0, %77, %cst_48 {dimension_numbers = #tpu.dot_dimension_numbers<[1], [0], [0], [1], [0, 0, 1, 1], [], []>} : vector<32x300xbf16>, vector<300x144xbf16>, vector<32x144xf32> -> vector<32x144xf32>
    %79 = vector.broadcast %1 : vector<32x1xf32> to vector<32x144xf32>
    %80 = arith.addf %78, %79 : vector<32x144xf32>
    %cst_49 = arith.constant 0.000000e+00 : f32
    %81 = vector.broadcast %cst_49 : f32 to vector<32x144xf32>
    %82 = arith.maximumf %80, %81 : vector<32x144xf32>
    %83 = arith.truncf %82 : vector<32x144xf32> to vector<32x144xbf16>
    %cst_50 = arith.constant dense<0.000000e+00> : vector<32x320xf32>
    %84 = tpu.matmul %83, %2, %cst_50 {dimension_numbers = #tpu.dot_dimension_numbers<[1], [0], [0], [1], [0, 0, 1, 1], [], []>} : vector<32x144xbf16>, vector<144x320xbf16>, vector<32x320xf32> -> vector<32x320xf32>
    %85 = arith.mulf %84, %3 : vector<32x320xf32>
    %cst_51 = arith.constant dense<0.000000e+00> : vector<320xf32>
    %86 = vector.multi_reduction <add>, %85, %cst_51 [0] : vector<32x320xf32> to vector<320xf32>
    %87 = vector.shape_cast %86 : vector<320xf32> to vector<1x320xf32>
    %cst_52 = arith.constant dense<0.000000e+00> : vector<1x10xf32>
    %88 = tpu.matmul %87, %4, %cst_52 {dimension_numbers = #tpu.dot_dimension_numbers<[1], [0], [0], [1], [0, 0, 1, 1], [], []>} : vector<1x320xf32>, vector<320x10xf32>, vector<1x10xf32> -> vector<1x10xf32>
    %89 = arith.addf %88, %5 : vector<1x10xf32>
    %c6 = arith.constant 6 : index
    %c0_53 = arith.constant 0 : index
    %c0_54 = arith.constant 0 : index
    %90 = vector.load %arg1[%c6, %c0_53, %c0_54] : memref<8x300x144xbf16, #tpu.memory_space<vmem>>, vector<1x300x144xbf16>
    %91 = vector.shape_cast %90 : vector<1x300x144xbf16> to vector<300x144xbf16>
    %cst_55 = arith.constant dense<0.000000e+00> : vector<32x144xf32>
    %92 = tpu.matmul %0, %91, %cst_55 {dimension_numbers = #tpu.dot_dimension_numbers<[1], [0], [0], [1], [0, 0, 1, 1], [], []>} : vector<32x300xbf16>, vector<300x144xbf16>, vector<32x144xf32> -> vector<32x144xf32>
    %93 = vector.broadcast %1 : vector<32x1xf32> to vector<32x144xf32>
    %94 = arith.addf %92, %93 : vector<32x144xf32>
    %cst_56 = arith.constant 0.000000e+00 : f32
    %95 = vector.broadcast %cst_56 : f32 to vector<32x144xf32>
    %96 = arith.maximumf %94, %95 : vector<32x144xf32>
    %97 = arith.truncf %96 : vector<32x144xf32> to vector<32x144xbf16>
    %cst_57 = arith.constant dense<0.000000e+00> : vector<32x320xf32>
    %98 = tpu.matmul %97, %2, %cst_57 {dimension_numbers = #tpu.dot_dimension_numbers<[1], [0], [0], [1], [0, 0, 1, 1], [], []>} : vector<32x144xbf16>, vector<144x320xbf16>, vector<32x320xf32> -> vector<32x320xf32>
    %99 = arith.mulf %98, %3 : vector<32x320xf32>
    %cst_58 = arith.constant dense<0.000000e+00> : vector<320xf32>
    %100 = vector.multi_reduction <add>, %99, %cst_58 [0] : vector<32x320xf32> to vector<320xf32>
    %101 = vector.shape_cast %100 : vector<320xf32> to vector<1x320xf32>
    %cst_59 = arith.constant dense<0.000000e+00> : vector<1x10xf32>
    %102 = tpu.matmul %101, %4, %cst_59 {dimension_numbers = #tpu.dot_dimension_numbers<[1], [0], [0], [1], [0, 0, 1, 1], [], []>} : vector<1x320xf32>, vector<320x10xf32>, vector<1x10xf32> -> vector<1x10xf32>
    %103 = arith.addf %102, %5 : vector<1x10xf32>
    %c7 = arith.constant 7 : index
    %c0_60 = arith.constant 0 : index
    %c0_61 = arith.constant 0 : index
    %104 = vector.load %arg1[%c7, %c0_60, %c0_61] : memref<8x300x144xbf16, #tpu.memory_space<vmem>>, vector<1x300x144xbf16>
    %105 = vector.shape_cast %104 : vector<1x300x144xbf16> to vector<300x144xbf16>
    %cst_62 = arith.constant dense<0.000000e+00> : vector<32x144xf32>
    %106 = tpu.matmul %0, %105, %cst_62 {dimension_numbers = #tpu.dot_dimension_numbers<[1], [0], [0], [1], [0, 0, 1, 1], [], []>} : vector<32x300xbf16>, vector<300x144xbf16>, vector<32x144xf32> -> vector<32x144xf32>
    %107 = vector.broadcast %1 : vector<32x1xf32> to vector<32x144xf32>
    %108 = arith.addf %106, %107 : vector<32x144xf32>
    %cst_63 = arith.constant 0.000000e+00 : f32
    %109 = vector.broadcast %cst_63 : f32 to vector<32x144xf32>
    %110 = arith.maximumf %108, %109 : vector<32x144xf32>
    %111 = arith.truncf %110 : vector<32x144xf32> to vector<32x144xbf16>
    %cst_64 = arith.constant dense<0.000000e+00> : vector<32x320xf32>
    %112 = tpu.matmul %111, %2, %cst_64 {dimension_numbers = #tpu.dot_dimension_numbers<[1], [0], [0], [1], [0, 0, 1, 1], [], []>} : vector<32x144xbf16>, vector<144x320xbf16>, vector<32x320xf32> -> vector<32x320xf32>
    %113 = arith.mulf %112, %3 : vector<32x320xf32>
    %cst_65 = arith.constant dense<0.000000e+00> : vector<320xf32>
    %114 = vector.multi_reduction <add>, %113, %cst_65 [0] : vector<32x320xf32> to vector<320xf32>
    %115 = vector.shape_cast %114 : vector<320xf32> to vector<1x320xf32>
    %cst_66 = arith.constant dense<0.000000e+00> : vector<1x10xf32>
    %116 = tpu.matmul %115, %4, %cst_66 {dimension_numbers = #tpu.dot_dimension_numbers<[1], [0], [0], [1], [0, 0, 1, 1], [], []>} : vector<1x320xf32>, vector<320x10xf32>, vector<1x10xf32> -> vector<1x10xf32>
    %117 = arith.addf %116, %5 : vector<1x10xf32>
    %118 = tpu.concatenate %19, %33, %47, %61, %75, %89, %103, %117 in 0 : vector<1x10xf32>, vector<1x10xf32>, vector<1x10xf32>, vector<1x10xf32>, vector<1x10xf32>, vector<1x10xf32>, vector<1x10xf32>, vector<1x10xf32> -> vector<8x10xf32>
    %c0_67 = arith.constant 0 : index
    %c0_68 = arith.constant 0 : index
    %119 = vector.load %arg8[%c0_67, %c0_68] : memref<8x10xf32, #tpu.memory_space<vmem>>, vector<8x10xf32>
    tpu.vector_store %arg8[%c0_67, %c0_68], %118 {strides = array<i32>} : memref<8x10xf32, #tpu.memory_space<vmem>>, vector<8x10xf32>,
    return
  }
  func.func @transform_0(%arg0: i32) -> (i32, i32, i32) {
    %c0_i32 = arith.constant 0 : i32
    %c0_i32_0 = arith.constant 0 : i32
    %c0_i32_1 = arith.constant 0 : i32
    return %arg0, %c0_i32, %c0_i32_0 : i32, i32, i32
  }
  func.func @transform_1(%arg0: i32) -> (i32, i32) {
    %c0_i32 = arith.constant 0 : i32
    %c0_i32_0 = arith.constant 0 : i32
    %c0_i32_1 = arith.constant 0 : i32
    return %c0_i32, %c0_i32_0 : i32, i32
  }
  func.func @transform_2(%arg0: i32) -> (i32, i32) {
    %c0_i32 = arith.constant 0 : i32
    %c0_i32_0 = arith.constant 0 : i32
    %c0_i32_1 = arith.constant 0 : i32
    return %c0_i32, %c0_i32_0 : i32, i32
  }
  func.func @transform_3(%arg0: i32) -> (i32, i32) {
    %c0_i32 = arith.constant 0 : i32
    %c0_i32_0 = arith.constant 0 : i32
    %c0_i32_1 = arith.constant 0 : i32
    return %c0_i32, %c0_i32_0 : i32, i32
  }
  func.func @transform_4(%arg0: i32) -> (i32, i32) {
    %c0_i32 = arith.constant 0 : i32
    %c0_i32_0 = arith.constant 0 : i32
    %c0_i32_1 = arith.constant 0 : i32
    return %c0_i32, %c0_i32_0 : i32, i32
  }
  func.func @transform_5(%arg0: i32) -> (i32, i32) {
    %c0_i32 = arith.constant 0 : i32
    %c0_i32_0 = arith.constant 0 : i32
    %c0_i32_1 = arith.constant 0 : i32
    return %c0_i32, %c0_i32_0 : i32, i32
  }
  func.func @transform_6(%arg0: i32) -> (i32, i32) {
    %c0_i32 = arith.constant 0 : i32
    %c0_i32_0 = arith.constant 0 : i32
    %c0_i32_1 = arith.constant 0 : i32
    return %c0_i32, %c0_i32_0 : i32, i32
  }
  func.func @transform_7(%arg0: i32) -> (i32, i32) {
    %c0_i32 = arith.constant 0 : i32
    %c0_i32_0 = arith.constant 0 : i32
    return %arg0, %c0_i32 : i32, i32
  }
}

</mosaic_0001>

<bundles_post_ra>
// kernel: tpu_custom_call.1
= control target key start
LH: loop header
LB: loop body
LE: loop exit
PB: predicated region body
PF: predicated region fallthrough
CT: control target
= control target key end

     0   :  { %12 = vsyncpa [#allocation3], 0  ;;  %s10396_s0 = inlined_call_operand.vmem [shape: bf16[16,300,144], index: 0, kind: input, shape index: {}]   ;;  %s10397_s1 = inlined_call_operand.vmem [shape: bf16[32,300], index: 1, kind: input, shape index: {}]   ;;  %s10398_s2 = inlined_call_operand.vmem [shape: f32[32,1], index: 2, kind: input, shape index: {}]   ;;  %s10399_s3 = inlined_call_operand.vmem [shape: bf16[144,320], index: 3, kind: input, shape index: {}]   ;;  %s10400_s4 = inlined_call_operand.vmem [shape: f32[32,320], index: 4, kind: input, shape index: {}]   ;;  %s10401_s5 = inlined_call_operand.vmem [shape: f32[320,10], index: 5, kind: input, shape index: {}]   ;;  %s10402_s6 = inlined_call_operand.vmem [shape: f32[1,10], index: 6, kind: input, shape index: {}]   ;;  %s10403_s7 = inlined_call_operand.hbm [shape: f32[16,10], index: 7, kind: output, shape index: {}]  }
   0x1   :  { %14 = vsyncpa [#allocation3 + $0x1], 0  ;;  %s8283_s24 = smov 0   ;;  %s8285_s25 = smov 0  }
   0x2   :  { %s8287_s26 = smov 0   ;;  %s8289_s27 = smov 0  }
   0x3 LB: > { %s8304_s28 = sadd.s32 4294967295, %s8236_s27   ;;  %s5856_s29 = sadd.s32 4294967294, %s8236_s27   ;;  %s8236_s27 = sphi %s8289_s27, %s10691_s27   ;;  %s8232_s26 = sphi %s8287_s26, %s10690_s26   ;;  %s8228_s25 = sphi %s8285_s25, %s10689_s25   ;;  %s8224_s24 = sphi %s8283_s24, %s10688_s24  }
   0x4   : > { %s8308_s30 = sadd.s32 1, %s8236_s27   ;;  %s179_s8 = sadd.s32 1, %s8232_s26 }
   0x5   : > { %s176_s9 = ssub.s32 %s8236_s27, %s8308_s30  ;;  %p189_p0 = scmp.ne.s32.totalorder %s8232_s26, %s8228_s25 }
   0x6   : > { %p177_p1 = scmp.eq.s32.totalorder %s176_s9, 0  ;;  %p190_p2 = scmp.eq.s32.totalorder %s8304_s28, 1 }
   0x7   : > { %p195_p3 = scmp.ne.s32.totalorder %s8228_s25, %s8224_s24  ;;  %p196_p4 = scmp.eq.s32.totalorder %s5856_s29, 1 }
   0x8   : > { %s8319_s10 = scalar_select %p177_p1, %s8232_s26, %s179_s8  }
   0x9   : > { %p8321_p5 = por %p190_p2, %p189_p0  ;;  %p8325_p6 = por %p196_p4, %p195_p3 }
   0xa   : > { %p5859_p7 = scmp.ge.s32.totalorder %s8236_s27, 1  ;;  %p242_p8 = scmp.lt.s32.totalorder %s8236_s27, 3 }
   0xc   : > { %p243_p9 = pnand %p5859_p7, %p242_p8 }
   0xe   : > { %246 = sbr.rel (%p243_p9) target bundleno = 4862 (0x12fe), region = 48 }
  0x15   : > { %s5861_s13 = sshll.u32 %s8304_s28, 3  ;;  %v10408_v0 = vmov 0   ;;  %v7621_v1 = vld [vmem:[%s10397_s1 + $0x4] ss:$12 sps:$4 sm:$0xff]   ;;  %v292_v4 = vld [vmem:[%s10398_s2 + $0x8] sm:$0xff]  ;;  %v294_v5 = vld [vmem:[%s10398_s2 + $0x18] sm:$0xff] }
  0x16   : > { %p276_p10 = scmp.lt.s32.totalorder %s5861_s13, 15  ;;  %759 = vmatprep.mubr.bf16.mxu1 %v10408_v0  ;;  %7562 = vset.pattern.permute.xlu0 %v10408_v0  ;;  %v291_v2 = vld [vmem:[%s10398_s2] sm:$0xff]  ;;  %v293_v3 = vld [vmem:[%s10398_s2 + $0x10] sm:$0xff]  ;;  %vm667_vm0 = vcmask 1045504   ;;  %vm660_vm1 = vcmask 359424   ;;  %vm936_vm2 = vcmask 130048  }
  0x17   : > { %7563 = vset.pattern.permute.xlu1 %v10408_v0  ;;  %706 = vmatprep.mubr.bf16.mxu0 %v7621_v1  ;;  %v7629_v28 = vld [vmem:[%s10399_s3 + $0x4] ss:$12 sps:$4 sm:$0xff]   ;;  %v7623_v30 = vld [vmem:[%s10397_s1 + $0x8] ss:$12 sps:$4 sm:$0xff]   ;;  %v7631_v32 = vld [vmem:[%s10399_s3] ss:$12 sps:$4 sm:$0xff]  }
  0x18   : > { %s10693_s13 = smov (!%p276_p10, %s5861_s13), 15  ;;  %424 = vperm.xlu0 %7562, %v291_v2   ;;  %434 = vperm.xlu1 %7563, %v293_v3   ;;  %v7632_v34 = vld [vmem:[%s10399_s3 + $0x1c] ss:$12 sps:$4 sm:$0xff]   ;;  %v7634_v36 = vld [vmem:[%s10399_s3 + $0x18] ss:$12 sps:$4 sm:$0xff]   ;;  %vm8240_vm3 = vmmov 0  }
  0x19   : > { %s7518_s16 = smul.u32 304, %s10693_s13  ;;  %v7635_v37 = vld [vmem:[%s10399_s3 + $0x34] ss:$12 sps:$4 sm:$0xff]   ;;  %v7637_v41 = vld [vmem:[%s10399_s3 + $0x30] ss:$12 sps:$4 sm:$0xff]   ;;  %vm1075_vm4 = vcmask 523264  }
  0x1a   : > { %v7628_v40 = vld [vmem:[%s10397_s1 + $0x20] ss:$12 sps:$4 sm:$0xff]   ;;  %v7640_v45 = vld [vmem:[%s10399_s3 + $0x48] ss:$12 sps:$4 sm:$0xff]   ;;  %v7641_v46 = vld [vmem:[%s10399_s3 + $0x64] ss:$12 sps:$4 sm:$0xff]  }
  0x1b   : > { %s8347_s23 = scalar_lea.vmem %s10396_s0, %s7518_s16  ;;  %v7638_v42 = vld [vmem:[%s10399_s3 + $0x4c] ss:$12 sps:$4 sm:$0xff]   ;;  %v7644_v50 = vld [vmem:[%s10399_s3 + $0x7c] ss:$12 sps:$4 sm:$0xff]   ;;  %v8452_v62 = vld [vmem:[%s10399_s3 + $0x94] ss:$12 sps:$4 sm:$0xff]  }
  0x1c   : > { %v7564_v6 = vld [vmem:[%s8347_s23 + $0x4] ss:$8 sps:$4 sm:$0xff]   ;;  %v7566_v7 = vld [vmem:[%s8347_s23] ss:$8 sps:$4 sm:$0xff]   ;;  %v7567_v8 = vld [vmem:[%s8347_s23 + $0x14] ss:$8 sps:$4 sm:$0xff]   ;;  %429 = vperm.xlu0 %7562, %v292_v4   ;;  %439 = vperm.xlu1 %7563, %v294_v5  }
  0x1d   : > { %674 = vmatprep.subr.bf16.mxu0 %v7564_v6  ;;  %v7569_v9 = vld [vmem:[%s8347_s23 + $0x10] ss:$8 sps:$4 sm:$0xff]   ;;  %v7570_v10 = vld [vmem:[%s8347_s23 + $0x24] ss:$8 sps:$4 sm:$0xff]   ;;  %v7572_v11 = vld [vmem:[%s8347_s23 + $0x20] ss:$8 sps:$4 sm:$0xff]  }
  0x1e   : > { %675 = vmatpush1.bf16.msra.mxu0 %v7566_v7  ;;  %v7573_v12 = vld [vmem:[%s8347_s23 + $0x34] ss:$8 sps:$4 sm:$0xff]   ;;  %v7575_v13 = vld [vmem:[%s8347_s23 + $0x30] ss:$8 sps:$4 sm:$0xff]   ;;  %v7576_v14 = vld [vmem:[%s8347_s23 + $0x44] ss:$8 sps:$4 sm:$0xff]  }
  0x1f   : > { %676 = vmatprep.subr.bf16.mxu0 %v7567_v8  ;;  %v7578_v15 = vld [vmem:[%s8347_s23 + $0x40] ss:$8 sps:$4 sm:$0xff]   ;;  %v7579_v16 = vld [vmem:[%s8347_s23 + $0x54] ss:$8 sps:$4 sm:$0xff]   ;;  %v7603_v17 = vld [vmem:[%s8347_s23 + $0x104] ss:$8 sps:$4 sm:$0xff]  }
  0x20   : > { %v7581_v18 = vld [vmem:[%s8347_s23 + $0x50] ss:$8 sps:$4 sm:$0xff]   ;;  %v7582_v19 = vld [vmem:[%s8347_s23 + $0x64] ss:$8 sps:$4 sm:$0xff]   ;;  %v7607_v20 = vld [vmem:[%s8347_s23 + $0x100] ss:$8 sps:$4 sm:$0xff]   ;;  %727 = vmatprep.subr.bf16.mxu1 %v7603_v17 }
  0x21   : > { %v7609_v21 = vld [vmem:[%s8347_s23 + $0x114] ss:$8 sps:$4 sm:$0xff]   ;;  %728 = vmatpush1.bf16.msra.mxu1 %v7607_v20  ;;  %v7584_v22 = vld [vmem:[%s8347_s23 + $0x60] ss:$8 sps:$4 sm:$0xff]   ;;  %v7613_v23 = vld [vmem:[%s8347_s23 + $0x110] ss:$8 sps:$4 sm:$0xff]  }
  0x22   : > { %677 = vmatpush1.bf16.msra.mxu0 %v7569_v9  ;;  %729 = vmatprep.subr.bf16.mxu1 %v7609_v21  ;;  %v7615_v24 = vld [vmem:[%s8347_s23 + $0x124] ss:$8 sps:$4 sm:$0x3f]   ;;  %v7585_v25 = vld [vmem:[%s8347_s23 + $0x74] ss:$8 sps:$4 sm:$0xff]   ;;  %vm5768_vm5 = vcmask 1040384  }
  0x23   : > { %678 = vmatprep.subr.bf16.mxu0 %v7570_v10  ;;  %v7619_v26 = vld [vmem:[%s8347_s23 + $0x120] ss:$8 sps:$4 sm:$0x3f]   ;;  %v7587_v29 = vld [vmem:[%s8347_s23 + $0x70] ss:$8 sps:$4 sm:$0xff]   ;;  %vm5770_vm6 = vcmask 1041408  }
  0x24   : > { %v669_v27 = vsel %vm667_vm0, %v7619_v26, 0  ;;  %v7588_v31 = vld [vmem:[%s8347_s23 + $0x84] ss:$8 sps:$4 sm:$0xff]   ;;  %v7590_v33 = vld [vmem:[%s8347_s23 + $0x80] ss:$8 sps:$4 sm:$0xff]   ;;  %vm5772_vm7 = vcmask 1042432  }
  0x25   : > { %730 = vmatpush1.bf16.msra.mxu1 %v7613_v23  ;;  %v7591_v35 = vld [vmem:[%s8347_s23 + $0x94] ss:$8 sps:$4 sm:$0xff]   ;;  %v7593_v38 = vld [vmem:[%s8347_s23 + $0x90] ss:$8 sps:$4 sm:$0xff]   ;;  %v7594_v39 = vld [vmem:[%s8347_s23 + $0xa4] ss:$8 sps:$4 sm:$0xff]  }
  0x26   : > { %679 = vmatpush1.bf16.msra.mxu0 %v7572_v11  ;;  %5907 = vmatprep.subr.msk.bf16.mxu1 %vm667_vm0, %v7615_v24  ;;  %v7596_v43 = vld [vmem:[%s8347_s23 + $0xa0] ss:$8 sps:$4 sm:$0xff]   ;;  %v7597_v44 = vld [vmem:[%s8347_s23 + $0xb4] ss:$8 sps:$4 sm:$0xff]   ;;  %v7599_v47 = vld [vmem:[%s8347_s23 + $0xb0] ss:$8 sps:$4 sm:$0xff]  }
  0x27   : > { %680 = vmatprep.subr.bf16.mxu0 %v7573_v12  ;;  %v7600_v48 = vld [vmem:[%s8347_s23 + $0xc4] ss:$8 sps:$4 sm:$0xff]   ;;  %v7602_v51 = vld [vmem:[%s8347_s23 + $0xc0] ss:$8 sps:$4 sm:$0xff]   ;;  %v7605_v52 = vld [vmem:[%s8347_s23 + $0xd4] ss:$8 sps:$4 sm:$0xff]  }
  0x28   : > { %v7643_v49 = vld [vmem:[%s10399_s3 + $0x60] ss:$12 sps:$4 sm:$0xff]   ;;  %v7646_v53 = vld [vmem:[%s10399_s3 + $0x78] ss:$12 sps:$4 sm:$0xff]   ;;  %v7617_v57 = vld [vmem:[%s8347_s23 + $0xf4] ss:$8 sps:$4 sm:$0xff]  }
  0x29   : > { %732 = vmatpush1.bf16.msra.mxu1 %v669_v27  ;;  %v7608_v54 = vld [vmem:[%s8347_s23 + $0xd0] ss:$8 sps:$4 sm:$0xff]   ;;  %v7611_v55 = vld [vmem:[%s8347_s23 + $0xe4] ss:$8 sps:$4 sm:$0xff]   ;;  %v7614_v56 = vld [vmem:[%s8347_s23 + $0xe0] ss:$8 sps:$4 sm:$0xff]  }
  0x2a   : > { %681 = vmatpush1.bf16.msra.mxu0 %v7575_v13  ;;  %943 = vmatprep.subr.bf16.mxu1 %v7629_v28  ;;  %v7620_v58 = vld [vmem:[%s8347_s23 + $0xf0] ss:$8 sps:$4 sm:$0xff]   ;;  %v7624_v59 = vld [vmem:[%s10397_s1] ss:$12 sps:$4 sm:$0xff]   ;;  %v7625_v60 = vld [vmem:[%s10397_s1 + $0x1c] ss:$12 sps:$4 sm:$0xff]  }
  0x2b   : > { %682 = vmatprep.subr.bf16.mxu0 %v7576_v14  ;;  %v7627_v61 = vld [vmem:[%s10397_s1 + $0x18] ss:$12 sps:$4 sm:$0xff]   ;;  %v8457_v63 = vld [vmem:[%s10399_s3 + $0x90] ss:$12 sps:$4 sm:$0xff]   ;;  %v8469_v2 = vld [vmem:[%s10399_s3 + $0xa8] ss:$12 sps:$4 sm:$0xff]  }
  0x2c   : > { %5908 = vmatmul.mubr.msk.bf16.vlgmr.msra.gmra.mrb[0].mxu1 %vm660_vm1, %v7623_v30  ;;  %v8464_v1 = vld [vmem:[%s10399_s3 + $0xac] ss:$12 sps:$4 sm:$0xff]   ;;  %v8476_v3 = vld [vmem:[%s10399_s3 + $0xc4] ss:$12 sps:$4 sm:$0xff]   ;;  %vm5774_vm8 = vcmask 1043456   ;;  %vm5776_vm9 = vcmask 1044480  }
  0x2d   : > { %769 = vmatprep.mubr.bf16.mxu1 %v10408_v0  ;;  %944 = vmatpush1.bf16.msra.mxu1 %v7631_v32  ;;  %v8481_v4 = vld [vmem:[%s10399_s3 + $0xc0] ss:$12 sps:$4 sm:$0xff]   ;;  %s272_s13 = sand.u32 1, %s8228_s25   ;;  %s6531_s15 = sshll.u32 %s8304_s28, 7  ;;  %vm5779_vm10 = vcmask 1046528   ;;  %vm5781_vm11 = vcmask 80896  }
  0x2e   : > { %683 = vmatpush1.bf16.msra.mxu0 %v7578_v15  ;;  %945 = vmatprep.subr.bf16.mxu1 %v7632_v34  ;;  %s5860_s14 = sshll.u32 %s272_s13, 3  ;;  %s10353_s20 = scalar_lea.hbm %s10403_s7, %s6531_s15 }
  0x2f   : > { %684 = vmatprep.subr.bf16.mxu0 %v7579_v16  ;;  %s274_s16 = scalar_lea.vmem [#allocation2], %s5860_s14  ;;  %s5784_s21 = scalar_lea.sflag [#allocation3], %s272_s13 }
  0x30   : > { %s5797_s17 = sshll.u32 %s274_s16, 4  ;;  %s8242_s22 = smov [#allocation2]   ;;  %s10355_s17 = int_to_ptr.vmem [resolvable:$true] %s5797_s17 }
  0x31   : > { %946 = vmatpush1.bf16.msra.mxu1 %v7634_v36  ;;  %s8174_s28 = scalar_lea.vmem %s10355_s17, 128 }
  0x32   : > { %685 = vmatpush1.bf16.msra.mxu0 %v7581_v18  ;;  %947 = vmatprep.subr.bf16.mxu1 %v7635_v37  ;;  %p8175_p11 = scmp.ne.s32.totalorder %s10355_s17, %s8174_s28 }
  0x33   : > { %686 = vmatprep.subr.bf16.mxu0 %v7582_v19 }
  0x34   : > { %5909 = vmatmul.mubr.msk.bf16.gmra.mrb[4].mxu1 %vm660_vm1, %v7628_v40  ;;  %v8503_v40 = vld [vmem:[%s10399_s3 + $0x8] ss:$12 sps:$4 sm:$0xff]   ;;  %p8176_p12 = pnand %p8175_p11, %p8321_p5 }
  0x35   : > { %948 = vmatpush1.bf16.msra.mxu1 %v7637_v41 }
  0x36   : > { %687 = vmatpush1.bf16.msra.mxu0 %v7584_v22  ;;  %949 = vmatprep.subr.bf16.mxu1 %v7638_v42  ;;  %p8177_p13 = pneg %p8176_p12 }
  0x37   : > { %688 = vmatprep.subr.bf16.mxu0 %v7585_v25 }
  0x39   : > { %950 = vmatpush1.bf16.msra.mxu1 %v7640_v45 }
  0x3a   : > { %689 = vmatpush1.bf16.msra.mxu0 %v7587_v29  ;;  %951 = vmatprep.subr.bf16.mxu1 %v7641_v46 }
  0x3b   : > { %690 = vmatprep.subr.bf16.mxu0 %v7588_v31 }
  0x3d   : > { %952 = vmatpush1.bf16.msra.mxu1 %v7643_v49 }
  0x3e   : > { %691 = vmatpush1.bf16.msra.mxu0 %v7590_v33  ;;  %953 = vmatprep.subr.bf16.mxu1 %v7644_v50  ;;  %v8512_v50 = vld [vmem:[%s10399_s3 + $0x20] ss:$12 sps:$4 sm:$0xff]  }
  0x3f   : > { %692 = vmatprep.subr.bf16.mxu0 %v7591_v35 }
  0x41   : > { %954 = vmatpush1.bf16.msra.mxu1 %v7646_v53 }
  0x42   : > { %693 = vmatpush1.bf16.msra.mxu0 %v7593_v38  ;;  %955 = vmatprep.subr.bf16.mxu1 %v8452_v62 }
  0x43   : > { %694 = vmatprep.subr.bf16.mxu0 %v7594_v39 }
  0x45   : > { %956 = vmatpush1.bf16.msra.mxu1 %v8457_v63 }
  0x46   : > { %695 = vmatpush1.bf16.msra.mxu0 %v7596_v43  ;;  %957 = vmatprep.subr.bf16.mxu1 %v8464_v1 }
  0x47   : > { %696 = vmatprep.subr.bf16.mxu0 %v7597_v44 }
  0x49   : > { %958 = vmatpush1.bf16.msra.mxu1 %v8469_v2 }
  0x4a   : > { %697 = vmatpush1.bf16.msra.mxu0 %v7599_v47  ;;  %959 = vmatprep.subr.bf16.mxu1 %v8476_v3 }
  0x4b   : > { %698 = vmatprep.subr.bf16.mxu0 %v7600_v48 }
  0x4d   : > { %960 = vmatpush1.bf16.msra.mxu1 %v8481_v4 }
  0x4e   : > { %699 = vmatpush1.bf16.msra.mxu0 %v7602_v51  ;;  %996 = vmatprep.subr.bf16.mxu1 %v10408_v0 }
  0x4f   : > { %700 = vmatprep.subr.bf16.mxu0 %v7605_v52 }
  0x52   : > { %701 = vmatpush1.bf16.msra.mxu0 %v7608_v54 }
  0x53   : > { %702 = vmatprep.subr.bf16.mxu0 %v7611_v55  ;;  %v8519_v55 = vld [vmem:[%s10399_s3 + $0x38] ss:$12 sps:$4 sm:$0xff]  }
  0x56   : > { %703 = vmatpush1.bf16.msra.mxu0 %v7614_v56  ;;  %v8528_v56 = vld [vmem:[%s10399_s3 + $0x50] ss:$12 sps:$4 sm:$0xff]  }
  0x57   : > { %704 = vmatprep.subr.bf16.mxu0 %v7617_v57  ;;  %v8535_v57 = vld [vmem:[%s10399_s3 + $0x68] ss:$12 sps:$4 sm:$0xff]  }
  0x5a   : > { %705 = vmatpush1.bf16.msra.mxu0 %v7620_v58  ;;  %v8542_v58 = vld [vmem:[%s10399_s3 + $0x80] ss:$12 sps:$4 sm:$0xff]  }
  0x5d   : > { %707 = vmatmul.mubr.bf16.vlgmr.msra.gmra.mrb[0].mxu0 %v7624_v59  ;;  %v8549_v59 = vld [vmem:[%s10399_s3 + $0x98] ss:$12 sps:$4 sm:$0xff]  }
  0x5e   : > { %716 = vmatprep.mubr.bf16.mxu0 %v7625_v60  ;;  %v8556_v60 = vld [vmem:[%s10399_s3 + $0xb0] ss:$12 sps:$4 sm:$0xff]  }
  0x65   : > { %717 = vmatmul.mubr.bf16.gmra.mrb[4].mxu0 %v7627_v61  ;;  %v359_v61 = vld [vmem:[%s10401_s5 + $0x80] sm:$0xff] }
  0x97   : > { %v8486_v13 = vpop.permute.xlu0 %424  ;;  %v8492_v20 = vpop.permute.xlu1 %434 }
  0x9b   : > { %v8488_v15 = vpop.permute.xlu0 %429  ;;  %v8496_v33 = vpop.permute.xlu1 %439 }
  0xff   : > { %v761_v5 = vpop.f32.mrb[0].mxu1 }
 0x100   : > { %v763_v6 = vpop.f32.mrb[1].mxu1 }
 0x101   : > { %v765_v7 = vpop.f32.mrb[2].mxu1 }
 0x102   : > { %v767_v8 = vpop.f32.mrb[3].mxu1 }
 0x107   : > { %v771_v9 = vpop.f32.mrb[4].mxu1 }
 0x108   : > { %v773_v10 = vpop.f32.mrb[5].mxu1 }
 0x109   : > { %v775_v11 = vpop.f32.mrb[6].mxu1 }
 0x10a   : > { %v777_v12 = vpop.f32.mrb[7].mxu1 }
 0x130   : > { %v708_v14 = vpop.f32.mrb[0].mxu0 }
 0x131   : > { %v709_v16 = vadd.f32 %v708_v14, %v8486_v13  ;;  %v710_v17 = vpop.f32.mrb[1].mxu0 }
 0x132   : > { %v711_v18 = vadd.f32 %v710_v17, %v8486_v13  ;;  %v712_v19 = vpop.f32.mrb[2].mxu0  ;;  %v346_v17 = vld [vmem:[%s10401_s5 + $0x18] sm:$0xff] }
 0x133   : > { %v762_v21 = vadd.f32 %v761_v5, %v709_v16  ;;  %v713_v22 = vadd.f32 %v712_v19, %v8488_v15  ;;  %v714_v23 = vpop.f32.mrb[3].mxu0  ;;  %v360_v5 = vld [vmem:[%s10401_s5 + $0x88] sm:$0xff]  ;;  %v345_v16 = vld [vmem:[%s10401_s5 + $0x10] sm:$0xff]  ;;  %v363_v19 = vld [vmem:[%s10401_s5 + $0xa0] sm:$0xff] }
 0x134   : > { %v764_v24 = vadd.f32 %v763_v6, %v711_v18  ;;  %v715_v25 = vadd.f32 %v714_v23, %v8488_v15  ;;  %v8569_v6 = vld [vmem:[%s10399_s3 + $0xc8] ss:$12 sps:$4 sm:$0xff]   ;;  %v8600_v18 = vpack.c.bf16 %v346_v17, %v345_v16  ;;  %v347_v23 = vld [vmem:[%s10401_s5 + $0x20] sm:$0xff] }
 0x135   : > { %v766_v26 = vadd.f32 %v765_v7, %v713_v22  ;;  %v780_v28 = vmax.f32 %v762_v21, 0.0  ;;  %v8572_v7 = vpack.c.bf16 %v360_v5, %v359_v61  ;;  %v364_v21 = vld [vmem:[%s10401_s5 + $0xa8] sm:$0xff]  ;;  %v357_v5 = vld [vmem:[%s10401_s5 + $0x70] sm:$0xff] }
 0x136   : > { %v768_v27 = vadd.f32 %v767_v8, %v715_v25  ;;  %v781_v30 = vmax.f32 %v764_v24, 0.0  ;;  %v343_v8 = vld [vmem:[%s10401_s5] sm:$0xff]  ;;  %v8610_v22 = vpack.c.bf16 %v364_v21, %v363_v19  ;;  %v348_v24 = vld [vmem:[%s10401_s5 + $0x28] sm:$0xff]  ;;  %v10406_v19 = vmov 0.0|0.0   ;;  %v377_v21 = vld [vmem:[%s10401_s5 + $0x110] sm:$0xff] }
 0x137   : > { %v782_v29 = vmax.f32 %v766_v26, 0.0  ;;  %v8618_v25 = vpack.c.bf16 %v348_v24, %v347_v23  ;;  %v365_v26 = vld [vmem:[%s10401_s5 + $0xb0] sm:$0xff]  ;;  %v376_v16 = vld [vmem:[%s10401_s5 + $0x108] sm:$0xff]  ;;  %7070 = vmatprep.subr.bf16.mxu0 %v10406_v19  ;;  %v378_v23 = vld [vmem:[%s10401_s5 + $0x118] sm:$0xff] }
 0x138   : > { %v783_v31 = vmax.f32 %v768_v27, 0.0  ;;  %v718_v32 = vpop.f32.mrb[4].mxu0  ;;  %v366_v27 = vld [vmem:[%s10401_s5 + $0xb8] sm:$0xff]  ;;  %v8735_v24 = vpack.c.bf16 %v378_v23, %v377_v21  ;;  %v8788_v21 = vld [vmem:[%s10400_s4 + $0x30] sm:$0xff] }
 0x139   : > { %v788_v34 = vpack.c.bf16 %v782_v29, %v780_v28  ;;  %v719_v35 = vadd.f32 %v718_v32, %v8492_v20  ;;  %v720_v36 = vpop.f32.mrb[5].mxu0  ;;  %v8628_v28 = vpack.c.bf16 %v366_v27, %v365_v26  ;;  %v349_v29 = vld [vmem:[%s10401_s5 + $0x30] sm:$0xff]  ;;  %v367_v32 = vld [vmem:[%s10401_s5 + $0xc0] sm:$0xff]  ;;  %v380_v27 = vld [vmem:[%s10401_s5 + $0x128] sm:$0xff]  ;;  %10539 = vst [vmem:[#allocation24_spill] sm:$0xff] %v8788_v21 }
 0x13a   : > { %v789_v37 = vpack.c.bf16 %v783_v31, %v781_v30  ;;  %v721_v38 = vadd.f32 %v720_v36, %v8492_v20  ;;  %v722_v39 = vpop.f32.mrb[6].mxu0  ;;  %v350_v30 = vld [vmem:[%s10401_s5 + $0x38] sm:$0xff]  ;;  %v351_v36 = vld [vmem:[%s10401_s5 + $0x40] sm:$0xff]  ;;  %10532 = vst [vmem:[#allocation17_spill] sm:$0xff] %v8735_v24 }
 0x13b   : > { %v772_v41 = vadd.f32 %v771_v9, %v719_v35  ;;  %v724_v42 = vpop.f32.mrb[7].mxu0  ;;  %v723_v43 = vadd.f32 %v722_v39, %v8496_v33  ;;  %v344_v9 = vld [vmem:[%s10401_s5 + $0x8] sm:$0xff]  ;;  %10520 = vst [vmem:[#allocation5_spill] sm:$0xff] %v8628_v28  ;;  %v8636_v31 = vpack.c.bf16 %v350_v30, %v349_v29  ;;  %v369_v39 = vld [vmem:[%s10401_s5 + $0xd0] sm:$0xff]  ;;  %v379_v26 = vld [vmem:[%s10401_s5 + $0x120] sm:$0xff] }
 0x13c   : > { %v725_v44 = vadd.f32 %v724_v42, %v8496_v33  ;;  %v774_v45 = vadd.f32 %v773_v10, %v721_v38  ;;  %5937 = vmatprep.mubr.msk.bf16.mxu1 %vm936_vm2, %v789_v37  ;;  %v8581_v10 = vpack.c.bf16 %v344_v9, %v343_v8  ;;  %v358_v8 = vld [vmem:[%s10401_s5 + $0x78] sm:$0xff]  ;;  %v8745_v29 = vpack.c.bf16 %v380_v27, %v379_v26  ;;  %v381_v30 = vld [vmem:[%s10401_s5 + $0x130] sm:$0xff]  ;;  %v8798_v27 = vld [vmem:[%s10400_s4 + $0x48] sm:$0xff] }
 0x13d   : > { %v784_v46 = vmax.f32 %v772_v41, 0.0  ;;  %v776_v47 = vadd.f32 %v775_v11, %v723_v43  ;;  %976 = vmatmul.mubr.bf16.vlgmr.msra.gmra.mrb[8].mxu1 %v788_v34  ;;  %v361_v11 = vld [vmem:[%s10401_s5 + $0x90] sm:$0xff]  ;;  %10521 = vst [vmem:[#allocation6_spill] sm:$0xff] %v8636_v31  ;;  %v370_v41 = vld [vmem:[%s10401_s5 + $0xd8] sm:$0xff]  ;;  %v8708_v9 = vpack.c.bf16 %v358_v8, %v357_v5 }
 0x13e   : > { %v785_v48 = vmax.f32 %v774_v45, 0.0  ;;  %v778_v49 = vadd.f32 %v777_v12, %v725_v44  ;;  %997 = vmatpush1.bf16.msra.mxu1 %v8503_v40  ;;  %v362_v12 = vld [vmem:[%s10401_s5 + $0x98] sm:$0xff]  ;;  %v8664_v42 = vpack.c.bf16 %v370_v41, %v369_v39  ;;  %v353_v43 = vld [vmem:[%s10401_s5 + $0x50] sm:$0xff]  ;;  %10533 = vst [vmem:[#allocation18_spill] sm:$0xff] %v8745_v29  ;;  %v8764_v39 = vld [vmem:[%s10400_s4] sm:$0xff] }
 0x13f   : > { %v786_v51 = vmax.f32 %v776_v47, 0.0  ;;  %998 = vmatprep.subr.bf16.mxu1 %v10408_v0  ;;  %v8592_v14 = vpack.c.bf16 %v362_v12, %v361_v11  ;;  %v354_v44 = vld [vmem:[%s10401_s5 + $0x58] sm:$0xff]  ;;  %v372_v47 = vld [vmem:[%s10401_s5 + $0xe8] sm:$0xff]  ;;  %10529 = vst [vmem:[#allocation14_spill] sm:$0xff] %v8708_v9  ;;  %v8715_v11 = vld [vmem:[%s10399_s3 + $0x4] ss:$12 sps:$4 sm:$0xff]  }
 0x140   : > { %v787_v52 = vmax.f32 %v778_v49, 0.0  ;;  %10524 = vst [vmem:[#allocation9_spill] sm:$0xff] %v8664_v42  ;;  %v8672_v45 = vpack.c.bf16 %v354_v44, %v353_v43  ;;  %v355_v49 = vld [vmem:[%s10401_s5 + $0x60] sm:$0xff]  ;;  %10530 = vst [vmem:[#allocation15_spill] sm:$0xff] %v8715_v11  ;;  %v8769_v43 = vld [vmem:[%s10400_s4 + $0x18] sm:$0xff] }
 0x141   : > { %v790_v53 = vpack.c.bf16 %v786_v51, %v784_v46  ;;  %v371_v46 = vld [vmem:[%s10401_s5 + $0xe0] sm:$0xff]  ;;  %v356_v51 = vld [vmem:[%s10401_s5 + $0x68] sm:$0xff]  ;;  %10535 = vst [vmem:[#allocation20_spill] sm:$0xff] %v8764_v39  ;;  %10536 = vst [vmem:[#allocation21_spill] sm:$0xff] %v8769_v43 }
 0x142   : > { %v791_v54 = vpack.c.bf16 %v787_v52, %v785_v48  ;;  %999 = vmatpush1.bf16.msra.mxu1 %v8512_v50  ;;  %10525 = vst [vmem:[#allocation10_spill] sm:$0xff] %v8672_v45  ;;  %v8682_v48 = vpack.c.bf16 %v372_v47, %v371_v46  ;;  %v8690_v52 = vpack.c.bf16 %v356_v51, %v355_v49  ;;  %v375_v12 = vld [vmem:[%s10401_s5 + $0x100] sm:$0xff]  ;;  %v8774_v44 = vld [vmem:[%s10400_s4 + $0x8] sm:$0xff]  ;;  %v8793_v23 = vld [vmem:[%s10400_s4 + $0x38] sm:$0xff] }
 0x143   : > { %1000 = vmatprep.subr.bf16.mxu1 %v10408_v0  ;;  %v8724_v17 = vpack.c.bf16 %v376_v16, %v375_v12  ;;  %10537 = vst [vmem:[#allocation22_spill] sm:$0xff] %v8774_v44  ;;  %v8779_v47 = vld [vmem:[%s10400_s4 + $0x20] sm:$0xff]  ;;  %10540 = vst [vmem:[#allocation25_spill] sm:$0xff] %v8793_v23 }
 0x144   : > { %5938 = vmatprep.mubr.msk.bf16.mxu1 %vm936_vm2, %v791_v54  ;;  %10526 = vst [vmem:[#allocation11_spill] sm:$0xff] %v8682_v48  ;;  %10527 = vst [vmem:[#allocation12_spill] sm:$0xff] %v8690_v52 }
 0x145   : > { %986 = vmatmul.mubr.bf16.gmra.mrb[12].mxu1 %v790_v53  ;;  %10531 = vst [vmem:[#allocation16_spill] sm:$0xff] %v8724_v17  ;;  %7072 = vmatpush3.bf16.msra.mxu0 %v8724_v17  ;;  %10538 = vst [vmem:[#allocation23_spill] sm:$0xff] %v8779_v47 }
 0x146   : > { %1001 = vmatpush1.bf16.msra.mxu1 %v8519_v55  ;;  %5939 = vmatprep.mubr.msk.bf16.mxu1 %vm936_vm2, %v789_v37  ;;  %v352_v37 = vld [vmem:[%s10401_s5 + $0x48] sm:$0xff] }
 0x147   : > { %1002 = vmatprep.subr.bf16.mxu1 %v10408_v0  ;;  %v8654_v38 = vpack.c.bf16 %v352_v37, %v351_v36  ;;  %7073 = vmatprep.subr.bf16.mxu0 %v10406_v19  ;;  %v7667_v36 = vld [vmem:[%s8347_s23 + $0x134] ss:$8 sps:$4 sm:$0xff]   ;;  %v10404_v37 = vmov 0.0  }
 0x148   : > { %6902 = vmatprep.mubr.msk.f32.mxu0 %vm8240_vm3, %v10404_v37 }
 0x149   : > { %10523 = vst [vmem:[#allocation8_spill] sm:$0xff] %v8654_v38  ;;  %7075 = vmatpush3.bf16.msra.mxu0 %v8735_v24 }
 0x14a   : > { %1003 = vmatpush1.bf16.msra.mxu1 %v8528_v56  ;;  %7076 = vmatprep.subr.bf16.mxu0 %v10406_v19 }
 0x14b   : > { %1004 = vmatprep.subr.bf16.mxu1 %v10408_v0 }
 0x14d   : > { %7078 = vmatpush3.bf16.msra.mxu0 %v8745_v29 }
 0x14e   : > { %1005 = vmatpush1.bf16.msra.mxu1 %v8535_v57  ;;  %7079 = vmatprep.subr.bf16.mxu0 %v10406_v19 }
 0x14f   : > { %1006 = vmatprep.subr.bf16.mxu1 %v10408_v0 }
 0x152   : > { %1007 = vmatpush1.bf16.msra.mxu1 %v8542_v58 }
 0x153   : > { %1008 = vmatprep.subr.bf16.mxu1 %v10408_v0 }
 0x156   : > { %1009 = vmatpush1.bf16.msra.mxu1 %v8549_v59 }
 0x157   : > { %1010 = vmatprep.subr.bf16.mxu1 %v10408_v0 }
 0x15a   : > { %1011 = vmatpush1.bf16.msra.mxu1 %v8556_v60 }
 0x15b   : > { %1012 = vmatprep.subr.bf16.mxu1 %v10408_v0 }
 0x15e   : > { %1013 = vmatpush1.bf16.msra.mxu1 %v8569_v6 }
 0x15f   : > { %7039 = vmatprep.subr.bf16.mxu1 %v8572_v7 }
 0x161   : > { %1029 = vmatmul.mubr.bf16.vlgmr.msra.gmra.mrb[16].mxu1 %v788_v34  ;;  %v368_v34 = vld [vmem:[%s10401_s5 + $0xc8] sm:$0xff] }
 0x162   : > { %5940 = vmatprep.mubr.msk.bf16.mxu1 %vm936_vm2, %v791_v54  ;;  %7041 = vmatpush3.bf16.msra.mxu1 %v8581_v10  ;;  %v8646_v35 = vpack.c.bf16 %v368_v34, %v367_v32  ;;  %v374_v54 = vld [vmem:[%s10401_s5 + $0xf8] sm:$0xff] }
 0x163   : > { %7043 = vmatprep.subr.bf16.mxu1 %v8592_v14  ;;  %v382_v32 = vld [vmem:[%s10401_s5 + $0x138] sm:$0xff] }
 0x164   : > { %10522 = vst [vmem:[#allocation7_spill] sm:$0xff] %v8646_v35  ;;  %v8755_v34 = vpack.c.bf16 %v382_v32, %v381_v30 }
 0x166   : > { %7045 = vmatpush3.bf16.msra.mxu1 %v8600_v18  ;;  %10534 = vst [vmem:[#allocation19_spill] sm:$0xff] %v8755_v34  ;;  %7081 = vmatpush3.bf16.msra.mxu0 %v8755_v34 }
 0x167   : > { %7047 = vmatprep.subr.bf16.mxu1 %v8610_v22  ;;  %1465 = vmatprep.subr.bf16.mxu0 %v7667_v36  ;;  %v8804_v36 = vld [vmem:[%s10400_s4 + $0x50] sm:$0xff] }
 0x169   : > { %1037 = vmatmul.mubr.bf16.gmra.mrb[20].mxu1 %v790_v53  ;;  %v373_v53 = vld [vmem:[%s10401_s5 + $0xf0] sm:$0xff] }
 0x16a   : > { %7049 = vmatpush3.bf16.msra.mxu1 %v8618_v25  ;;  %v8700_v61 = vpack.c.bf16 %v374_v54, %v373_v53 }
 0x16b   : > { %7051 = vmatprep.subr.bf16.mxu1 %v8628_v28 }
 0x16c   : > { %10528 = vst [vmem:[#allocation13_spill] sm:$0xff] %v8700_v61 }
 0x16e   : > { %7053 = vmatpush3.bf16.msra.mxu1 %v8636_v31 }
 0x16f   : > { %7055 = vmatprep.subr.bf16.mxu1 %v8646_v35 }
 0x172   : > { %7057 = vmatpush3.bf16.msra.mxu1 %v8654_v38 }
 0x173   : > { %7059 = vmatprep.subr.bf16.mxu1 %v8664_v42 }
 0x176   : > { %7061 = vmatpush3.bf16.msra.mxu1 %v8672_v45 }
 0x177   : > { %7063 = vmatprep.subr.bf16.mxu1 %v8682_v48 }
 0x17a   : > { %7065 = vmatpush3.bf16.msra.mxu1 %v8690_v52 }
 0x17b   : > { %7067 = vmatprep.subr.bf16.mxu1 %v8700_v61 }
 0x17e   : > { %7069 = vmatpush3.bf16.msra.mxu1 %v8708_v9 }
 0x17f   : > { %1589 = vmatprep.subr.bf16.mxu1 %v8715_v11 }
 0x210   : > { %v977_v41 = vpop.f32.mrb[8].mxu1 }
 0x211   : > { %v979_v46 = vpop.f32.mrb[9].mxu1  ;;  %v1045_v51 = vmul.f32 %v977_v41, %v8764_v39 }
 0x212   : > { %v981_v49 = vpop.f32.mrb[10].mxu1  ;;  %v1046_v5 = vmul.f32 %v979_v46, %v8774_v44 }
 0x213   : > { %v1048_v53 = vmul.f32 %v981_v49, %v8769_v43  ;;  %v983_v54 = vpop.f32.mrb[11].mxu1 }
 0x214   : > { %v1049_v8 = vmul.f32 %v983_v54, %v8779_v47 }
 0x215   : > { %v1057_v12 = vadd.f32 %v1048_v53, %v1045_v51 }
 0x216   : > { %v1066_v16 = vadd.f32 %v1049_v8, %v1046_v5 }
 0x218   : > { %v987_v26 = vpop.f32.mrb[12].mxu1 }
 0x219   : > { %v1051_v30 = vmul.f32 %v987_v26, %v8788_v21  ;;  %v989_v32 = vpop.f32.mrb[13].mxu1 }
 0x21a   : > { %v1052_v41 = vmul.f32 %v989_v32, %v8793_v23  ;;  %v991_v46 = vpop.f32.mrb[14].mxu1 }
 0x21b   : > { %v1058_v49 = vadd.f32 %v1057_v12, %v1051_v30  ;;  %v1054_v51 = vmul.f32 %v991_v46, %v8798_v27  ;;  %v993_v53 = vpop.f32.mrb[15].mxu1  ;;  %v8854_v46 = vld [vmem:[%s10399_s3 + $0x4c] ss:$12 sps:$4 sm:$0xff]  }
 0x21c   : > { %v1067_v54 = vadd.f32 %v1066_v16, %v1052_v41  ;;  %v1055_v5 = vmul.f32 %v993_v53, %v8804_v36  ;;  %v8812_v16 = vld [vmem:[%s10399_s3] ss:$12 sps:$4 sm:$0xff]  }
 0x21d   : > { %v1059_v8 = vadd.f32 %v1058_v49, %v1054_v51 }
 0x21e   : > { %v1068_v37 = vadd.f32 %v1067_v54, %v1055_v5  ;;  %v8862_v54 = vld [vmem:[%s10400_s4 + $0x40] sm:$0xff]  ;;  %v8867_v5 = vld [vmem:[%s10399_s3 + $0x48] ss:$12 sps:$4 sm:$0xff]  }
 0x21f   : > { %v1060_v19 = vrot.slane %v1059_v8, 4 }
 0x220   : > { %v1069_v26 = vrot.slane %v1068_v37, 4 }
 0x221   : > { %v1061_v0 = vadd.f32 %v1060_v19, %v1059_v8  ;;  %v8818_v19 = vld [vmem:[%s10399_s3 + $0x1c] ss:$12 sps:$4 sm:$0xff]   ;;  %v8873_v8 = vld [vmem:[%s10399_s3 + $0x64] ss:$12 sps:$4 sm:$0xff]  }
 0x222   : > { %v1070_v21 = vadd.f32 %v1069_v26, %v1068_v37  ;;  %v8835_v37 = vld [vmem:[%s10399_s3 + $0x34] ss:$12 sps:$4 sm:$0xff]  }
 0x223   : > { %v1062_v47 = vrot.slane %v1061_v0, 2 }
 0x224   : > { %v1071_v44 = vrot.slane %v1070_v21, 2 }
 0x225   : > { %v1063_v43 = vadd.f32 %v1062_v47, %v1061_v0  ;;  %v8824_v0 = vld [vmem:[%s10400_s4 + $0x10] sm:$0xff] }
 0x226   : > { %v1072_v39 = vadd.f32 %v1071_v44, %v1070_v21 }
 0x227   : > { %v1064_v34 = vrot.slane %v1063_v43, 1 }
 0x228   : > { %v1073_v32 = vrot.slane %v1072_v39, 1 }
 0x229   : > { %v1065_v12 = vadd.f32 %v1064_v34, %v1063_v43  ;;  %v8829_v34 = vld [vmem:[%s10399_s3 + $0x18] ss:$12 sps:$4 sm:$0xff]   ;;  %v8841_v43 = vld [vmem:[%s10400_s4 + $0x28] sm:$0xff] }
 0x22a   : > { %v1074_v23 = vadd.f32 %v1073_v32, %v1072_v39  ;;  %v8879_v32 = vld [vmem:[%s10400_s4 + $0x58] sm:$0xff] }
 0x22c   : > { %1156 = vmatprep.mubr.f32.mxu1 %v1074_v23  ;;  %v8847_v23 = vld [vmem:[%s10399_s3 + $0x30] ss:$12 sps:$4 sm:$0xff]  }
 0x22d   : > { %1157 = vmatmul.mubr.f32.vlgmr.msra.gmra.mrb[24].mxu1 %v1065_v12 }
 0x22e   : > { %1590 = vmatpush1.bf16.msra.mxu1 %v8812_v16 }
 0x22f   : > { %1591 = vmatprep.subr.bf16.mxu1 %v8818_v19 }
 0x232   : > { %1592 = vmatpush1.bf16.msra.mxu1 %v8829_v34 }
 0x233   : > { %1593 = vmatprep.subr.bf16.mxu1 %v8835_v37 }
 0x234   : > { %v1030_v39 = vpop.f32.mrb[16].mxu1 }
 0x235   : > { %v1047_v44 = vmul.f32 %v1030_v39, %v8824_v0  ;;  %v1032_v47 = vpop.f32.mrb[17].mxu1 }
 0x236   : > { %v1033_v21 = vpop.f32.mrb[18].mxu1  ;;  %1594 = vmatpush1.bf16.msra.mxu1 %v8847_v23  ;;  %v8885_v47 = vld [vmem:[%s10399_s3 + $0x60] ss:$12 sps:$4 sm:$0xff]  }
 0x237   : > { %v1050_v30 = vmul.f32 %v1033_v21, %v8841_v43  ;;  %v1035_v41 = vpop.f32.mrb[19].mxu1  ;;  %1595 = vmatprep.subr.bf16.mxu1 %v8854_v46  ;;  %v1076_v49 = vsel %vm1075_vm4, %v1047_v44, 0.0 }
 0x239   : > { %v1077_v51 = vsel %vm1075_vm4, %v1050_v30, 0.0 }
 0x23a   : > { %v1078_v53 = vadd.f32 %v1077_v51, %v1076_v49  ;;  %1596 = vmatpush1.bf16.msra.mxu1 %v8867_v5  ;;  %v8893_v49 = vld [vmem:[%s10399_s3 + $0x7c] ss:$12 sps:$4 sm:$0xff]  }
 0x23b   : > { %1597 = vmatprep.subr.bf16.mxu1 %v8873_v8 }
 0x23c   : > { %v1038_v26 = vpop.f32.mrb[20].mxu1 }
 0x23d   : > { %v1053_v12 = vmul.f32 %v1038_v26, %v8862_v54  ;;  %v1040_v39 = vpop.f32.mrb[21].mxu1 }
 0x23e   : > { %v1041_v44 = vpop.f32.mrb[22].mxu1  ;;  %1598 = vmatpush1.bf16.msra.mxu1 %v8885_v47 }
 0x23f   : > { %v1079_v21 = vsel %vm1075_vm4, %v1053_v12, 0.0  ;;  %v1056_v30 = vmul.f32 %v1041_v44, %v8879_v32  ;;  %v1043_v41 = vpop.f32.mrb[23].mxu1  ;;  %1599 = vmatprep.subr.bf16.mxu1 %v8893_v49  ;;  %v8900_v12 = vld [vmem:[%s10399_s3 + $0x78] ss:$12 sps:$4 sm:$0xff]  }
 0x240   : > { %v1080_v51 = vadd.f32 %v1079_v21, %v1078_v53 }
 0x241   : > { %v1081_v26 = vsel %vm1075_vm4, %v1056_v30, 0.0 }
 0x242   : > { %v1082_v39 = vadd.f32 %v1081_v26, %v1080_v51  ;;  %1600 = vmatpush1.bf16.msra.mxu1 %v8900_v12  ;;  %v7665_v51 = vld [vmem:[%s8347_s23 + $0x130] ss:$8 sps:$4 sm:$0xff]  }
 0x243   : > { %1601 = vmatprep.subr.bf16.mxu1 %v8452_v62  ;;  %v7670_v62 = vld [vmem:[%s8347_s23 + $0x144] ss:$8 sps:$4 sm:$0xff]  }
 0x244   : > { %v1083_v44 = vrot.slane %v1082_v39, 4 }
 0x246   : > { %v1084_v41 = vadd.f32 %v1083_v44, %v1082_v39  ;;  %1602 = vmatpush1.bf16.msra.mxu1 %v8457_v63  ;;  %v10541_v39 = vmov 0   ;;  %v7668_v63 = vld [vmem:[%s8347_s23 + $0x140] ss:$8 sps:$4 sm:$0xff]  }
 0x247   : > { %1603 = vmatprep.subr.bf16.mxu1 %v8464_v1  ;;  %v8917_v1 = vld [vmem:[%s10397_s1 + $0x4] ss:$12 sps:$4 sm:$0xff]   ;;  %v7674_v44 = vld [vmem:[%s8347_s23 + $0x160] ss:$8 sps:$4 sm:$0xff]  }
 0x248   : > { %v1085_v53 = vrot.slane %v1084_v41, 2 }
 0x24a   : > { %v1086_v21 = vadd.f32 %v1085_v53, %v1084_v41  ;;  %1604 = vmatpush1.bf16.msra.mxu1 %v8469_v2  ;;  %v7673_v2 = vld [vmem:[%s8347_s23 + $0x154] ss:$8 sps:$4 sm:$0xff]   ;;  %v7677_v53 = vld [vmem:[%s8347_s23 + $0x170] ss:$8 sps:$4 sm:$0xff]  }
 0x24b   : > { %1605 = vmatprep.subr.bf16.mxu1 %v8476_v3  ;;  %v7671_v3 = vld [vmem:[%s8347_s23 + $0x150] ss:$8 sps:$4 sm:$0xff]   ;;  %v7679_v41 = vld [vmem:[%s8347_s23 + $0x174] ss:$8 sps:$4 sm:$0xff]  }
 0x24c   : > { %v1087_v30 = vrot.slane %v1086_v21, 1 }
 0x24e   : > { %v1088_v26 = vadd.f32 %v1087_v30, %v1086_v21  ;;  %1606 = vmatpush1.bf16.msra.mxu1 %v8481_v4  ;;  %v7676_v4 = vld [vmem:[%s8347_s23 + $0x164] ss:$8 sps:$4 sm:$0xff]   ;;  %v7680_v30 = vld [vmem:[%s8347_s23 + $0x180] ss:$8 sps:$4 sm:$0xff]  }
 0x24f   : > { %1642 = vmatprep.subr.bf16.mxu1 %v10541_v39  ;;  %v7682_v21 = vld [vmem:[%s8347_s23 + $0x184] ss:$8 sps:$4 sm:$0xff]  }
 0x250   : > { %6903 = vmatmul.mubr.msk.f32.vlgmr.msra.gmra.mrb[8].mxu0 %vm1075_vm4, %v1088_v26  ;;  %v7683_v26 = vld [vmem:[%s8347_s23 + $0x190] ss:$8 sps:$4 sm:$0xff]  }
 0x251   : > { %1466 = vmatpush1.bf16.msra.mxu0 %v7665_v51  ;;  %1497 = vmatprep.mubr.bf16.mxu0 %v8917_v1  ;;  %v7685_v51 = vld [vmem:[%s8347_s23 + $0x194] ss:$8 sps:$4 sm:$0xff]  }
 0x252   : > { %1467 = vmatprep.subr.bf16.mxu0 %v7670_v62  ;;  %v7688_v62 = vld [vmem:[%s8347_s23 + $0x1a4] ss:$8 sps:$4 sm:$0xff]  }
 0x255   : > { %1468 = vmatpush1.bf16.msra.mxu0 %v7668_v63  ;;  %v7686_v63 = vld [vmem:[%s8347_s23 + $0x1a0] ss:$8 sps:$4 sm:$0xff]  }
 0x256   : > { %1469 = vmatprep.subr.bf16.mxu0 %v7673_v2  ;;  %v7691_v2 = vld [vmem:[%s8347_s23 + $0x1b4] ss:$8 sps:$4 sm:$0xff]  }
 0x259   : > { %1470 = vmatpush1.bf16.msra.mxu0 %v7671_v3  ;;  %v7689_v3 = vld [vmem:[%s8347_s23 + $0x1b0] ss:$8 sps:$4 sm:$0xff]  }
 0x25a   : > { %1471 = vmatprep.subr.bf16.mxu0 %v7676_v4  ;;  %v7694_v4 = vld [vmem:[%s8347_s23 + $0x1c4] ss:$8 sps:$4 sm:$0xff]  }
 0x25d   : > { %1472 = vmatpush1.bf16.msra.mxu0 %v7674_v44  ;;  %v7692_v44 = vld [vmem:[%s8347_s23 + $0x1c0] ss:$8 sps:$4 sm:$0xff]  }
 0x25e   : > { %1473 = vmatprep.subr.bf16.mxu0 %v7679_v41  ;;  %v7697_v41 = vld [vmem:[%s8347_s23 + $0x1d4] ss:$8 sps:$4 sm:$0xff]  }
 0x261   : > { %1474 = vmatpush1.bf16.msra.mxu0 %v7677_v53  ;;  %v7695_v53 = vld [vmem:[%s8347_s23 + $0x1d0] ss:$8 sps:$4 sm:$0xff]  }
 0x262   : > { %1475 = vmatprep.subr.bf16.mxu0 %v7682_v21  ;;  %v7700_v21 = vld [vmem:[%s8347_s23 + $0x1e4] ss:$8 sps:$4 sm:$0xff]  }
 0x265   : > { %1476 = vmatpush1.bf16.msra.mxu0 %v7680_v30  ;;  %v7698_v30 = vld [vmem:[%s8347_s23 + $0x1e0] ss:$8 sps:$4 sm:$0xff]  }
 0x266   : > { %1477 = vmatprep.subr.bf16.mxu0 %v7685_v51  ;;  %v7703_v51 = vld [vmem:[%s8347_s23 + $0x1f4] ss:$8 sps:$4 sm:$0xff]  }
 0x269   : > { %1478 = vmatpush1.bf16.msra.mxu0 %v7683_v26  ;;  %v7701_v26 = vld [vmem:[%s8347_s23 + $0x1f0] ss:$8 sps:$4 sm:$0xff]  }
 0x26a   : > { %1479 = vmatprep.subr.bf16.mxu0 %v7688_v62  ;;  %v7706_v62 = vld [vmem:[%s8347_s23 + $0x204] ss:$8 sps:$4 sm:$0xff]  }
 0x26d   : > { %1480 = vmatpush1.bf16.msra.mxu0 %v7686_v63  ;;  %v7704_v63 = vld [vmem:[%s8347_s23 + $0x200] ss:$8 sps:$4 sm:$0xff]  }
 0x26e   : > { %1481 = vmatprep.subr.bf16.mxu0 %v7691_v2  ;;  %v7709_v2 = vld [vmem:[%s8347_s23 + $0x214] ss:$8 sps:$4 sm:$0xff]  }
 0x271   : > { %1482 = vmatpush1.bf16.msra.mxu0 %v7689_v3  ;;  %v7707_v3 = vld [vmem:[%s8347_s23 + $0x210] ss:$8 sps:$4 sm:$0xff]  }
 0x272   : > { %1483 = vmatprep.subr.bf16.mxu0 %v7694_v4  ;;  %v7712_v4 = vld [vmem:[%s8347_s23 + $0x224] ss:$8 sps:$4 sm:$0xff]  }
 0x275   : > { %1484 = vmatpush1.bf16.msra.mxu0 %v7692_v44  ;;  %v7710_v44 = vld [vmem:[%s8347_s23 + $0x220] ss:$8 sps:$4 sm:$0xff]  }
 0x276   : > { %1485 = vmatprep.subr.bf16.mxu0 %v7697_v41  ;;  %v7715_v41 = vld [vmem:[%s8347_s23 + $0x234] ss:$8 sps:$4 sm:$0xff]  }
 0x279   : > { %1486 = vmatpush1.bf16.msra.mxu0 %v7695_v53  ;;  %v7713_v53 = vld [vmem:[%s8347_s23 + $0x230] ss:$8 sps:$4 sm:$0xff]  }
 0x27a   : > { %1487 = vmatprep.subr.bf16.mxu0 %v7700_v21  ;;  %v7718_v21 = vld [vmem:[%s8347_s23 + $0x244] ss:$8 sps:$4 sm:$0xff]  }
 0x27d   : > { %1488 = vmatpush1.bf16.msra.mxu0 %v7698_v30  ;;  %v8954_v30 = vld [vmem:[%s10397_s1] ss:$12 sps:$4 sm:$0xff]  }
 0x27e   : > { %1489 = vmatprep.subr.bf16.mxu0 %v7703_v51  ;;  %v7716_v51 = vld [vmem:[%s8347_s23 + $0x240] ss:$8 sps:$4 sm:$0xff]  }
 0x281   : > { %1490 = vmatpush1.bf16.msra.mxu0 %v7701_v26  ;;  %v8961_v26 = vld [vmem:[%s10397_s1 + $0x1c] ss:$12 sps:$4 sm:$0xff]  }
 0x282   : > { %1491 = vmatprep.subr.bf16.mxu0 %v7706_v62  ;;  %v7719_v62 = vld [vmem:[%s8347_s23 + $0x254] ss:$8 sps:$4 sm:$0x3f]  }
 0x285   : > { %1492 = vmatpush1.bf16.msra.mxu0 %v7704_v63  ;;  %v7721_v63 = vld [vmem:[%s8347_s23 + $0x250] ss:$8 sps:$4 sm:$0x3f]  }
 0x286   : > { %1493 = vmatprep.subr.bf16.mxu0 %v7709_v2  ;;  %v1460_v2 = vsel %vm667_vm0, %v7721_v63, 0 }
 0x289   : > { %1494 = vmatpush1.bf16.msra.mxu0 %v7707_v3  ;;  %v8971_v3 = vld [vmem:[%s10397_s1 + $0x18] ss:$12 sps:$4 sm:$0xff]  }
 0x28a   : > { %1495 = vmatprep.subr.bf16.mxu0 %v7712_v4  ;;  %v8979_v4 = vld [vmem:[%s10397_s1 + $0x8] ss:$12 sps:$4 sm:$0xff]  }
 0x28d   : > { %1496 = vmatpush1.bf16.msra.mxu0 %v7710_v44  ;;  %v8991_v44 = vld [vmem:[%s10397_s1 + $0x20] ss:$12 sps:$4 sm:$0xff]  }
 0x28e   : > { %1518 = vmatprep.subr.bf16.mxu0 %v7715_v41 }
 0x290   : > { %1498 = vmatmul.mubr.bf16.vlgmr.msra.gmra.mrb[12].mxu0 %v8954_v30 }
 0x291   : > { %1519 = vmatpush1.bf16.msra.mxu0 %v7713_v53  ;;  %1507 = vmatprep.mubr.bf16.mxu0 %v8961_v26 }
 0x292   : > { %1520 = vmatprep.subr.bf16.mxu0 %v7718_v21 }
 0x295   : > { %1521 = vmatpush1.bf16.msra.mxu0 %v7716_v51  ;;  %v9010_v51 = vld [vmem:[%s10402_s6] sm:$0x1] }
 0x296   : > { %6018 = vmatprep.subr.msk.bf16.mxu0 %vm667_vm0, %v7719_v62  ;;  %10542 = vst [vmem:[#allocation26_spill] sm:$0xff] %v9010_v51 }
 0x298   : > { %1508 = vmatmul.mubr.bf16.gmra.mrb[16].mxu0 %v8971_v3 }
 0x299   : > { %1523 = vmatpush1.bf16.msra.mxu0 %v1460_v2  ;;  %1550 = vmatprep.mubr.bf16.mxu0 %v10541_v39 }
 0x29a   : > { %7083 = vmatprep.subr.bf16.mxu0 %v8572_v7 }
 0x2a0   : > { %6019 = vmatmul.mubr.msk.bf16.vlgmr.msra.gmra.mrb[12].mxu0 %vm660_vm1, %v8979_v4 }
 0x2a1   : > { %1560 = vmatprep.mubr.bf16.mxu0 %v10541_v39  ;;  %7085 = vmatpush3.bf16.msra.mxu0 %v8581_v10 }
 0x2a2   : > { %7087 = vmatprep.subr.bf16.mxu0 %v8592_v14 }
 0x2a5   : > { %7089 = vmatpush3.bf16.msra.mxu0 %v8600_v18 }
 0x2a6   : > { %7091 = vmatprep.subr.bf16.mxu0 %v8610_v22 }
 0x2a8   : > { %6020 = vmatmul.mubr.msk.bf16.gmra.mrb[16].mxu0 %vm660_vm1, %v8991_v44 }
 0x2a9   : > { %7093 = vmatpush3.bf16.msra.mxu0 %v8618_v25 }
 0x2aa   : > { %7095 = vmatprep.subr.bf16.mxu0 %v8628_v28 }
 0x2ad   : > { %7097 = vmatpush3.bf16.msra.mxu0 %v8636_v31 }
 0x2ae   : > { %7099 = vmatprep.subr.bf16.mxu0 %v8646_v35 }
 0x2b1   : > { %7101 = vmatpush3.bf16.msra.mxu0 %v8654_v38 }
 0x2b2   : > { %7103 = vmatprep.subr.bf16.mxu0 %v8664_v42 }
 0x2b5   : > { %7105 = vmatpush3.bf16.msra.mxu0 %v8672_v45 }
 0x2b6   : > { %7107 = vmatprep.subr.bf16.mxu0 %v8682_v48 }
 0x2b9   : > { %7109 = vmatpush3.bf16.msra.mxu0 %v8690_v52 }
 0x2ba   : > { %7111 = vmatprep.subr.bf16.mxu0 %v8700_v61 }
 0x2bd   : > { %7113 = vmatpush3.bf16.msra.mxu0 %v8708_v9 }
 0x2be   : > { %2234 = vmatprep.subr.bf16.mxu0 %v8715_v11 }
 0x300   : > { %v6566_v41 = vpop.f32.mrb[24].mxu1 }
 0x301   : > { %v6567_v53 = vpop.f32.mrb[25].mxu1 }
 0x302   : > { %v6568_v21 = vadd.f32 %v6567_v53, %v6566_v41 }
 0x304   : > { %v1159_v62 = vadd.f32 %v6568_v21, %v9010_v51 }
 0x323   : > { %v1228_v63 = vpop.f32.mrb[8].mxu0 }
 0x324   : > { %v9013_v2 = vadd.f32 %v1228_v63, %v1159_v62  ;;  %v6904_v52 = vpop.f32.mrb[9].mxu0 }
 0x326   : > { %10543 = vst [vmem:[#allocation27_spill] sm:$0xff] %v9013_v2 }
 0x373   : > { %v1552_v48 = vpop.f32.mrb[12].mxu0 }
 0x374   : > { %v7406_v61 = vadd.f32 %v1552_v48, %v8486_v13  ;;  %v1554_v9 = vpop.f32.mrb[13].mxu0 }
 0x375   : > { %v7407_v11 = vadd.f32 %v1554_v9, %v8486_v13  ;;  %v1556_v45 = vpop.f32.mrb[14].mxu0 }
 0x376   : > { %v7408_v41 = vadd.f32 %v1556_v45, %v8488_v15  ;;  %v1558_v53 = vpop.f32.mrb[15].mxu0  ;;  %v1571_v38 = vmax.f32 %v7406_v61, 0.0 }
 0x377   : > { %v7409_v42 = vadd.f32 %v1558_v53, %v8488_v15  ;;  %v1572_v31 = vmax.f32 %v7407_v11, 0.0  ;;  %v10549_v53 = vld [vmem:[#allocation22_spill] sm:$0xff] }
 0x378   : > { %v1573_v35 = vmax.f32 %v7408_v41, 0.0 }
 0x379   : > { %v1574_v21 = vmax.f32 %v7409_v42, 0.0 }
 0x37a   : > { %v1579_v51 = vpack.c.bf16 %v1573_v35, %v1571_v38 }
 0x37b   : > { %v1580_v62 = vpack.c.bf16 %v1574_v21, %v1572_v31  ;;  %v1562_v63 = vpop.f32.mrb[16].mxu0 }
 0x37c   : > { %v7410_v52 = vadd.f32 %v1562_v63, %v8492_v20  ;;  %v1564_v2 = vpop.f32.mrb[17].mxu0 }
 0x37d   : > { %v7411_v48 = vadd.f32 %v1564_v2, %v8492_v20  ;;  %v1566_v28 = vpop.f32.mrb[18].mxu0  ;;  %6021 = vmatprep.mubr.msk.bf16.mxu1 %vm936_vm2, %v1580_v62 }
 0x37e   : > { %v7412_v45 = vadd.f32 %v1566_v28, %v8496_v33  ;;  %v1568_v9 = vpop.f32.mrb[19].mxu0  ;;  %1622 = vmatmul.mubr.bf16.vlgmr.msra.gmra.mrb[28].mxu1 %v1579_v51  ;;  %v1575_v42 = vmax.f32 %v7410_v52, 0.0  ;;  %v10548_v28 = vld [vmem:[#allocation21_spill] sm:$0xff] }
 0x37f   : > { %v7413_v61 = vadd.f32 %v1568_v9, %v8496_v33  ;;  %1643 = vmatpush1.bf16.msra.mxu1 %v8503_v40  ;;  %v1576_v31 = vmax.f32 %v7411_v48, 0.0  ;;  %v10544_v40 = vmov 0.0|0.0   ;;  %v10551_v9 = vld [vmem:[#allocation24_spill] sm:$0xff] }
 0x380   : > { %v1577_v35 = vmax.f32 %v7412_v45, 0.0  ;;  %1644 = vmatprep.subr.bf16.mxu1 %v10541_v39 }
 0x381   : > { %v1578_v38 = vmax.f32 %v7413_v61, 0.0 }
 0x382   : > { %v1581_v11 = vpack.c.bf16 %v1577_v35, %v1575_v42  ;;  %v10552_v35 = vld [vmem:[#allocation25_spill] sm:$0xff] }
 0x383   : > { %v1582_v41 = vpack.c.bf16 %v1578_v38, %v1576_v31  ;;  %1645 = vmatpush1.bf16.msra.mxu1 %v8512_v50  ;;  %v10545_v50 = vmov 0.0  }
 0x384   : > { %1646 = vmatprep.subr.bf16.mxu1 %v10541_v39 }
 0x385   : > { %6022 = vmatprep.mubr.msk.bf16.mxu1 %vm936_vm2, %v1582_v41 }
 0x386   : > { %1632 = vmatmul.mubr.bf16.gmra.mrb[32].mxu1 %v1581_v11 }
 0x387   : > { %1647 = vmatpush1.bf16.msra.mxu1 %v8519_v55  ;;  %6023 = vmatprep.mubr.msk.bf16.mxu1 %vm936_vm2, %v1580_v62  ;;  %v10546_v55 = vld [vmem:[#allocation19_spill] sm:$0xff] }
 0x388   : > { %1648 = vmatprep.subr.bf16.mxu1 %v10541_v39  ;;  %v10550_v62 = vld [vmem:[#allocation23_spill] sm:$0xff] }
 0x38b   : > { %1649 = vmatpush1.bf16.msra.mxu1 %v8528_v56  ;;  %v7724_v56 = vld [vmem:[%s8347_s23 + $0x264] ss:$8 sps:$4 sm:$0xff]  }
 0x38c   : > { %1650 = vmatprep.subr.bf16.mxu1 %v10541_v39 }
 0x38f   : > { %1651 = vmatpush1.bf16.msra.mxu1 %v8535_v57 }
 0x390   : > { %1652 = vmatprep.subr.bf16.mxu1 %v10541_v39 }
 0x393   : > { %1653 = vmatpush1.bf16.msra.mxu1 %v8542_v58 }
 0x394   : > { %1654 = vmatprep.subr.bf16.mxu1 %v10541_v39 }
 0x397   : > { %1655 = vmatpush1.bf16.msra.mxu1 %v8549_v59 }
 0x398   : > { %1656 = vmatprep.subr.bf16.mxu1 %v10541_v39 }
 0x39b   : > { %1657 = vmatpush1.bf16.msra.mxu1 %v8556_v60  ;;  %v10547_v60 = vld [vmem:[#allocation20_spill] sm:$0xff] }
 0x39c   : > { %1658 = vmatprep.subr.bf16.mxu1 %v10541_v39 }
 0x39f   : > { %1659 = vmatpush1.bf16.msra.mxu1 %v8569_v6 }
 0x3a0   : > { %7114 = vmatprep.subr.bf16.mxu1 %v10544_v40 }
 0x3a2   : > { %1675 = vmatmul.mubr.bf16.vlgmr.msra.gmra.mrb[36].mxu1 %v1579_v51 }
 0x3a3   : > { %6024 = vmatprep.mubr.msk.bf16.mxu1 %vm936_vm2, %v1582_v41  ;;  %7116 = vmatpush3.bf16.msra.mxu1 %v8724_v17 }
 0x3a4   : > { %7117 = vmatprep.subr.bf16.mxu1 %v10544_v40 }
 0x3a7   : > { %7119 = vmatpush3.bf16.msra.mxu1 %v8735_v24 }
 0x3a8   : > { %7120 = vmatprep.subr.bf16.mxu1 %v10544_v40 }
 0x3aa   : > { %1683 = vmatmul.mubr.bf16.gmra.mrb[40].mxu1 %v1581_v11 }
 0x3ab   : > { %7122 = vmatpush3.bf16.msra.mxu1 %v8745_v29  ;;  %6921 = vmatprep.mubr.msk.f32.mxu1 %vm8240_vm3, %v10545_v50 }
 0x3ac   : > { %7123 = vmatprep.subr.bf16.mxu1 %v10544_v40 }
 0x3af   : > { %7125 = vmatpush3.bf16.msra.mxu1 %v10546_v55 }
 0x3b0   : > { %2110 = vmatprep.subr.bf16.mxu1 %v7724_v56 }
 0x451   : > { %v1623_v57 = vpop.f32.mrb[28].mxu1 }
 0x452   : > { %v1625_v58 = vpop.f32.mrb[29].mxu1  ;;  %v1691_v6 = vmul.f32 %v1623_v57, %v10547_v60 }
 0x453   : > { %v1627_v59 = vpop.f32.mrb[30].mxu1  ;;  %v1692_v21 = vmul.f32 %v1625_v58, %v10549_v53 }
 0x454   : > { %v1694_v51 = vmul.f32 %v1627_v59, %v10548_v28  ;;  %v1629_v2 = vpop.f32.mrb[31].mxu1 }
 0x455   : > { %v1695_v63 = vmul.f32 %v1629_v2, %v10550_v62 }
 0x456   : > { %v1703_v52 = vadd.f32 %v1694_v51, %v1691_v6 }
 0x457   : > { %v1712_v48 = vadd.f32 %v1695_v63, %v1692_v21 }
 0x459   : > { %v1633_v45 = vpop.f32.mrb[32].mxu1 }
 0x45a   : > { %v1697_v61 = vmul.f32 %v1633_v45, %v10551_v9  ;;  %v1635_v42 = vpop.f32.mrb[33].mxu1 }
 0x45b   : > { %v1698_v31 = vmul.f32 %v1635_v42, %v10552_v35  ;;  %v1637_v38 = vpop.f32.mrb[34].mxu1 }
 0x45c   : > { %v1704_v11 = vadd.f32 %v1703_v52, %v1697_v61  ;;  %v1700_v41 = vmul.f32 %v1637_v38, %v8798_v27  ;;  %v1639_v56 = vpop.f32.mrb[35].mxu1 }
 0x45d   : > { %v1713_v57 = vadd.f32 %v1712_v48, %v1698_v31  ;;  %v1701_v59 = vmul.f32 %v1639_v56, %v8804_v36 }
 0x45e   : > { %v1705_v60 = vadd.f32 %v1704_v11, %v1700_v41 }
 0x45f   : > { %v1714_v58 = vadd.f32 %v1713_v57, %v1701_v59 }
 0x460   : > { %v1706_v28 = vrot.slane %v1705_v60, 4 }
 0x461   : > { %v1715_v2 = vrot.slane %v1714_v58, 4 }
 0x462   : > { %v1707_v6 = vadd.f32 %v1706_v28, %v1705_v60 }
 0x463   : > { %v1716_v51 = vadd.f32 %v1715_v2, %v1714_v58 }
 0x464   : > { %v1708_v53 = vrot.slane %v1707_v6, 2 }
 0x465   : > { %v1717_v21 = vrot.slane %v1716_v51, 2 }
 0x466   : > { %v1709_v62 = vadd.f32 %v1708_v53, %v1707_v6 }
 0x467   : > { %v1718_v63 = vadd.f32 %v1717_v21, %v1716_v51  ;;  %v9085_v51 = vld [vmem:[%s10399_s3 + $0x94] ss:$12 sps:$4 sm:$0xff]   ;;  %v9091_v21 = vld [vmem:[%s10399_s3 + $0x90] ss:$12 sps:$4 sm:$0xff]  }
 0x468   : > { %v1710_v45 = vrot.slane %v1709_v62, 1 }
 0x469   : > { %v1719_v9 = vrot.slane %v1718_v63, 1 }
 0x46a   : > { %v1711_v52 = vadd.f32 %v1710_v45, %v1709_v62  ;;  %v9097_v62 = vld [vmem:[%s10399_s3 + $0xac] ss:$12 sps:$4 sm:$0xff]  }
 0x46b   : > { %v1720_v42 = vadd.f32 %v1719_v9, %v1718_v63  ;;  %v9103_v9 = vld [vmem:[%s10399_s3 + $0xa8] ss:$12 sps:$4 sm:$0xff]  }
 0x46d   : > { %1801 = vmatprep.mubr.f32.mxu0 %v1720_v42  ;;  %v9109_v42 = vld [vmem:[%s10399_s3 + $0xc4] ss:$12 sps:$4 sm:$0xff]  }
 0x46e   : > { %1802 = vmatmul.mubr.f32.vlgmr.msra.gmra.mrb[10].mxu0 %v1711_v52 }
 0x46f   : > { %2235 = vmatpush1.bf16.msra.mxu0 %v8812_v16 }
 0x470   : > { %2236 = vmatprep.subr.bf16.mxu0 %v8818_v19 }
 0x473   : > { %2237 = vmatpush1.bf16.msra.mxu0 %v8829_v34 }
 0x474   : > { %2238 = vmatprep.subr.bf16.mxu0 %v8835_v37 }
 0x475   : > { %v1676_v27 = vpop.f32.mrb[36].mxu1 }
 0x476   : > { %v1693_v36 = vmul.f32 %v1676_v27, %v8824_v0  ;;  %v1678_v48 = vpop.f32.mrb[37].mxu1  ;;  %v7722_v27 = vld [vmem:[%s8347_s23 + $0x260] ss:$8 sps:$4 sm:$0xff]  }
 0x477   : > { %v1679_v61 = vpop.f32.mrb[38].mxu1  ;;  %2239 = vmatpush1.bf16.msra.mxu0 %v8847_v23  ;;  %v7727_v48 = vld [vmem:[%s8347_s23 + $0x274] ss:$8 sps:$4 sm:$0xff]  }
 0x478   : > { %v1696_v35 = vmul.f32 %v1679_v61, %v8841_v43  ;;  %v1681_v31 = vpop.f32.mrb[39].mxu1  ;;  %2240 = vmatprep.subr.bf16.mxu0 %v8854_v46  ;;  %v1721_v38 = vsel %vm1075_vm4, %v1693_v36, 0.0  ;;  %v9117_v61 = vld [vmem:[%s10399_s3 + $0xc0] ss:$12 sps:$4 sm:$0xff]  }
 0x479   : > { %v7730_v31 = vld [vmem:[%s8347_s23 + $0x284] ss:$8 sps:$4 sm:$0xff]  }
 0x47a   : > { %v1722_v11 = vsel %vm1075_vm4, %v1696_v35, 0.0  ;;  %v7725_v35 = vld [vmem:[%s8347_s23 + $0x270] ss:$8 sps:$4 sm:$0xff]  }
 0x47b   : > { %v1723_v41 = vadd.f32 %v1722_v11, %v1721_v38  ;;  %2241 = vmatpush1.bf16.msra.mxu0 %v8867_v5  ;;  %v7728_v38 = vld [vmem:[%s8347_s23 + $0x280] ss:$8 sps:$4 sm:$0xff]   ;;  %v7733_v11 = vld [vmem:[%s8347_s23 + $0x294] ss:$8 sps:$4 sm:$0xff]  }
 0x47c   : > { %2242 = vmatprep.subr.bf16.mxu0 %v8873_v8 }
 0x47d   : > { %v1684_v56 = vpop.f32.mrb[40].mxu1 }
 0x47e   : > { %v1699_v0 = vmul.f32 %v1684_v56, %v8862_v54  ;;  %v1686_v57 = vpop.f32.mrb[41].mxu1  ;;  %v7736_v56 = vld [vmem:[%s8347_s23 + $0x2a4] ss:$8 sps:$4 sm:$0xff]  }
 0x47f   : > { %v1687_v59 = vpop.f32.mrb[42].mxu1  ;;  %2243 = vmatpush1.bf16.msra.mxu0 %v8885_v47  ;;  %v7739_v57 = vld [vmem:[%s8347_s23 + $0x2b4] ss:$8 sps:$4 sm:$0xff]  }
 0x480   : > { %v1724_v43 = vsel %vm1075_vm4, %v1699_v0, 0.0  ;;  %v1702_v60 = vmul.f32 %v1687_v59, %v8879_v32  ;;  %v1689_v58 = vpop.f32.mrb[43].mxu1  ;;  %2244 = vmatprep.subr.bf16.mxu0 %v8893_v49  ;;  %v7734_v0 = vld [vmem:[%s8347_s23 + $0x2a0] ss:$8 sps:$4 sm:$0xff]   ;;  %v7737_v59 = vld [vmem:[%s8347_s23 + $0x2b0] ss:$8 sps:$4 sm:$0xff]  }
 0x481   : > { %v1725_v28 = vadd.f32 %v1724_v43, %v1723_v41  ;;  %v7731_v41 = vld [vmem:[%s8347_s23 + $0x290] ss:$8 sps:$4 sm:$0xff]   ;;  %v7742_v43 = vld [vmem:[%s8347_s23 + $0x2c4] ss:$8 sps:$4 sm:$0xff]   ;;  %v7745_v58 = vld [vmem:[%s8347_s23 + $0x2d4] ss:$8 sps:$4 sm:$0xff]  }
 0x482   : > { %v1726_v2 = vsel %vm1075_vm4, %v1702_v60, 0.0  ;;  %v7740_v60 = vld [vmem:[%s8347_s23 + $0x2c0] ss:$8 sps:$4 sm:$0xff]  }
 0x483   : > { %v1727_v6 = vadd.f32 %v1726_v2, %v1725_v28  ;;  %2245 = vmatpush1.bf16.msra.mxu0 %v8900_v12  ;;  %v7743_v28 = vld [vmem:[%s8347_s23 + $0x2d0] ss:$8 sps:$4 sm:$0xff]   ;;  %v7748_v2 = vld [vmem:[%s8347_s23 + $0x2e4] ss:$8 sps:$4 sm:$0xff]  }
 0x484   : > { %2246 = vmatprep.subr.bf16.mxu0 %v9085_v51 }
 0x485   : > { %v1728_v53 = vrot.slane %v1727_v6, 4 }
 0x487   : > { %v1729_v32 = vadd.f32 %v1728_v53, %v1727_v6  ;;  %2247 = vmatpush1.bf16.msra.mxu0 %v9091_v21  ;;  %v7746_v6 = vld [vmem:[%s8347_s23 + $0x2e0] ss:$8 sps:$4 sm:$0xff]   ;;  %v7751_v53 = vld [vmem:[%s8347_s23 + $0x2f4] ss:$8 sps:$4 sm:$0xff]  }
 0x488   : > { %2248 = vmatprep.subr.bf16.mxu0 %v9097_v62 }
 0x489   : > { %v1730_v63 = vrot.slane %v1729_v32, 2 }
 0x48b   : > { %v1731_v45 = vadd.f32 %v1730_v63, %v1729_v32  ;;  %2249 = vmatpush1.bf16.msra.mxu0 %v9103_v9  ;;  %v7749_v32 = vld [vmem:[%s8347_s23 + $0x2f0] ss:$8 sps:$4 sm:$0xff]   ;;  %v7754_v63 = vld [vmem:[%s8347_s23 + $0x304] ss:$8 sps:$4 sm:$0xff]  }
 0x48c   : > { %2250 = vmatprep.subr.bf16.mxu0 %v9109_v42 }
 0x48d   : > { %v1732_v52 = vrot.slane %v1731_v45, 1 }
 0x48f   : > { %v1733_v36 = vadd.f32 %v1732_v52, %v1731_v45  ;;  %2251 = vmatpush1.bf16.msra.mxu0 %v9117_v61  ;;  %v7752_v45 = vld [vmem:[%s8347_s23 + $0x300] ss:$8 sps:$4 sm:$0xff]   ;;  %v7757_v52 = vld [vmem:[%s8347_s23 + $0x314] ss:$8 sps:$4 sm:$0xff]  }
 0x490   : > { %2287 = vmatprep.subr.bf16.mxu0 %v10541_v39 }
 0x491   : > { %6922 = vmatmul.mubr.msk.f32.vlgmr.msra.gmra.mrb[26].mxu1 %vm1075_vm4, %v1733_v36  ;;  %v7760_v36 = vld [vmem:[%s8347_s23 + $0x324] ss:$8 sps:$4 sm:$0xff]  }
 0x492   : > { %2111 = vmatpush1.bf16.msra.mxu1 %v7722_v27  ;;  %2142 = vmatprep.mubr.bf16.mxu1 %v8917_v1  ;;  %v7755_v27 = vld [vmem:[%s8347_s23 + $0x310] ss:$8 sps:$4 sm:$0xff]  }
 0x493   : > { %2112 = vmatprep.subr.bf16.mxu1 %v7727_v48  ;;  %v7758_v48 = vld [vmem:[%s8347_s23 + $0x320] ss:$8 sps:$4 sm:$0xff]  }
 0x496   : > { %2113 = vmatpush1.bf16.msra.mxu1 %v7725_v35  ;;  %v7763_v35 = vld [vmem:[%s8347_s23 + $0x334] ss:$8 sps:$4 sm:$0xff]  }
 0x497   : > { %2114 = vmatprep.subr.bf16.mxu1 %v7730_v31  ;;  %v7761_v31 = vld [vmem:[%s8347_s23 + $0x330] ss:$8 sps:$4 sm:$0xff]  }
 0x49a   : > { %2115 = vmatpush1.bf16.msra.mxu1 %v7728_v38  ;;  %v7766_v38 = vld [vmem:[%s8347_s23 + $0x344] ss:$8 sps:$4 sm:$0xff]  }
 0x49b   : > { %2116 = vmatprep.subr.bf16.mxu1 %v7733_v11  ;;  %v7764_v11 = vld [vmem:[%s8347_s23 + $0x340] ss:$8 sps:$4 sm:$0xff]  }
 0x49e   : > { %2117 = vmatpush1.bf16.msra.mxu1 %v7731_v41  ;;  %v7769_v41 = vld [vmem:[%s8347_s23 + $0x354] ss:$8 sps:$4 sm:$0xff]  }
 0x49f   : > { %2118 = vmatprep.subr.bf16.mxu1 %v7736_v56  ;;  %v7767_v56 = vld [vmem:[%s8347_s23 + $0x350] ss:$8 sps:$4 sm:$0xff]  }
 0x4a2   : > { %2119 = vmatpush1.bf16.msra.mxu1 %v7734_v0  ;;  %v7772_v0 = vld [vmem:[%s8347_s23 + $0x364] ss:$8 sps:$4 sm:$0xff]  }
 0x4a3   : > { %2120 = vmatprep.subr.bf16.mxu1 %v7739_v57  ;;  %v7770_v57 = vld [vmem:[%s8347_s23 + $0x360] ss:$8 sps:$4 sm:$0xff]  }
 0x4a6   : > { %2121 = vmatpush1.bf16.msra.mxu1 %v7737_v59  ;;  %v7775_v59 = vld [vmem:[%s8347_s23 + $0x374] ss:$8 sps:$4 sm:$0xff]  }
 0x4a7   : > { %2122 = vmatprep.subr.bf16.mxu1 %v7742_v43  ;;  %v7773_v43 = vld [vmem:[%s8347_s23 + $0x370] ss:$8 sps:$4 sm:$0xff]  }
 0x4aa   : > { %2123 = vmatpush1.bf16.msra.mxu1 %v7740_v60  ;;  %v7776_v60 = vld [vmem:[%s8347_s23 + $0x384] ss:$8 sps:$4 sm:$0x3f]  }
 0x4ab   : > { %2124 = vmatprep.subr.bf16.mxu1 %v7745_v58  ;;  %v7778_v58 = vld [vmem:[%s8347_s23 + $0x380] ss:$8 sps:$4 sm:$0x3f]  }
 0x4ae   : > { %2125 = vmatpush1.bf16.msra.mxu1 %v7743_v28  ;;  %v2105_v28 = vsel %vm667_vm0, %v7778_v58, 0 }
 0x4af   : > { %2126 = vmatprep.subr.bf16.mxu1 %v7748_v2  ;;  %v10553_v2 = vld [vmem:[#allocation5_spill] sm:$0xff] }
 0x4b2   : > { %2127 = vmatpush1.bf16.msra.mxu1 %v7746_v6  ;;  %v10554_v6 = vld [vmem:[#allocation6_spill] sm:$0xff] }
 0x4b3   : > { %2128 = vmatprep.subr.bf16.mxu1 %v7751_v53  ;;  %v10555_v53 = vld [vmem:[#allocation7_spill] sm:$0xff] }
 0x4b6   : > { %2129 = vmatpush1.bf16.msra.mxu1 %v7749_v32  ;;  %v10556_v32 = vld [vmem:[#allocation8_spill] sm:$0xff] }
 0x4b7   : > { %2130 = vmatprep.subr.bf16.mxu1 %v7754_v63  ;;  %v10557_v63 = vld [vmem:[#allocation9_spill] sm:$0xff] }
 0x4ba   : > { %2131 = vmatpush1.bf16.msra.mxu1 %v7752_v45  ;;  %v10558_v45 = vld [vmem:[#allocation10_spill] sm:$0xff] }
 0x4bb   : > { %2132 = vmatprep.subr.bf16.mxu1 %v7757_v52  ;;  %v10559_v52 = vld [vmem:[#allocation11_spill] sm:$0xff] }
 0x4be   : > { %2133 = vmatpush1.bf16.msra.mxu1 %v7755_v27  ;;  %v10560_v27 = vld [vmem:[#allocation12_spill] sm:$0xff] }
 0x4bf   : > { %2134 = vmatprep.subr.bf16.mxu1 %v7760_v36  ;;  %v10561_v36 = vld [vmem:[#allocation13_spill] sm:$0xff] }
 0x4c2   : > { %2135 = vmatpush1.bf16.msra.mxu1 %v7758_v48  ;;  %v10562_v48 = vld [vmem:[#allocation14_spill] sm:$0xff] }
 0x4c3   : > { %2136 = vmatprep.subr.bf16.mxu1 %v7763_v35  ;;  %v10563_v35 = vld [vmem:[#allocation15_spill] sm:$0xff] }
 0x4c6   : > { %2137 = vmatpush1.bf16.msra.mxu1 %v7761_v31 }
 0x4c7   : > { %2138 = vmatprep.subr.bf16.mxu1 %v7766_v38 }
 0x4ca   : > { %2139 = vmatpush1.bf16.msra.mxu1 %v7764_v11 }
 0x4cb   : > { %2140 = vmatprep.subr.bf16.mxu1 %v7769_v41  ;;  %v10564_v41 = vld [vmem:[#allocation26_spill] sm:$0xff] }
 0x4ce   : > { %2141 = vmatpush1.bf16.msra.mxu1 %v7767_v56 }
 0x4cf   : > { %2163 = vmatprep.subr.bf16.mxu1 %v7772_v0 }
 0x4d1   : > { %2143 = vmatmul.mubr.bf16.vlgmr.msra.gmra.mrb[44].mxu1 %v8954_v30 }
 0x4d2   : > { %2164 = vmatpush1.bf16.msra.mxu1 %v7770_v57  ;;  %2152 = vmatprep.mubr.bf16.mxu1 %v8961_v26 }
 0x4d3   : > { %2165 = vmatprep.subr.bf16.mxu1 %v7775_v59 }
 0x4d6   : > { %2166 = vmatpush1.bf16.msra.mxu1 %v7773_v43 }
 0x4d7   : > { %6102 = vmatprep.subr.msk.bf16.mxu1 %vm667_vm0, %v7776_v60  ;;  %v10565_v60 = vld [vmem:[#allocation27_spill] sm:$0xff] }
 0x4d9   : > { %2153 = vmatmul.mubr.bf16.gmra.mrb[48].mxu1 %v8971_v3 }
 0x4da   : > { %2168 = vmatpush1.bf16.msra.mxu1 %v2105_v28  ;;  %2195 = vmatprep.mubr.bf16.mxu1 %v10541_v39 }
 0x4db   : > { %7127 = vmatprep.subr.bf16.mxu1 %v8572_v7 }
 0x4e1   : > { %6103 = vmatmul.mubr.msk.bf16.vlgmr.msra.gmra.mrb[44].mxu1 %vm660_vm1, %v8979_v4 }
 0x4e2   : > { %2205 = vmatprep.mubr.bf16.mxu1 %v10541_v39  ;;  %7129 = vmatpush3.bf16.msra.mxu1 %v8581_v10 }
 0x4e3   : > { %7131 = vmatprep.subr.bf16.mxu1 %v8592_v14 }
 0x4e6   : > { %7133 = vmatpush3.bf16.msra.mxu1 %v8600_v18 }
 0x4e7   : > { %7135 = vmatprep.subr.bf16.mxu1 %v8610_v22 }
 0x4e9   : > { %6104 = vmatmul.mubr.msk.bf16.gmra.mrb[48].mxu1 %vm660_vm1, %v8991_v44 }
 0x4ea   : > { %7137 = vmatpush3.bf16.msra.mxu1 %v8618_v25 }
 0x4eb   : > { %7139 = vmatprep.subr.bf16.mxu1 %v10553_v2 }
 0x4ee   : > { %7141 = vmatpush3.bf16.msra.mxu1 %v10554_v6 }
 0x4ef   : > { %7143 = vmatprep.subr.bf16.mxu1 %v10555_v53 }
 0x4f2   : > { %7145 = vmatpush3.bf16.msra.mxu1 %v10556_v32 }
 0x4f3   : > { %7147 = vmatprep.subr.bf16.mxu1 %v10557_v63 }
 0x4f6   : > { %7149 = vmatpush3.bf16.msra.mxu1 %v10558_v45 }
 0x4f7   : > { %7151 = vmatprep.subr.bf16.mxu1 %v10559_v52 }
 0x4fa   : > { %7153 = vmatpush3.bf16.msra.mxu1 %v10560_v27 }
 0x4fb   : > { %7155 = vmatprep.subr.bf16.mxu1 %v10561_v36 }
 0x4fe   : > { %7157 = vmatpush3.bf16.msra.mxu1 %v10562_v48 }
 0x4ff   : > { %2879 = vmatprep.subr.bf16.mxu1 %v10563_v35 }
 0x541   : > { %v6610_v31 = vpop.f32.mrb[10].mxu0 }
 0x542   : > { %v6611_v38 = vpop.f32.mrb[11].mxu0 }
 0x543   : > { %v6612_v11 = vadd.f32 %v6611_v38, %v6610_v31 }
 0x545   : > { %v1804_v56 = vadd.f32 %v6612_v11, %v10564_v41 }
 0x564   : > { %v1873_v0 = vpop.f32.mrb[26].mxu1 }
 0x565   : > { %v1874_v57 = vadd.f32 %v1873_v0, %v1804_v56  ;;  %v6923_v59 = vpop.f32.mrb[27].mxu1 }
 0x567   : > { %v5748_v43 = vrot.slane %v1874_v57, 7 }
 0x569   : > { %v9188_v58 = vsel %vm5768_vm5, %v10565_v60, %v5748_v43 }
 0x56a   : > { %10566 = vst [vmem:[#allocation20_spill] sm:$0xff] %v9188_v58 }
 0x5b4   : > { %v2197_v28 = vpop.f32.mrb[44].mxu1 }
 0x5b5   : > { %v7414_v36 = vadd.f32 %v2197_v28, %v8486_v13  ;;  %v2199_v27 = vpop.f32.mrb[45].mxu1 }
 0x5b6   : > { %v7415_v48 = vadd.f32 %v2199_v27, %v8486_v13  ;;  %v2201_v35 = vpop.f32.mrb[46].mxu1 }
 0x5b7   : > { %v7416_v52 = vadd.f32 %v2201_v35, %v8488_v15  ;;  %v2203_v31 = vpop.f32.mrb[47].mxu1  ;;  %v2216_v11 = vmax.f32 %v7414_v36, 0.0 }
 0x5b8   : > { %v7417_v38 = vadd.f32 %v2203_v31, %v8488_v15  ;;  %v2217_v0 = vmax.f32 %v7415_v48, 0.0 }
 0x5b9   : > { %v2218_v56 = vmax.f32 %v7416_v52, 0.0  ;;  %v9202_v52 = vld [vmem:[%s10399_s3 + $0x8] ss:$12 sps:$4 sm:$0xff]  }
 0x5ba   : > { %v2219_v59 = vmax.f32 %v7417_v38, 0.0 }
 0x5bb   : > { %v2224_v57 = vpack.c.bf16 %v2218_v56, %v2216_v11 }
 0x5bc   : > { %v2225_v41 = vpack.c.bf16 %v2219_v59, %v2217_v0  ;;  %v2207_v43 = vpop.f32.mrb[48].mxu1  ;;  %v9217_v0 = vld [vmem:[%s10399_s3 + $0x38] ss:$12 sps:$4 sm:$0xff]   ;;  %v9225_v59 = vld [vmem:[%s10399_s3 + $0x50] ss:$12 sps:$4 sm:$0xff]  }
 0x5bd   : > { %v7418_v60 = vadd.f32 %v2207_v43, %v8492_v20  ;;  %v2209_v58 = vpop.f32.mrb[49].mxu1  ;;  %v9232_v43 = vld [vmem:[%s10399_s3 + $0x68] ss:$12 sps:$4 sm:$0xff]  }
 0x5be   : > { %v7419_v28 = vadd.f32 %v2209_v58, %v8492_v20  ;;  %v2211_v45 = vpop.f32.mrb[50].mxu1  ;;  %6105 = vmatprep.mubr.msk.bf16.mxu0 %vm936_vm2, %v2225_v41  ;;  %10567 = vst [vmem:[#allocation21_spill] sm:$0xff] %v9232_v43 }
 0x5bf   : > { %v7420_v27 = vadd.f32 %v2211_v45, %v8496_v33  ;;  %v2213_v35 = vpop.f32.mrb[51].mxu1  ;;  %2267 = vmatmul.mubr.bf16.vlgmr.msra.gmra.mrb[20].mxu0 %v2224_v57  ;;  %v2220_v48 = vmax.f32 %v7418_v60, 0.0  ;;  %v9209_v45 = vld [vmem:[%s10399_s3 + $0x20] ss:$12 sps:$4 sm:$0xff]   ;;  %v9246_v60 = vld [vmem:[%s10399_s3 + $0x98] ss:$12 sps:$4 sm:$0xff]  }
 0x5c0   : > { %v7421_v36 = vadd.f32 %v2213_v35, %v8496_v33  ;;  %2288 = vmatpush1.bf16.msra.mxu0 %v9202_v52  ;;  %v2221_v58 = vmax.f32 %v7419_v28, 0.0  ;;  %10569 = vst [vmem:[#allocation23_spill] sm:$0xff] %v9246_v60  ;;  %v9253_v28 = vld [vmem:[%s10399_s3 + $0xb0] ss:$12 sps:$4 sm:$0xff]  }
 0x5c1   : > { %v2222_v31 = vmax.f32 %v7420_v27, 0.0  ;;  %2289 = vmatprep.subr.bf16.mxu0 %v10541_v39  ;;  %10570 = vst [vmem:[#allocation24_spill] sm:$0xff] %v9253_v28  ;;  %v9260_v27 = vld [vmem:[%s10399_s3 + $0xc8] ss:$12 sps:$4 sm:$0xff]  }
 0x5c2   : > { %v2223_v38 = vmax.f32 %v7421_v36, 0.0  ;;  %10571 = vst [vmem:[#allocation25_spill] sm:$0xff] %v9260_v27 }
 0x5c3   : > { %v2226_v11 = vpack.c.bf16 %v2222_v31, %v2220_v48  ;;  %v9278_v31 = vld [vmem:[%s10400_s4] sm:$0xff] }
 0x5c4   : > { %v2227_v56 = vpack.c.bf16 %v2223_v38, %v2221_v58  ;;  %2290 = vmatpush1.bf16.msra.mxu0 %v9209_v45  ;;  %10572 = vst [vmem:[#allocation5_spill] sm:$0xff] %v9278_v31  ;;  %v9284_v38 = vld [vmem:[%s10400_s4 + $0x18] sm:$0xff] }
 0x5c5   : > { %2291 = vmatprep.subr.bf16.mxu0 %v10541_v39  ;;  %10573 = vst [vmem:[#allocation6_spill] sm:$0xff] %v9284_v38 }
 0x5c6   : > { %6106 = vmatprep.mubr.msk.bf16.mxu0 %vm936_vm2, %v2227_v56 }
 0x5c7   : > { %2277 = vmatmul.mubr.bf16.gmra.mrb[24].mxu0 %v2226_v11 }
 0x5c8   : > { %2292 = vmatpush1.bf16.msra.mxu0 %v9217_v0  ;;  %6107 = vmatprep.mubr.msk.bf16.mxu0 %vm936_vm2, %v2225_v41  ;;  %v9239_v41 = vld [vmem:[%s10399_s3 + $0x80] ss:$12 sps:$4 sm:$0xff]  }
 0x5c9   : > { %2293 = vmatprep.subr.bf16.mxu0 %v10541_v39  ;;  %10568 = vst [vmem:[#allocation22_spill] sm:$0xff] %v9239_v41 }
 0x5cc   : > { %2294 = vmatpush1.bf16.msra.mxu0 %v9225_v59 }
 0x5cd   : > { %2295 = vmatprep.subr.bf16.mxu0 %v10541_v39 }
 0x5d0   : > { %2296 = vmatpush1.bf16.msra.mxu0 %v9232_v43 }
 0x5d1   : > { %2297 = vmatprep.subr.bf16.mxu0 %v10541_v39 }
 0x5d4   : > { %2298 = vmatpush1.bf16.msra.mxu0 %v9239_v41 }
 0x5d5   : > { %2299 = vmatprep.subr.bf16.mxu0 %v10541_v39 }
 0x5d8   : > { %2300 = vmatpush1.bf16.msra.mxu0 %v9246_v60 }
 0x5d9   : > { %2301 = vmatprep.subr.bf16.mxu0 %v10541_v39 }
 0x5dc   : > { %2302 = vmatpush1.bf16.msra.mxu0 %v9253_v28 }
 0x5dd   : > { %2303 = vmatprep.subr.bf16.mxu0 %v10541_v39 }
 0x5e0   : > { %2304 = vmatpush1.bf16.msra.mxu0 %v9260_v27 }
 0x5e1   : > { %7158 = vmatprep.subr.bf16.mxu0 %v10544_v40 }
 0x5e3   : > { %2320 = vmatmul.mubr.bf16.vlgmr.msra.gmra.mrb[28].mxu0 %v2224_v57  ;;  %v7781_v57 = vld [vmem:[%s8347_s23 + $0x394] ss:$8 sps:$4 sm:$0xff]  }
 0x5e4   : > { %6108 = vmatprep.mubr.msk.bf16.mxu0 %vm936_vm2, %v2227_v56  ;;  %7160 = vmatpush3.bf16.msra.mxu0 %v8724_v17 }
 0x5e5   : > { %7161 = vmatprep.subr.bf16.mxu0 %v10544_v40 }
 0x5e8   : > { %7163 = vmatpush3.bf16.msra.mxu0 %v8735_v24 }
 0x5e9   : > { %7164 = vmatprep.subr.bf16.mxu0 %v10544_v40 }
 0x5eb   : > { %2328 = vmatmul.mubr.bf16.gmra.mrb[32].mxu0 %v2226_v11 }
 0x5ec   : > { %7166 = vmatpush3.bf16.msra.mxu0 %v8745_v29  ;;  %6940 = vmatprep.mubr.msk.f32.mxu0 %vm8240_vm3, %v10545_v50  ;;  %v9296_v50 = vld [vmem:[%s10400_s4 + $0x20] sm:$0xff] }
 0x5ed   : > { %7167 = vmatprep.subr.bf16.mxu0 %v10544_v40  ;;  %10575 = vst [vmem:[#allocation8_spill] sm:$0xff] %v9296_v50 }
 0x5f0   : > { %7169 = vmatpush3.bf16.msra.mxu0 %v10546_v55 }
 0x5f1   : > { %2755 = vmatprep.subr.bf16.mxu0 %v7781_v57  ;;  %v9290_v57 = vld [vmem:[%s10400_s4 + $0x8] sm:$0xff] }
 0x5f2   : > { %10574 = vst [vmem:[#allocation7_spill] sm:$0xff] %v9290_v57 }
 0x692   : > { %v2268_v35 = vpop.f32.mrb[20].mxu0 }
 0x693   : > { %v2270_v36 = vpop.f32.mrb[21].mxu0  ;;  %v2336_v58 = vmul.f32 %v9278_v31, %v2268_v35 }
 0x694   : > { %v2272_v48 = vpop.f32.mrb[22].mxu0  ;;  %v2337_v55 = vmul.f32 %v9290_v57, %v2270_v36  ;;  %v9308_v36 = vld [vmem:[%s10400_s4 + $0x38] sm:$0xff] }
 0x695   : > { %v2339_v11 = vmul.f32 %v9284_v38, %v2272_v48  ;;  %v2274_v56 = vpop.f32.mrb[23].mxu0  ;;  %v9302_v48 = vld [vmem:[%s10400_s4 + $0x30] sm:$0xff]  ;;  %10577 = vst [vmem:[#allocation15_spill] sm:$0xff] %v9308_v36 }
 0x696   : > { %v2340_v35 = vmul.f32 %v9296_v50, %v2274_v56  ;;  %10576 = vst [vmem:[#allocation9_spill] sm:$0xff] %v9302_v48 }
 0x697   : > { %v2348_v31 = vadd.f32 %v2339_v11, %v2336_v58 }
 0x698   : > { %v2357_v29 = vadd.f32 %v2340_v35, %v2337_v55  ;;  %v9314_v55 = vld [vmem:[%s10400_s4 + $0x48] sm:$0xff] }
 0x699   : > { %10578 = vst [vmem:[#allocation27_spill] sm:$0xff] %v9314_v55 }
 0x69a   : > { %v2278_v24 = vpop.f32.mrb[24].mxu0 }
 0x69b   : > { %v2342_v38 = vmul.f32 %v9302_v48, %v2278_v24  ;;  %v2280_v17 = vpop.f32.mrb[25].mxu0  ;;  %v9320_v24 = vld [vmem:[%s10400_s4 + $0x50] sm:$0xff] }
 0x69c   : > { %v2343_v57 = vmul.f32 %v9308_v36, %v2280_v17  ;;  %v2282_v40 = vpop.f32.mrb[26].mxu0 }
 0x69d   : > { %v2349_v56 = vadd.f32 %v2348_v31, %v2342_v38  ;;  %v2345_v58 = vmul.f32 %v9314_v55, %v2282_v40  ;;  %v2284_v11 = vpop.f32.mrb[27].mxu0 }
 0x69e   : > { %v2358_v35 = vadd.f32 %v2357_v29, %v2343_v57  ;;  %v2346_v48 = vmul.f32 %v9320_v24, %v2284_v11 }
 0x69f   : > { %v2350_v50 = vadd.f32 %v2349_v56, %v2345_v58 }
 0x6a0   : > { %v2359_v17 = vadd.f32 %v2358_v35, %v2346_v48 }
 0x6a1   : > { %v2351_v36 = vrot.slane %v2350_v50, 4 }
 0x6a2   : > { %v2360_v31 = vrot.slane %v2359_v17, 4 }
 0x6a3   : > { %v2352_v38 = vadd.f32 %v2351_v36, %v2350_v50 }
 0x6a4   : > { %v2361_v27 = vadd.f32 %v2360_v31, %v2359_v17 }
 0x6a5   : > { %v2353_v28 = vrot.slane %v2352_v38, 2 }
 0x6a6   : > { %v2362_v60 = vrot.slane %v2361_v27, 2 }
 0x6a7   : > { %v2354_v41 = vadd.f32 %v2353_v28, %v2352_v38  ;;  %v9330_v28 = vld [vmem:[%s10400_s4 + $0x10] sm:$0xff] }
 0x6a8   : > { %v2363_v43 = vadd.f32 %v2362_v60, %v2361_v27 }
 0x6a9   : > { %v2355_v40 = vrot.slane %v2354_v41, 1 }
 0x6aa   : > { %v2364_v55 = vrot.slane %v2363_v43, 1 }
 0x6ab   : > { %v2356_v57 = vadd.f32 %v2355_v40, %v2354_v41 }
 0x6ac   : > { %v2365_v29 = vadd.f32 %v2364_v55, %v2363_v43 }
 0x6ae   : > { %2446 = vmatprep.mubr.f32.mxu1 %v2365_v29  ;;  %v7784_v29 = vld [vmem:[%s8347_s23 + $0x3a4] ss:$8 sps:$4 sm:$0xff]  }
 0x6af   : > { %2447 = vmatmul.mubr.f32.vlgmr.msra.gmra.mrb[52].mxu1 %v2356_v57  ;;  %v7782_v57 = vld [vmem:[%s8347_s23 + $0x3a0] ss:$8 sps:$4 sm:$0xff]  }
 0x6b0   : > { %2880 = vmatpush1.bf16.msra.mxu1 %v8812_v16  ;;  %v9337_v16 = vld [vmem:[%s10400_s4 + $0x28] sm:$0xff] }
 0x6b1   : > { %2881 = vmatprep.subr.bf16.mxu1 %v8818_v19 }
 0x6b4   : > { %2882 = vmatpush1.bf16.msra.mxu1 %v8829_v34 }
 0x6b5   : > { %2883 = vmatprep.subr.bf16.mxu1 %v8835_v37 }
 0x6b6   : > { %v2321_v50 = vpop.f32.mrb[28].mxu0 }
 0x6b7   : > { %v2338_v60 = vmul.f32 %v9330_v28, %v2321_v50  ;;  %v2323_v43 = vpop.f32.mrb[29].mxu0  ;;  %v7787_v50 = vld [vmem:[%s8347_s23 + $0x3b4] ss:$8 sps:$4 sm:$0xff]  }
 0x6b8   : > { %v2324_v41 = vpop.f32.mrb[30].mxu0  ;;  %2884 = vmatpush1.bf16.msra.mxu1 %v8847_v23  ;;  %v7790_v43 = vld [vmem:[%s8347_s23 + $0x3c4] ss:$8 sps:$4 sm:$0xff]  }
 0x6b9   : > { %v2341_v19 = vmul.f32 %v9337_v16, %v2324_v41  ;;  %v2326_v34 = vpop.f32.mrb[31].mxu0  ;;  %2885 = vmatprep.subr.bf16.mxu1 %v8854_v46  ;;  %v2366_v37 = vsel %vm1075_vm4, %v2338_v60, 0.0  ;;  %v9351_v46 = vld [vmem:[%s10400_s4 + $0x58] sm:$0xff]  ;;  %v7788_v41 = vld [vmem:[%s8347_s23 + $0x3c0] ss:$8 sps:$4 sm:$0xff]  }
 0x6ba   : > { %v7785_v60 = vld [vmem:[%s8347_s23 + $0x3b0] ss:$8 sps:$4 sm:$0xff]  }
 0x6bb   : > { %v2367_v27 = vsel %vm1075_vm4, %v2341_v19, 0.0  ;;  %v7793_v19 = vld [vmem:[%s8347_s23 + $0x3d4] ss:$8 sps:$4 sm:$0xff]   ;;  %v7791_v34 = vld [vmem:[%s8347_s23 + $0x3d0] ss:$8 sps:$4 sm:$0xff]  }
 0x6bc   : > { %v2368_v48 = vadd.f32 %v2367_v27, %v2366_v37  ;;  %2886 = vmatpush1.bf16.msra.mxu1 %v8867_v5  ;;  %v7794_v37 = vld [vmem:[%s8347_s23 + $0x3e0] ss:$8 sps:$4 sm:$0xff]   ;;  %v7799_v27 = vld [vmem:[%s8347_s23 + $0x3f4] ss:$8 sps:$4 sm:$0xff]  }
 0x6bd   : > { %2887 = vmatprep.subr.bf16.mxu1 %v8873_v8 }
 0x6be   : > { %v2329_v23 = vpop.f32.mrb[32].mxu0 }
 0x6bf   : > { %v2344_v36 = vmul.f32 %v2329_v23, %v8862_v54  ;;  %v2331_v56 = vpop.f32.mrb[33].mxu0  ;;  %v7802_v23 = vld [vmem:[%s8347_s23 + $0x404] ss:$8 sps:$4 sm:$0xff]  }
 0x6c0   : > { %v2332_v55 = vpop.f32.mrb[34].mxu0  ;;  %2888 = vmatpush1.bf16.msra.mxu1 %v8885_v47  ;;  %v7805_v56 = vld [vmem:[%s8347_s23 + $0x414] ss:$8 sps:$4 sm:$0xff]  }
 0x6c1   : > { %v2369_v58 = vsel %vm1075_vm4, %v2344_v36, 0.0  ;;  %v2347_v11 = vmul.f32 %v9351_v46, %v2332_v55  ;;  %v2334_v35 = vpop.f32.mrb[35].mxu0  ;;  %2889 = vmatprep.subr.bf16.mxu1 %v8893_v49  ;;  %v7800_v36 = vld [vmem:[%s8347_s23 + $0x400] ss:$8 sps:$4 sm:$0xff]   ;;  %v7803_v55 = vld [vmem:[%s8347_s23 + $0x410] ss:$8 sps:$4 sm:$0xff]  }
 0x6c2   : > { %v2370_v5 = vadd.f32 %v2369_v58, %v2368_v48  ;;  %v7797_v48 = vld [vmem:[%s8347_s23 + $0x3f0] ss:$8 sps:$4 sm:$0xff]   ;;  %v7808_v58 = vld [vmem:[%s8347_s23 + $0x424] ss:$8 sps:$4 sm:$0xff]   ;;  %v7811_v35 = vld [vmem:[%s8347_s23 + $0x434] ss:$8 sps:$4 sm:$0xff]  }
 0x6c3   : > { %v2371_v54 = vsel %vm1075_vm4, %v2347_v11, 0.0  ;;  %v7806_v11 = vld [vmem:[%s8347_s23 + $0x420] ss:$8 sps:$4 sm:$0xff]  }
 0x6c4   : > { %v2372_v8 = vadd.f32 %v2371_v54, %v2370_v5  ;;  %2890 = vmatpush1.bf16.msra.mxu1 %v8900_v12  ;;  %v7779_v12 = vld [vmem:[%s8347_s23 + $0x390] ss:$8 sps:$4 sm:$0xff]   ;;  %v7814_v54 = vld [vmem:[%s8347_s23 + $0x444] ss:$8 sps:$4 sm:$0xff]  }
 0x6c5   : > { %2891 = vmatprep.subr.bf16.mxu1 %v9085_v51  ;;  %v7809_v5 = vld [vmem:[%s8347_s23 + $0x430] ss:$8 sps:$4 sm:$0xff]  }
 0x6c6   : > { %v2373_v47 = vrot.slane %v2372_v8, 4 }
 0x6c8   : > { %v2374_v17 = vadd.f32 %v2373_v47, %v2372_v8  ;;  %2892 = vmatpush1.bf16.msra.mxu1 %v9091_v21  ;;  %v7812_v8 = vld [vmem:[%s8347_s23 + $0x440] ss:$8 sps:$4 sm:$0xff]   ;;  %v7817_v47 = vld [vmem:[%s8347_s23 + $0x454] ss:$8 sps:$4 sm:$0xff]  }
 0x6c9   : > { %2893 = vmatprep.subr.bf16.mxu1 %v9097_v62 }
 0x6ca   : > { %v2375_v31 = vrot.slane %v2374_v17, 2 }
 0x6cc   : > { %v2376_v38 = vadd.f32 %v2375_v31, %v2374_v17  ;;  %2894 = vmatpush1.bf16.msra.mxu1 %v9103_v9  ;;  %v7815_v17 = vld [vmem:[%s8347_s23 + $0x450] ss:$8 sps:$4 sm:$0xff]   ;;  %v7820_v31 = vld [vmem:[%s8347_s23 + $0x464] ss:$8 sps:$4 sm:$0xff]  }
 0x6cd   : > { %2895 = vmatprep.subr.bf16.mxu1 %v9109_v42 }
 0x6ce   : > { %v2377_v49 = vrot.slane %v2376_v38, 1 }
 0x6d0   : > { %v2378_v40 = vadd.f32 %v2377_v49, %v2376_v38  ;;  %2896 = vmatpush1.bf16.msra.mxu1 %v9117_v61  ;;  %v7818_v38 = vld [vmem:[%s8347_s23 + $0x460] ss:$8 sps:$4 sm:$0xff]   ;;  %v7823_v49 = vld [vmem:[%s8347_s23 + $0x474] ss:$8 sps:$4 sm:$0xff]  }
 0x6d1   : > { %2932 = vmatprep.subr.bf16.mxu1 %v10541_v39 }
 0x6d2   : > { %6941 = vmatmul.mubr.msk.f32.vlgmr.msra.gmra.mrb[36].mxu0 %vm1075_vm4, %v2378_v40  ;;  %v7826_v40 = vld [vmem:[%s8347_s23 + $0x484] ss:$8 sps:$4 sm:$0xff]  }
 0x6d3   : > { %2756 = vmatpush1.bf16.msra.mxu0 %v7779_v12  ;;  %2787 = vmatprep.mubr.bf16.mxu0 %v8917_v1  ;;  %v7796_v1 = vld [vmem:[%s8347_s23 + $0x3e4] ss:$8 sps:$4 sm:$0xff]   ;;  %v7821_v12 = vld [vmem:[%s8347_s23 + $0x470] ss:$8 sps:$4 sm:$0xff]  }
 0x6d4   : > { %2757 = vmatprep.subr.bf16.mxu0 %v7784_v29  ;;  %v7824_v29 = vld [vmem:[%s8347_s23 + $0x480] ss:$8 sps:$4 sm:$0xff]  }
 0x6d7   : > { %2758 = vmatpush1.bf16.msra.mxu0 %v7782_v57  ;;  %v7829_v57 = vld [vmem:[%s8347_s23 + $0x494] ss:$8 sps:$4 sm:$0xff]  }
 0x6d8   : > { %2759 = vmatprep.subr.bf16.mxu0 %v7787_v50  ;;  %v7827_v50 = vld [vmem:[%s8347_s23 + $0x490] ss:$8 sps:$4 sm:$0xff]  }
 0x6db   : > { %2760 = vmatpush1.bf16.msra.mxu0 %v7785_v60  ;;  %v7832_v60 = vld [vmem:[%s8347_s23 + $0x4a4] ss:$8 sps:$4 sm:$0xff]  }
 0x6dc   : > { %2761 = vmatprep.subr.bf16.mxu0 %v7790_v43  ;;  %v7830_v43 = vld [vmem:[%s8347_s23 + $0x4a0] ss:$8 sps:$4 sm:$0xff]  }
 0x6df   : > { %2762 = vmatpush1.bf16.msra.mxu0 %v7788_v41  ;;  %v7833_v41 = vld [vmem:[%s8347_s23 + $0x4b4] ss:$8 sps:$4 sm:$0x3f]  }
 0x6e0   : > { %2763 = vmatprep.subr.bf16.mxu0 %v7793_v19  ;;  %v7835_v19 = vld [vmem:[%s8347_s23 + $0x4b0] ss:$8 sps:$4 sm:$0x3f]  }
 0x6e3   : > { %2764 = vmatpush1.bf16.msra.mxu0 %v7791_v34  ;;  %v2750_v34 = vsel %vm667_vm0, %v7835_v19, 0 }
 0x6e4   : > { %2765 = vmatprep.subr.bf16.mxu0 %v7796_v1  ;;  %v9433_v1 = vld [vmem:[%s10399_s3 + $0x4] ss:$12 sps:$4 sm:$0xff]  }
 0x6e5   : > { %10584 = vst [vmem:[#allocation28_spill] sm:$0xff] %v9433_v1 }
 0x6e7   : > { %2766 = vmatpush1.bf16.msra.mxu0 %v7794_v37 }
 0x6e8   : > { %2767 = vmatprep.subr.bf16.mxu0 %v7799_v27 }
 0x6eb   : > { %2768 = vmatpush1.bf16.msra.mxu0 %v7797_v48 }
 0x6ec   : > { %2769 = vmatprep.subr.bf16.mxu0 %v7802_v23  ;;  %v10585_v23 = vld [vmem:[#allocation26_spill] sm:$0xff] }
 0x6ef   : > { %2770 = vmatpush1.bf16.msra.mxu0 %v7800_v36 }
 0x6f0   : > { %2771 = vmatprep.subr.bf16.mxu0 %v7805_v56 }
 0x6f3   : > { %2772 = vmatpush1.bf16.msra.mxu0 %v7803_v55 }
 0x6f4   : > { %2773 = vmatprep.subr.bf16.mxu0 %v7808_v58 }
 0x6f7   : > { %2774 = vmatpush1.bf16.msra.mxu0 %v7806_v11 }
 0x6f8   : > { %2775 = vmatprep.subr.bf16.mxu0 %v7811_v35  ;;  %v10586_v35 = vld [vmem:[#allocation20_spill] sm:$0xff] }
 0x6fb   : > { %2776 = vmatpush1.bf16.msra.mxu0 %v7809_v5 }
 0x6fc   : > { %2777 = vmatprep.subr.bf16.mxu0 %v7814_v54 }
 0x6ff   : > { %2778 = vmatpush1.bf16.msra.mxu0 %v7812_v8 }
 0x700   : > { %2779 = vmatprep.subr.bf16.mxu0 %v7817_v47 }
 0x703   : > { %2780 = vmatpush1.bf16.msra.mxu0 %v7815_v17 }
 0x704   : > { %2781 = vmatprep.subr.bf16.mxu0 %v7820_v31 }
 0x707   : > { %2782 = vmatpush1.bf16.msra.mxu0 %v7818_v38 }
 0x708   : > { %2783 = vmatprep.subr.bf16.mxu0 %v7823_v49 }
 0x70b   : > { %2784 = vmatpush1.bf16.msra.mxu0 %v7821_v12 }
 0x70c   : > { %2785 = vmatprep.subr.bf16.mxu0 %v7826_v40 }
 0x70f   : > { %2786 = vmatpush1.bf16.msra.mxu0 %v7824_v29 }
 0x710   : > { %2808 = vmatprep.subr.bf16.mxu0 %v7829_v57 }
 0x712   : > { %2788 = vmatmul.mubr.bf16.vlgmr.msra.gmra.mrb[40].mxu0 %v8954_v30  ;;  %v10579_v30 = vld [vmem:[#allocation10_spill] sm:$0xff] }
 0x713   : > { %2809 = vmatpush1.bf16.msra.mxu0 %v7827_v50  ;;  %2797 = vmatprep.mubr.bf16.mxu0 %v8961_v26  ;;  %v10580_v26 = vld [vmem:[#allocation11_spill] sm:$0xff] }
 0x714   : > { %2810 = vmatprep.subr.bf16.mxu0 %v7832_v60 }
 0x717   : > { %2811 = vmatpush1.bf16.msra.mxu0 %v7830_v43 }
 0x718   : > { %6186 = vmatprep.subr.msk.bf16.mxu0 %vm667_vm0, %v7833_v41 }
 0x71a   : > { %2798 = vmatmul.mubr.bf16.gmra.mrb[44].mxu0 %v8971_v3  ;;  %v10581_v3 = vld [vmem:[#allocation12_spill] sm:$0xff] }
 0x71b   : > { %2813 = vmatpush1.bf16.msra.mxu0 %v2750_v34  ;;  %2840 = vmatprep.mubr.bf16.mxu0 %v10541_v39 }
 0x71c   : > { %7171 = vmatprep.subr.bf16.mxu0 %v8572_v7 }
 0x722   : > { %6187 = vmatmul.mubr.msk.bf16.vlgmr.msra.gmra.mrb[40].mxu0 %vm660_vm1, %v8979_v4  ;;  %v10582_v4 = vld [vmem:[#allocation13_spill] sm:$0xff] }
 0x723   : > { %2850 = vmatprep.mubr.bf16.mxu0 %v10541_v39  ;;  %7173 = vmatpush3.bf16.msra.mxu0 %v8581_v10 }
 0x724   : > { %7175 = vmatprep.subr.bf16.mxu0 %v8592_v14 }
 0x727   : > { %7177 = vmatpush3.bf16.msra.mxu0 %v8600_v18 }
 0x728   : > { %7179 = vmatprep.subr.bf16.mxu0 %v8610_v22 }
 0x72a   : > { %6188 = vmatmul.mubr.msk.bf16.gmra.mrb[44].mxu0 %vm660_vm1, %v8991_v44  ;;  %v10583_v44 = vld [vmem:[#allocation14_spill] sm:$0xff] }
 0x72b   : > { %7181 = vmatpush3.bf16.msra.mxu0 %v8618_v25 }
 0x72c   : > { %7183 = vmatprep.subr.bf16.mxu0 %v10553_v2 }
 0x72f   : > { %7185 = vmatpush3.bf16.msra.mxu0 %v10554_v6 }
 0x730   : > { %7187 = vmatprep.subr.bf16.mxu0 %v10555_v53 }
 0x733   : > { %7189 = vmatpush3.bf16.msra.mxu0 %v10556_v32 }
 0x734   : > { %7191 = vmatprep.subr.bf16.mxu0 %v10557_v63 }
 0x737   : > { %7193 = vmatpush3.bf16.msra.mxu0 %v10579_v30 }
 0x738   : > { %7195 = vmatprep.subr.bf16.mxu0 %v10580_v26 }
 0x73b   : > { %7197 = vmatpush3.bf16.msra.mxu0 %v10581_v3 }
 0x73c   : > { %7199 = vmatprep.subr.bf16.mxu0 %v10582_v4 }
 0x73f   : > { %7201 = vmatpush3.bf16.msra.mxu0 %v10583_v44 }
 0x740   : > { %3524 = vmatprep.subr.bf16.mxu0 %v9433_v1 }
 0x782   : > { %v6654_v37 = vpop.f32.mrb[52].mxu1 }
 0x783   : > { %v6655_v27 = vpop.f32.mrb[53].mxu1 }
 0x784   : > { %v6656_v48 = vadd.f32 %v6655_v27, %v6654_v37 }
 0x786   : > { %v2449_v36 = vadd.f32 %v6656_v48, %v10585_v23 }
 0x7a5   : > { %v2518_v56 = vpop.f32.mrb[36].mxu0 }
 0x7a6   : > { %v2519_v55 = vadd.f32 %v2518_v56, %v2449_v36  ;;  %v6942_v58 = vpop.f32.mrb[37].mxu0 }
 0x7a8   : > { %v5751_v11 = vrot.slane %v2519_v55, 6 }
 0x7aa   : > { %v9438_v5 = vsel %vm5770_vm6, %v10586_v35, %v5751_v11 }
 0x7f5   : > { %v2842_v54 = vpop.f32.mrb[40].mxu0 }
 0x7f6   : > { %v7422_v8 = vadd.f32 %v2842_v54, %v8486_v13  ;;  %v2844_v47 = vpop.f32.mrb[41].mxu0 }
 0x7f7   : > { %v7423_v17 = vadd.f32 %v2844_v47, %v8486_v13  ;;  %v2846_v31 = vpop.f32.mrb[42].mxu0  ;;  %v10588_v47 = vld [vmem:[#allocation22_spill] sm:$0xff] }
 0x7f8   : > { %v7424_v38 = vadd.f32 %v2846_v31, %v8488_v15  ;;  %v2848_v49 = vpop.f32.mrb[43].mxu0  ;;  %v2861_v40 = vmax.f32 %v7422_v8, 0.0  ;;  %v10587_v8 = vld [vmem:[#allocation21_spill] sm:$0xff]  ;;  %v10590_v31 = vld [vmem:[#allocation24_spill] sm:$0xff] }
 0x7f9   : > { %v7425_v12 = vadd.f32 %v2848_v49, %v8488_v15  ;;  %v2862_v57 = vmax.f32 %v7423_v17, 0.0  ;;  %v10589_v17 = vld [vmem:[#allocation23_spill] sm:$0xff]  ;;  %v10592_v49 = vmov 0.0|0.0  }
 0x7fa   : > { %v2863_v29 = vmax.f32 %v7424_v38, 0.0  ;;  %v10591_v38 = vld [vmem:[#allocation25_spill] sm:$0xff] }
 0x7fb   : > { %v2864_v50 = vmax.f32 %v7425_v12, 0.0  ;;  %v10593_v12 = vld [vmem:[#allocation16_spill] sm:$0xff] }
 0x7fc   : > { %v2869_v60 = vpack.c.bf16 %v2863_v29, %v2861_v40  ;;  %v10594_v40 = vld [vmem:[#allocation17_spill] sm:$0xff]  ;;  %v10595_v29 = vld [vmem:[#allocation18_spill] sm:$0xff] }
 0x7fd   : > { %v2870_v43 = vpack.c.bf16 %v2864_v50, %v2862_v57  ;;  %v2852_v41 = vpop.f32.mrb[44].mxu0  ;;  %v10596_v57 = vmov 0.0   ;;  %v10597_v50 = vld [vmem:[#allocation19_spill] sm:$0xff] }
 0x7fe   : > { %v7426_v19 = vadd.f32 %v2852_v41, %v8492_v20  ;;  %v2854_v34 = vpop.f32.mrb[45].mxu0 }
 0x7ff   : > { %v7427_v37 = vadd.f32 %v2854_v34, %v8492_v20  ;;  %v2856_v27 = vpop.f32.mrb[46].mxu0  ;;  %6189 = vmatprep.mubr.msk.bf16.mxu1 %vm936_vm2, %v2870_v43  ;;  %v10598_v34 = vld [vmem:[#allocation5_spill] sm:$0xff] }
 0x800   : > { %v7428_v48 = vadd.f32 %v2856_v27, %v8496_v33  ;;  %v2858_v23 = vpop.f32.mrb[47].mxu0  ;;  %2912 = vmatmul.mubr.bf16.vlgmr.msra.gmra.mrb[56].mxu1 %v2869_v60  ;;  %v2865_v56 = vmax.f32 %v7426_v19, 0.0  ;;  %v10599_v27 = vld [vmem:[#allocation6_spill] sm:$0xff] }
 0x801   : > { %v7429_v36 = vadd.f32 %v2858_v23, %v8496_v33  ;;  %2933 = vmatpush1.bf16.msra.mxu1 %v9202_v52  ;;  %v2866_v58 = vmax.f32 %v7427_v37, 0.0 }
 0x802   : > { %v2867_v55 = vmax.f32 %v7428_v48, 0.0  ;;  %2934 = vmatprep.subr.bf16.mxu1 %v10541_v39 }
 0x803   : > { %v2868_v11 = vmax.f32 %v7429_v36, 0.0  ;;  %v10600_v36 = vld [vmem:[#allocation7_spill] sm:$0xff] }
 0x804   : > { %v2871_v35 = vpack.c.bf16 %v2867_v55, %v2865_v56  ;;  %v10601_v55 = vld [vmem:[#allocation8_spill] sm:$0xff] }
 0x805   : > { %v2872_v54 = vpack.c.bf16 %v2868_v11, %v2866_v58  ;;  %2935 = vmatpush1.bf16.msra.mxu1 %v9209_v45 }
 0x806   : > { %2936 = vmatprep.subr.bf16.mxu1 %v10541_v39 }
 0x807   : > { %6190 = vmatprep.mubr.msk.bf16.mxu1 %vm936_vm2, %v2872_v54 }
 0x808   : > { %2922 = vmatmul.mubr.bf16.gmra.mrb[60].mxu1 %v2871_v35 }
 0x809   : > { %2937 = vmatpush1.bf16.msra.mxu1 %v9217_v0  ;;  %6191 = vmatprep.mubr.msk.bf16.mxu1 %vm936_vm2, %v2870_v43 }
 0x80a   : > { %2938 = vmatprep.subr.bf16.mxu1 %v10541_v39 }
 0x80d   : > { %2939 = vmatpush1.bf16.msra.mxu1 %v9225_v59 }
 0x80e   : > { %2940 = vmatprep.subr.bf16.mxu1 %v10541_v39 }
 0x811   : > { %2941 = vmatpush1.bf16.msra.mxu1 %v10587_v8 }
 0x812   : > { %2942 = vmatprep.subr.bf16.mxu1 %v10541_v39 }
 0x815   : > { %2943 = vmatpush1.bf16.msra.mxu1 %v10588_v47 }
 0x816   : > { %2944 = vmatprep.subr.bf16.mxu1 %v10541_v39 }
 0x819   : > { %2945 = vmatpush1.bf16.msra.mxu1 %v10589_v17 }
 0x81a   : > { %2946 = vmatprep.subr.bf16.mxu1 %v10541_v39 }
 0x81d   : > { %2947 = vmatpush1.bf16.msra.mxu1 %v10590_v31 }
 0x81e   : > { %2948 = vmatprep.subr.bf16.mxu1 %v10541_v39 }
 0x821   : > { %2949 = vmatpush1.bf16.msra.mxu1 %v10591_v38  ;;  %v10604_v38 = vld [vmem:[#allocation27_spill] sm:$0xff] }
 0x822   : > { %7202 = vmatprep.subr.bf16.mxu1 %v10592_v49 }
 0x824   : > { %2965 = vmatmul.mubr.bf16.vlgmr.msra.gmra.mrb[64].mxu1 %v2869_v60  ;;  %v7838_v60 = vld [vmem:[%s8347_s23 + $0x4c4] ss:$8 sps:$4 sm:$0xff]  }
 0x825   : > { %6192 = vmatprep.mubr.msk.bf16.mxu1 %vm936_vm2, %v2872_v54  ;;  %7204 = vmatpush3.bf16.msra.mxu1 %v10593_v12 }
 0x826   : > { %7205 = vmatprep.subr.bf16.mxu1 %v10592_v49 }
 0x829   : > { %7207 = vmatpush3.bf16.msra.mxu1 %v10594_v40  ;;  %v10603_v40 = vld [vmem:[#allocation15_spill] sm:$0xff] }
 0x82a   : > { %7208 = vmatprep.subr.bf16.mxu1 %v10592_v49 }
 0x82c   : > { %2973 = vmatmul.mubr.bf16.gmra.mrb[68].mxu1 %v2871_v35 }
 0x82d   : > { %7210 = vmatpush3.bf16.msra.mxu1 %v10595_v29  ;;  %6959 = vmatprep.mubr.msk.f32.mxu1 %vm8240_vm3, %v10596_v57  ;;  %v10602_v57 = vld [vmem:[#allocation9_spill] sm:$0xff] }
 0x82e   : > { %7211 = vmatprep.subr.bf16.mxu1 %v10592_v49 }
 0x831   : > { %7213 = vmatpush3.bf16.msra.mxu1 %v10597_v50 }
 0x832   : > { %3400 = vmatprep.subr.bf16.mxu1 %v7838_v60 }
 0x8d3   : > { %v2913_v43 = vpop.f32.mrb[56].mxu1 }
 0x8d4   : > { %v2915_v41 = vpop.f32.mrb[57].mxu1  ;;  %v2981_v37 = vmul.f32 %v10598_v34, %v2913_v43 }
 0x8d5   : > { %v2917_v19 = vpop.f32.mrb[58].mxu1  ;;  %v2982_v56 = vmul.f32 %v10600_v36, %v2915_v41 }
 0x8d6   : > { %v2984_v48 = vmul.f32 %v10599_v27, %v2917_v19  ;;  %v2919_v23 = vpop.f32.mrb[59].mxu1 }
 0x8d7   : > { %v2985_v58 = vmul.f32 %v10601_v55, %v2919_v23 }
 0x8d8   : > { %v2993_v11 = vadd.f32 %v2984_v48, %v2981_v37 }
 0x8d9   : > { %v3002_v35 = vadd.f32 %v2985_v58, %v2982_v56 }
 0x8db   : > { %v2923_v54 = vpop.f32.mrb[60].mxu1 }
 0x8dc   : > { %v2987_v29 = vmul.f32 %v10602_v57, %v2923_v54  ;;  %v2925_v50 = vpop.f32.mrb[61].mxu1 }
 0x8dd   : > { %v2988_v60 = vmul.f32 %v10603_v40, %v2925_v50  ;;  %v2927_v12 = vpop.f32.mrb[62].mxu1 }
 0x8de   : > { %v2994_v49 = vadd.f32 %v2993_v11, %v2987_v29  ;;  %v2990_v31 = vmul.f32 %v10604_v38, %v2927_v12  ;;  %v2929_v43 = vpop.f32.mrb[63].mxu1  ;;  %v9491_v12 = vld [vmem:[%s10399_s3] ss:$12 sps:$4 sm:$0xff]  }
 0x8df   : > { %v3003_v34 = vadd.f32 %v3002_v35, %v2988_v60  ;;  %v2991_v19 = vmul.f32 %v9320_v24, %v2929_v43  ;;  %v9523_v60 = vld [vmem:[%s10399_s3 + $0x4c] ss:$12 sps:$4 sm:$0xff]  }
 0x8e0   : > { %v2995_v27 = vadd.f32 %v2994_v49, %v2990_v31  ;;  %v9497_v31 = vld [vmem:[%s10399_s3 + $0x1c] ss:$12 sps:$4 sm:$0xff]   ;;  %v9503_v49 = vld [vmem:[%s10399_s3 + $0x18] ss:$12 sps:$4 sm:$0xff]  }
 0x8e1   : > { %v3004_v41 = vadd.f32 %v3003_v34, %v2991_v19 }
 0x8e2   : > { %v2996_v36 = vrot.slane %v2995_v27, 4 }
 0x8e3   : > { %v3005_v23 = vrot.slane %v3004_v41, 4 }
 0x8e4   : > { %v2997_v37 = vadd.f32 %v2996_v36, %v2995_v27 }
 0x8e5   : > { %v3006_v48 = vadd.f32 %v3005_v23, %v3004_v41  ;;  %v9531_v23 = vld [vmem:[%s10399_s3 + $0x48] ss:$12 sps:$4 sm:$0xff]  }
 0x8e6   : > { %v2998_v56 = vrot.slane %v2997_v37, 2 }
 0x8e7   : > { %v3007_v58 = vrot.slane %v3006_v48, 2 }
 0x8e8   : > { %v2999_v54 = vadd.f32 %v2998_v56, %v2997_v37  ;;  %v9537_v37 = vld [vmem:[%s10399_s3 + $0x64] ss:$12 sps:$4 sm:$0xff]  }
 0x8e9   : > { %v3008_v57 = vadd.f32 %v3007_v58, %v3006_v48  ;;  %v9543_v56 = vld [vmem:[%s10400_s4 + $0x40] sm:$0xff] }
 0x8ea   : > { %v3000_v55 = vrot.slane %v2999_v54, 1 }
 0x8eb   : > { %v3009_v50 = vrot.slane %v3008_v57, 1 }
 0x8ec   : > { %v3001_v29 = vadd.f32 %v3000_v55, %v2999_v54  ;;  %v9516_v55 = vld [vmem:[%s10399_s3 + $0x30] ss:$12 sps:$4 sm:$0xff]  }
 0x8ed   : > { %v3010_v40 = vadd.f32 %v3009_v50, %v3008_v57 }
 0x8ef   : > { %3091 = vmatprep.mubr.f32.mxu0 %v3010_v40  ;;  %v9509_v40 = vld [vmem:[%s10399_s3 + $0x34] ss:$12 sps:$4 sm:$0xff]  }
 0x8f0   : > { %3092 = vmatmul.mubr.f32.vlgmr.msra.gmra.mrb[38].mxu0 %v3001_v29  ;;  %v9549_v29 = vld [vmem:[%s10399_s3 + $0x60] ss:$12 sps:$4 sm:$0xff]  }
 0x8f1   : > { %3525 = vmatpush1.bf16.msra.mxu0 %v9491_v12 }
 0x8f2   : > { %3526 = vmatprep.subr.bf16.mxu0 %v9497_v31 }
 0x8f5   : > { %3527 = vmatpush1.bf16.msra.mxu0 %v9503_v49 }
 0x8f6   : > { %3528 = vmatprep.subr.bf16.mxu0 %v9509_v40 }
 0x8f7   : > { %v2966_v57 = vpop.f32.mrb[64].mxu1 }
 0x8f8   : > { %v2983_v34 = vmul.f32 %v9330_v28, %v2966_v57  ;;  %v2968_v27 = vpop.f32.mrb[65].mxu1 }
 0x8f9   : > { %v2969_v36 = vpop.f32.mrb[66].mxu1  ;;  %3529 = vmatpush1.bf16.msra.mxu0 %v9516_v55 }
 0x8fa   : > { %v2986_v11 = vmul.f32 %v9337_v16, %v2969_v36  ;;  %v2971_v35 = vpop.f32.mrb[67].mxu1  ;;  %3530 = vmatprep.subr.bf16.mxu0 %v9523_v60  ;;  %v3011_v43 = vsel %vm1075_vm4, %v2983_v34, 0.0  ;;  %v9557_v36 = vld [vmem:[%s10399_s3 + $0x7c] ss:$12 sps:$4 sm:$0xff]  }
 0x8fc   : > { %v3012_v19 = vsel %vm1075_vm4, %v2986_v11, 0.0 }
 0x8fd   : > { %v3013_v41 = vadd.f32 %v3012_v19, %v3011_v43  ;;  %3531 = vmatpush1.bf16.msra.mxu0 %v9531_v23  ;;  %v9564_v19 = vld [vmem:[%s10399_s3 + $0x78] ss:$12 sps:$4 sm:$0xff]  }
 0x8fe   : > { %3532 = vmatprep.subr.bf16.mxu0 %v9537_v37 }
 0x8ff   : > { %v2974_v48 = vpop.f32.mrb[68].mxu1 }
 0x900   : > { %v2989_v58 = vmul.f32 %v9543_v56, %v2974_v48  ;;  %v2976_v54 = vpop.f32.mrb[69].mxu1 }
 0x901   : > { %v2977_v50 = vpop.f32.mrb[70].mxu1  ;;  %3533 = vmatpush1.bf16.msra.mxu0 %v9549_v29 }
 0x902   : > { %v3014_v57 = vsel %vm1075_vm4, %v2989_v58, 0.0  ;;  %v2992_v34 = vmul.f32 %v9351_v46, %v2977_v50  ;;  %v2979_v27 = vpop.f32.mrb[71].mxu1  ;;  %3534 = vmatprep.subr.bf16.mxu0 %v9557_v36 }
 0x903   : > { %v3015_v11 = vadd.f32 %v3014_v57, %v3013_v41  ;;  %v7836_v57 = vld [vmem:[%s8347_s23 + $0x4c0] ss:$8 sps:$4 sm:$0xff]   ;;  %v7845_v27 = vld [vmem:[%s8347_s23 + $0x4f0] ss:$8 sps:$4 sm:$0xff]  }
 0x904   : > { %v3016_v35 = vsel %vm1075_vm4, %v2992_v34, 0.0 }
 0x905   : > { %v3017_v43 = vadd.f32 %v3016_v35, %v3015_v11  ;;  %3535 = vmatpush1.bf16.msra.mxu0 %v9564_v19  ;;  %v7850_v11 = vld [vmem:[%s8347_s23 + $0x504] ss:$8 sps:$4 sm:$0xff]   ;;  %v7848_v35 = vld [vmem:[%s8347_s23 + $0x500] ss:$8 sps:$4 sm:$0xff]  }
 0x906   : > { %3536 = vmatprep.subr.bf16.mxu0 %v9085_v51  ;;  %v7841_v51 = vld [vmem:[%s8347_s23 + $0x4d4] ss:$8 sps:$4 sm:$0xff]  }
 0x907   : > { %v3018_v48 = vrot.slane %v3017_v43, 4 }
 0x909   : > { %v3019_v58 = vadd.f32 %v3018_v48, %v3017_v43  ;;  %3537 = vmatpush1.bf16.msra.mxu0 %v9091_v21  ;;  %v7839_v21 = vld [vmem:[%s8347_s23 + $0x4d0] ss:$8 sps:$4 sm:$0xff]   ;;  %v7853_v43 = vld [vmem:[%s8347_s23 + $0x514] ss:$8 sps:$4 sm:$0xff]  }
 0x90a   : > { %3538 = vmatprep.subr.bf16.mxu0 %v9097_v62  ;;  %v9581_v62 = vld [vmem:[%s10397_s1 + $0x4] ss:$12 sps:$4 sm:$0xff]  }
 0x90b   : > { %v3020_v41 = vrot.slane %v3019_v58, 2  ;;  %v7851_v48 = vld [vmem:[%s8347_s23 + $0x510] ss:$8 sps:$4 sm:$0xff]  }
 0x90d   : > { %v3021_v54 = vadd.f32 %v3020_v41, %v3019_v58  ;;  %3539 = vmatpush1.bf16.msra.mxu0 %v9103_v9  ;;  %v7844_v9 = vld [vmem:[%s8347_s23 + $0x4e4] ss:$8 sps:$4 sm:$0xff]   ;;  %v7854_v41 = vld [vmem:[%s8347_s23 + $0x520] ss:$8 sps:$4 sm:$0xff]  }
 0x90e   : > { %3540 = vmatprep.subr.bf16.mxu0 %v9109_v42  ;;  %v7842_v42 = vld [vmem:[%s8347_s23 + $0x4e0] ss:$8 sps:$4 sm:$0xff]   ;;  %v7856_v58 = vld [vmem:[%s8347_s23 + $0x524] ss:$8 sps:$4 sm:$0xff]  }
 0x90f   : > { %v3022_v50 = vrot.slane %v3021_v54, 1 }
 0x911   : > { %v3023_v34 = vadd.f32 %v3022_v50, %v3021_v54  ;;  %3541 = vmatpush1.bf16.msra.mxu0 %v9117_v61  ;;  %v7847_v61 = vld [vmem:[%s8347_s23 + $0x4f4] ss:$8 sps:$4 sm:$0xff]   ;;  %v7857_v50 = vld [vmem:[%s8347_s23 + $0x530] ss:$8 sps:$4 sm:$0xff]  }
 0x912   : > { %3577 = vmatprep.subr.bf16.mxu0 %v10541_v39  ;;  %v7859_v54 = vld [vmem:[%s8347_s23 + $0x534] ss:$8 sps:$4 sm:$0xff]  }
 0x913   : > { %6960 = vmatmul.mubr.msk.f32.vlgmr.msra.gmra.mrb[54].mxu1 %vm1075_vm4, %v3023_v34  ;;  %v7860_v34 = vld [vmem:[%s8347_s23 + $0x540] ss:$8 sps:$4 sm:$0xff]  }
 0x914   : > { %3401 = vmatpush1.bf16.msra.mxu1 %v7836_v57  ;;  %3432 = vmatprep.mubr.bf16.mxu1 %v9581_v62  ;;  %v7862_v57 = vld [vmem:[%s8347_s23 + $0x544] ss:$8 sps:$4 sm:$0xff]  }
 0x915   : > { %3402 = vmatprep.subr.bf16.mxu1 %v7841_v51  ;;  %v7865_v51 = vld [vmem:[%s8347_s23 + $0x554] ss:$8 sps:$4 sm:$0xff]  }
 0x918   : > { %3403 = vmatpush1.bf16.msra.mxu1 %v7839_v21  ;;  %v7863_v21 = vld [vmem:[%s8347_s23 + $0x550] ss:$8 sps:$4 sm:$0xff]  }
 0x919   : > { %3404 = vmatprep.subr.bf16.mxu1 %v7844_v9  ;;  %v7868_v9 = vld [vmem:[%s8347_s23 + $0x564] ss:$8 sps:$4 sm:$0xff]  }
 0x91c   : > { %3405 = vmatpush1.bf16.msra.mxu1 %v7842_v42  ;;  %v7866_v42 = vld [vmem:[%s8347_s23 + $0x560] ss:$8 sps:$4 sm:$0xff]  }
 0x91d   : > { %3406 = vmatprep.subr.bf16.mxu1 %v7847_v61  ;;  %v7871_v61 = vld [vmem:[%s8347_s23 + $0x574] ss:$8 sps:$4 sm:$0xff]  }
 0x920   : > { %3407 = vmatpush1.bf16.msra.mxu1 %v7845_v27  ;;  %v7869_v27 = vld [vmem:[%s8347_s23 + $0x570] ss:$8 sps:$4 sm:$0xff]  }
 0x921   : > { %3408 = vmatprep.subr.bf16.mxu1 %v7850_v11  ;;  %v7874_v11 = vld [vmem:[%s8347_s23 + $0x584] ss:$8 sps:$4 sm:$0xff]  }
 0x924   : > { %3409 = vmatpush1.bf16.msra.mxu1 %v7848_v35  ;;  %v7872_v35 = vld [vmem:[%s8347_s23 + $0x580] ss:$8 sps:$4 sm:$0xff]  }
 0x925   : > { %3410 = vmatprep.subr.bf16.mxu1 %v7853_v43  ;;  %v7877_v43 = vld [vmem:[%s8347_s23 + $0x594] ss:$8 sps:$4 sm:$0xff]  }
 0x928   : > { %3411 = vmatpush1.bf16.msra.mxu1 %v7851_v48  ;;  %v7875_v48 = vld [vmem:[%s8347_s23 + $0x590] ss:$8 sps:$4 sm:$0xff]  }
 0x929   : > { %3412 = vmatprep.subr.bf16.mxu1 %v7856_v58  ;;  %v7880_v58 = vld [vmem:[%s8347_s23 + $0x5a4] ss:$8 sps:$4 sm:$0xff]  }
 0x92c   : > { %3413 = vmatpush1.bf16.msra.mxu1 %v7854_v41  ;;  %v7878_v41 = vld [vmem:[%s8347_s23 + $0x5a0] ss:$8 sps:$4 sm:$0xff]  }
 0x92d   : > { %3414 = vmatprep.subr.bf16.mxu1 %v7859_v54  ;;  %v7883_v54 = vld [vmem:[%s8347_s23 + $0x5b4] ss:$8 sps:$4 sm:$0xff]  }
 0x930   : > { %3415 = vmatpush1.bf16.msra.mxu1 %v7857_v50  ;;  %v7881_v50 = vld [vmem:[%s8347_s23 + $0x5b0] ss:$8 sps:$4 sm:$0xff]  }
 0x931   : > { %3416 = vmatprep.subr.bf16.mxu1 %v7862_v57  ;;  %v7886_v57 = vld [vmem:[%s8347_s23 + $0x5c4] ss:$8 sps:$4 sm:$0xff]  }
 0x934   : > { %3417 = vmatpush1.bf16.msra.mxu1 %v7860_v34  ;;  %v7884_v34 = vld [vmem:[%s8347_s23 + $0x5c0] ss:$8 sps:$4 sm:$0xff]  }
 0x935   : > { %3418 = vmatprep.subr.bf16.mxu1 %v7865_v51  ;;  %v7889_v51 = vld [vmem:[%s8347_s23 + $0x5d4] ss:$8 sps:$4 sm:$0xff]  }
 0x938   : > { %3419 = vmatpush1.bf16.msra.mxu1 %v7863_v21  ;;  %v9618_v21 = vld [vmem:[%s10397_s1] ss:$12 sps:$4 sm:$0xff]  }
 0x939   : > { %3420 = vmatprep.subr.bf16.mxu1 %v7868_v9  ;;  %v7887_v9 = vld [vmem:[%s8347_s23 + $0x5d0] ss:$8 sps:$4 sm:$0xff]  }
 0x93c   : > { %3421 = vmatpush1.bf16.msra.mxu1 %v7866_v42  ;;  %v9625_v42 = vld [vmem:[%s10397_s1 + $0x1c] ss:$12 sps:$4 sm:$0xff]  }
 0x93d   : > { %3422 = vmatprep.subr.bf16.mxu1 %v7871_v61  ;;  %v7890_v61 = vld [vmem:[%s8347_s23 + $0x5e4] ss:$8 sps:$4 sm:$0x3f]  }
 0x940   : > { %3423 = vmatpush1.bf16.msra.mxu1 %v7869_v27  ;;  %v7892_v27 = vld [vmem:[%s8347_s23 + $0x5e0] ss:$8 sps:$4 sm:$0x3f]  }
 0x941   : > { %3424 = vmatprep.subr.bf16.mxu1 %v7874_v11  ;;  %v3395_v11 = vsel %vm667_vm0, %v7892_v27, 0 }
 0x944   : > { %3425 = vmatpush1.bf16.msra.mxu1 %v7872_v35  ;;  %v9635_v35 = vld [vmem:[%s10397_s1 + $0x18] ss:$12 sps:$4 sm:$0xff]  }
 0x945   : > { %3426 = vmatprep.subr.bf16.mxu1 %v7877_v43  ;;  %v9643_v43 = vld [vmem:[%s10397_s1 + $0x8] ss:$12 sps:$4 sm:$0xff]  }
 0x948   : > { %3427 = vmatpush1.bf16.msra.mxu1 %v7875_v48  ;;  %v9655_v48 = vld [vmem:[%s10397_s1 + $0x20] ss:$12 sps:$4 sm:$0xff]  }
 0x949   : > { %3428 = vmatprep.subr.bf16.mxu1 %v7880_v58 }
 0x94c   : > { %3429 = vmatpush1.bf16.msra.mxu1 %v7878_v41 }
 0x94d   : > { %3430 = vmatprep.subr.bf16.mxu1 %v7883_v54 }
 0x950   : > { %3431 = vmatpush1.bf16.msra.mxu1 %v7881_v50  ;;  %v9674_v50 = vld [vmem:[%s10402_s6] sm:$0x1] }
 0x951   : > { %3453 = vmatprep.subr.bf16.mxu1 %v7886_v57  ;;  %10605 = vst [vmem:[#allocation26_spill] sm:$0xff] %v9674_v50 }
 0x953   : > { %3433 = vmatmul.mubr.bf16.vlgmr.msra.gmra.mrb[72].mxu1 %v9618_v21 }
 0x954   : > { %3454 = vmatpush1.bf16.msra.mxu1 %v7884_v34  ;;  %3442 = vmatprep.mubr.bf16.mxu1 %v9625_v42 }
 0x955   : > { %3455 = vmatprep.subr.bf16.mxu1 %v7889_v51 }
 0x958   : > { %3456 = vmatpush1.bf16.msra.mxu1 %v7887_v9 }
 0x959   : > { %6270 = vmatprep.subr.msk.bf16.mxu1 %vm667_vm0, %v7890_v61 }
 0x95b   : > { %3443 = vmatmul.mubr.bf16.gmra.mrb[76].mxu1 %v9635_v35 }
 0x95c   : > { %3458 = vmatpush1.bf16.msra.mxu1 %v3395_v11  ;;  %3485 = vmatprep.mubr.bf16.mxu1 %v10541_v39 }
 0x95d   : > { %7215 = vmatprep.subr.bf16.mxu1 %v8572_v7 }
 0x963   : > { %6271 = vmatmul.mubr.msk.bf16.vlgmr.msra.gmra.mrb[72].mxu1 %vm660_vm1, %v9643_v43 }
 0x964   : > { %3495 = vmatprep.mubr.bf16.mxu1 %v10541_v39  ;;  %7217 = vmatpush3.bf16.msra.mxu1 %v8581_v10 }
 0x965   : > { %7219 = vmatprep.subr.bf16.mxu1 %v8592_v14 }
 0x968   : > { %7221 = vmatpush3.bf16.msra.mxu1 %v8600_v18 }
 0x969   : > { %7223 = vmatprep.subr.bf16.mxu1 %v8610_v22 }
 0x96b   : > { %6272 = vmatmul.mubr.msk.bf16.gmra.mrb[76].mxu1 %vm660_vm1, %v9655_v48 }
 0x96c   : > { %7225 = vmatpush3.bf16.msra.mxu1 %v8618_v25 }
 0x96d   : > { %7227 = vmatprep.subr.bf16.mxu1 %v10553_v2 }
 0x970   : > { %7229 = vmatpush3.bf16.msra.mxu1 %v10554_v6 }
 0x971   : > { %7231 = vmatprep.subr.bf16.mxu1 %v10555_v53 }
 0x974   : > { %7233 = vmatpush3.bf16.msra.mxu1 %v10556_v32 }
 0x975   : > { %7235 = vmatprep.subr.bf16.mxu1 %v10557_v63 }
 0x978   : > { %7237 = vmatpush3.bf16.msra.mxu1 %v10579_v30 }
 0x979   : > { %7239 = vmatprep.subr.bf16.mxu1 %v10580_v26 }
 0x97c   : > { %7241 = vmatpush3.bf16.msra.mxu1 %v10581_v3 }
 0x97d   : > { %7243 = vmatprep.subr.bf16.mxu1 %v10582_v4 }
 0x980   : > { %7245 = vmatpush3.bf16.msra.mxu1 %v10583_v44 }
 0x981   : > { %4169 = vmatprep.subr.bf16.mxu1 %v9433_v1 }
 0x9c3   : > { %v6698_v58 = vpop.f32.mrb[38].mxu0 }
 0x9c4   : > { %v6699_v41 = vpop.f32.mrb[39].mxu0 }
 0x9c5   : > { %v6700_v54 = vadd.f32 %v6699_v41, %v6698_v58 }
 0x9c7   : > { %v3094_v57 = vadd.f32 %v9674_v50, %v6700_v54 }
 0x9e6   : > { %v3163_v34 = vpop.f32.mrb[54].mxu1 }
 0x9e7   : > { %v3164_v51 = vadd.f32 %v3163_v34, %v3094_v57  ;;  %v6961_v9 = vpop.f32.mrb[55].mxu1 }
 0x9e9   : > { %v5754_v61 = vrot.slane %v3164_v51, 5 }
 0x9eb   : > { %v9678_v27 = vsel %vm5772_vm7, %v9438_v5, %v5754_v61 }
 0x9ec   : > { %10606 = vst [vmem:[#allocation20_spill] sm:$0xff] %v9678_v27 }
 0xa36   : > { %v3487_v11 = vpop.f32.mrb[72].mxu1 }
 0xa37   : > { %v7430_v1 = vadd.f32 %v3487_v11, %v8486_v13  ;;  %v3489_v44 = vpop.f32.mrb[73].mxu1 }
 0xa38   : > { %v7431_v58 = vadd.f32 %v3489_v44, %v8486_v13  ;;  %v3491_v41 = vpop.f32.mrb[74].mxu1 }
 0xa39   : > { %v7432_v4 = vadd.f32 %v3491_v41, %v8488_v15  ;;  %v3493_v3 = vpop.f32.mrb[75].mxu1  ;;  %v3506_v50 = vmax.f32 %v7430_v1, 0.0 }
 0xa3a   : > { %v7433_v54 = vadd.f32 %v3493_v3, %v8488_v15  ;;  %v3507_v34 = vmax.f32 %v7431_v58, 0.0 }
 0xa3b   : > { %v3508_v57 = vmax.f32 %v7432_v4, 0.0 }
 0xa3c   : > { %v3509_v9 = vmax.f32 %v7433_v54, 0.0 }
 0xa3d   : > { %v3514_v51 = vpack.c.bf16 %v3508_v57, %v3506_v50 }
 0xa3e   : > { %v3515_v26 = vpack.c.bf16 %v3509_v9, %v3507_v34  ;;  %v3497_v5 = vpop.f32.mrb[76].mxu1 }
 0xa3f   : > { %v7434_v61 = vadd.f32 %v3497_v5, %v8492_v20  ;;  %v3499_v27 = vpop.f32.mrb[77].mxu1 }
 0xa40   : > { %v7435_v11 = vadd.f32 %v3499_v27, %v8492_v20  ;;  %v3501_v30 = vpop.f32.mrb[78].mxu1  ;;  %6273 = vmatprep.mubr.msk.bf16.mxu0 %vm936_vm2, %v3515_v26 }
 0xa41   : > { %v7436_v44 = vadd.f32 %v3501_v30, %v8496_v33  ;;  %v3503_v41 = vpop.f32.mrb[79].mxu1  ;;  %3557 = vmatmul.mubr.bf16.vlgmr.msra.gmra.mrb[48].mxu0 %v3514_v51  ;;  %v3510_v4 = vmax.f32 %v7434_v61, 0.0  ;;  %v10611_v30 = vld [vmem:[#allocation17_spill] sm:$0xff]  ;;  %v10616_v61 = vld [vmem:[#allocation6_spill] sm:$0xff] }
 0xa42   : > { %v7437_v3 = vadd.f32 %v3503_v41, %v8496_v33  ;;  %3578 = vmatpush1.bf16.msra.mxu0 %v9202_v52  ;;  %v3511_v50 = vmax.f32 %v7435_v11, 0.0  ;;  %v10607_v52 = vld [vmem:[#allocation24_spill] sm:$0xff]  ;;  %v10617_v41 = vld [vmem:[#allocation7_spill] sm:$0xff] }
 0xa43   : > { %v3512_v1 = vmax.f32 %v7436_v44, 0.0  ;;  %3579 = vmatprep.subr.bf16.mxu0 %v10541_v39 }
 0xa44   : > { %v3513_v58 = vmax.f32 %v7437_v3, 0.0 }
 0xa45   : > { %v3516_v54 = vpack.c.bf16 %v3512_v1, %v3510_v4  ;;  %v10618_v4 = vld [vmem:[#allocation8_spill] sm:$0xff] }
 0xa46   : > { %v3517_v57 = vpack.c.bf16 %v3513_v58, %v3511_v50  ;;  %3580 = vmatpush1.bf16.msra.mxu0 %v9209_v45  ;;  %v10608_v45 = vld [vmem:[#allocation25_spill] sm:$0xff] }
 0xa47   : > { %3581 = vmatprep.subr.bf16.mxu0 %v10541_v39 }
 0xa48   : > { %6274 = vmatprep.mubr.msk.bf16.mxu0 %vm936_vm2, %v3517_v57 }
 0xa49   : > { %3567 = vmatmul.mubr.bf16.gmra.mrb[52].mxu0 %v3516_v54 }
 0xa4a   : > { %3582 = vmatpush1.bf16.msra.mxu0 %v9217_v0  ;;  %6275 = vmatprep.mubr.msk.bf16.mxu0 %vm936_vm2, %v3515_v26  ;;  %v10609_v0 = vmov 0.0|0.0   ;;  %v10612_v26 = vld [vmem:[#allocation18_spill] sm:$0xff] }
 0xa4b   : > { %3583 = vmatprep.subr.bf16.mxu0 %v10541_v39 }
 0xa4e   : > { %3584 = vmatpush1.bf16.msra.mxu0 %v9225_v59  ;;  %v10610_v59 = vld [vmem:[#allocation16_spill] sm:$0xff] }
 0xa4f   : > { %3585 = vmatprep.subr.bf16.mxu0 %v10541_v39 }
 0xa52   : > { %3586 = vmatpush1.bf16.msra.mxu0 %v10587_v8  ;;  %v10613_v8 = vmov 0.0  }
 0xa53   : > { %3587 = vmatprep.subr.bf16.mxu0 %v10541_v39 }
 0xa56   : > { %3588 = vmatpush1.bf16.msra.mxu0 %v10588_v47  ;;  %v10614_v47 = vld [vmem:[#allocation19_spill] sm:$0xff] }
 0xa57   : > { %3589 = vmatprep.subr.bf16.mxu0 %v10541_v39 }
 0xa5a   : > { %3590 = vmatpush1.bf16.msra.mxu0 %v10589_v17  ;;  %v7895_v17 = vld [vmem:[%s8347_s23 + $0x5f4] ss:$8 sps:$4 sm:$0xff]  }
 0xa5b   : > { %3591 = vmatprep.subr.bf16.mxu0 %v10541_v39 }
 0xa5e   : > { %3592 = vmatpush1.bf16.msra.mxu0 %v10607_v52 }
 0xa5f   : > { %3593 = vmatprep.subr.bf16.mxu0 %v10541_v39 }
 0xa62   : > { %3594 = vmatpush1.bf16.msra.mxu0 %v10608_v45 }
 0xa63   : > { %7246 = vmatprep.subr.bf16.mxu0 %v10609_v0 }
 0xa65   : > { %3610 = vmatmul.mubr.bf16.vlgmr.msra.gmra.mrb[56].mxu0 %v3514_v51  ;;  %v10615_v51 = vld [vmem:[#allocation5_spill] sm:$0xff] }
 0xa66   : > { %6276 = vmatprep.mubr.msk.bf16.mxu0 %vm936_vm2, %v3517_v57  ;;  %7248 = vmatpush3.bf16.msra.mxu0 %v10610_v59  ;;  %v10619_v57 = vld [vmem:[#allocation9_spill] sm:$0xff] }
 0xa67   : > { %7249 = vmatprep.subr.bf16.mxu0 %v10609_v0 }
 0xa6a   : > { %7251 = vmatpush3.bf16.msra.mxu0 %v10611_v30 }
 0xa6b   : > { %7252 = vmatprep.subr.bf16.mxu0 %v10609_v0 }
 0xa6d   : > { %3618 = vmatmul.mubr.bf16.gmra.mrb[60].mxu0 %v3516_v54 }
 0xa6e   : > { %7254 = vmatpush3.bf16.msra.mxu0 %v10612_v26  ;;  %6978 = vmatprep.mubr.msk.f32.mxu0 %vm8240_vm3, %v10613_v8 }
 0xa6f   : > { %7255 = vmatprep.subr.bf16.mxu0 %v10609_v0 }
 0xa72   : > { %7257 = vmatpush3.bf16.msra.mxu0 %v10614_v47  ;;  %v10620_v47 = vld [vmem:[#allocation15_spill] sm:$0xff] }
 0xa73   : > { %4045 = vmatprep.subr.bf16.mxu0 %v7895_v17 }
 0xb14   : > { %v3558_v27 = vpop.f32.mrb[48].mxu0 }
 0xb15   : > { %v3560_v34 = vpop.f32.mrb[49].mxu0  ;;  %v3626_v5 = vmul.f32 %v10615_v51, %v3558_v27 }
 0xb16   : > { %v3562_v9 = vpop.f32.mrb[50].mxu0  ;;  %v3627_v3 = vmul.f32 %v10617_v41, %v3560_v34 }
 0xb17   : > { %v3629_v11 = vmul.f32 %v10616_v61, %v3562_v9  ;;  %v3564_v44 = vpop.f32.mrb[51].mxu0 }
 0xb18   : > { %v3630_v1 = vmul.f32 %v10618_v4, %v3564_v44 }
 0xb19   : > { %v3638_v50 = vadd.f32 %v3629_v11, %v3626_v5 }
 0xb1a   : > { %v3647_v58 = vadd.f32 %v3630_v1, %v3627_v3 }
 0xb1c   : > { %v3568_v54 = vpop.f32.mrb[52].mxu0 }
 0xb1d   : > { %v3632_v52 = vmul.f32 %v10619_v57, %v3568_v54  ;;  %v3570_v45 = vpop.f32.mrb[53].mxu0 }
 0xb1e   : > { %v3633_v17 = vmul.f32 %v10620_v47, %v3570_v45  ;;  %v3572_v8 = vpop.f32.mrb[54].mxu0 }
 0xb1f   : > { %v3639_v26 = vadd.f32 %v3638_v50, %v3632_v52  ;;  %v3635_v30 = vmul.f32 %v10604_v38, %v3572_v8  ;;  %v3574_v27 = vpop.f32.mrb[55].mxu0 }
 0xb20   : > { %v3648_v51 = vadd.f32 %v3647_v58, %v3633_v17  ;;  %v3636_v9 = vmul.f32 %v9320_v24, %v3574_v27 }
 0xb21   : > { %v3640_v61 = vadd.f32 %v3639_v26, %v3635_v30 }
 0xb22   : > { %v3649_v34 = vadd.f32 %v3648_v51, %v3636_v9 }
 0xb23   : > { %v3641_v41 = vrot.slane %v3640_v61, 4 }
 0xb24   : > { %v3650_v44 = vrot.slane %v3649_v34, 4 }
 0xb25   : > { %v3642_v5 = vadd.f32 %v3641_v41, %v3640_v61 }
 0xb26   : > { %v3651_v11 = vadd.f32 %v3650_v44, %v3649_v34 }
 0xb27   : > { %v3643_v3 = vrot.slane %v3642_v5, 2 }
 0xb28   : > { %v3652_v4 = vrot.slane %v3651_v11, 2 }
 0xb29   : > { %v3644_v1 = vadd.f32 %v3643_v3, %v3642_v5  ;;  %v9750_v3 = vld [vmem:[%s10399_s3 + $0x94] ss:$12 sps:$4 sm:$0xff]  }
 0xb2a   : > { %v3653_v54 = vadd.f32 %v3652_v4, %v3651_v11 }
 0xb2b   : > { %v3645_v57 = vrot.slane %v3644_v1, 1 }
 0xb2c   : > { %v3654_v47 = vrot.slane %v3653_v54, 1 }
 0xb2d   : > { %v3646_v50 = vadd.f32 %v3645_v57, %v3644_v1  ;;  %v9756_v1 = vld [vmem:[%s10399_s3 + $0x90] ss:$12 sps:$4 sm:$0xff]  }
 0xb2e   : > { %v3655_v45 = vadd.f32 %v3654_v47, %v3653_v54  ;;  %v9762_v54 = vld [vmem:[%s10399_s3 + $0xac] ss:$12 sps:$4 sm:$0xff]  }
 0xb30   : > { %3736 = vmatprep.mubr.f32.mxu1 %v3655_v45  ;;  %v9768_v45 = vld [vmem:[%s10399_s3 + $0xa8] ss:$12 sps:$4 sm:$0xff]  }
 0xb31   : > { %3737 = vmatmul.mubr.f32.vlgmr.msra.gmra.mrb[80].mxu1 %v3646_v50  ;;  %v9774_v50 = vld [vmem:[%s10399_s3 + $0xc4] ss:$12 sps:$4 sm:$0xff]  }
 0xb32   : > { %4170 = vmatpush1.bf16.msra.mxu1 %v9491_v12 }
 0xb33   : > { %4171 = vmatprep.subr.bf16.mxu1 %v9497_v31 }
 0xb36   : > { %4172 = vmatpush1.bf16.msra.mxu1 %v9503_v49 }
 0xb37   : > { %4173 = vmatprep.subr.bf16.mxu1 %v9509_v40 }
 0xb38   : > { %v3611_v24 = vpop.f32.mrb[56].mxu0 }
 0xb39   : > { %v3628_v38 = vmul.f32 %v9330_v28, %v3611_v24  ;;  %v3613_v30 = vpop.f32.mrb[57].mxu0 }
 0xb3a   : > { %v3614_v26 = vpop.f32.mrb[58].mxu0  ;;  %4174 = vmatpush1.bf16.msra.mxu1 %v9516_v55 }
 0xb3b   : > { %v3631_v8 = vmul.f32 %v9337_v16, %v3614_v26  ;;  %v3616_v58 = vpop.f32.mrb[59].mxu0  ;;  %4175 = vmatprep.subr.bf16.mxu1 %v9523_v60  ;;  %v3656_v52 = vsel %vm1075_vm4, %v3628_v38, 0.0  ;;  %v7893_v38 = vld [vmem:[%s8347_s23 + $0x5f0] ss:$8 sps:$4 sm:$0xff]   ;;  %v7898_v26 = vld [vmem:[%s8347_s23 + $0x604] ss:$8 sps:$4 sm:$0xff]  }
 0xb3c   : > { %v7896_v58 = vld [vmem:[%s8347_s23 + $0x600] ss:$8 sps:$4 sm:$0xff]  }
 0xb3d   : > { %v3657_v17 = vsel %vm1075_vm4, %v3631_v8, 0.0  ;;  %v9782_v8 = vld [vmem:[%s10399_s3 + $0xc0] ss:$12 sps:$4 sm:$0xff]  }
 0xb3e   : > { %v3658_v27 = vadd.f32 %v3657_v17, %v3656_v52  ;;  %4176 = vmatpush1.bf16.msra.mxu1 %v9531_v23  ;;  %v7901_v52 = vld [vmem:[%s8347_s23 + $0x614] ss:$8 sps:$4 sm:$0xff]   ;;  %v7899_v17 = vld [vmem:[%s8347_s23 + $0x610] ss:$8 sps:$4 sm:$0xff]  }
 0xb3f   : > { %4177 = vmatprep.subr.bf16.mxu1 %v9537_v37 }
 0xb40   : > { %v3619_v51 = vpop.f32.mrb[60].mxu0 }
 0xb41   : > { %v3634_v28 = vmul.f32 %v9543_v56, %v3619_v51  ;;  %v3621_v9 = vpop.f32.mrb[61].mxu0  ;;  %v7902_v51 = vld [vmem:[%s8347_s23 + $0x620] ss:$8 sps:$4 sm:$0xff]  }
 0xb42   : > { %v3622_v61 = vpop.f32.mrb[62].mxu0  ;;  %4178 = vmatpush1.bf16.msra.mxu1 %v9549_v29  ;;  %v7905_v9 = vld [vmem:[%s8347_s23 + $0x630] ss:$8 sps:$4 sm:$0xff]  }
 0xb43   : > { %v3659_v16 = vsel %vm1075_vm4, %v3634_v28, 0.0  ;;  %v3637_v34 = vmul.f32 %v9351_v46, %v3622_v61  ;;  %v3624_v41 = vpop.f32.mrb[63].mxu0  ;;  %4179 = vmatprep.subr.bf16.mxu1 %v9557_v36  ;;  %v7907_v28 = vld [vmem:[%s8347_s23 + $0x634] ss:$8 sps:$4 sm:$0xff]   ;;  %v7910_v61 = vld [vmem:[%s8347_s23 + $0x644] ss:$8 sps:$4 sm:$0xff]  }
 0xb44   : > { %v3660_v44 = vadd.f32 %v3659_v16, %v3658_v27  ;;  %v7904_v27 = vld [vmem:[%s8347_s23 + $0x624] ss:$8 sps:$4 sm:$0xff]   ;;  %v7908_v16 = vld [vmem:[%s8347_s23 + $0x640] ss:$8 sps:$4 sm:$0xff]   ;;  %v7911_v41 = vld [vmem:[%s8347_s23 + $0x650] ss:$8 sps:$4 sm:$0xff]  }
 0xb45   : > { %v3661_v5 = vsel %vm1075_vm4, %v3637_v34, 0.0  ;;  %v7913_v34 = vld [vmem:[%s8347_s23 + $0x654] ss:$8 sps:$4 sm:$0xff]  }
 0xb46   : > { %v3662_v11 = vadd.f32 %v3661_v5, %v3660_v44  ;;  %4180 = vmatpush1.bf16.msra.mxu1 %v9564_v19  ;;  %v7916_v44 = vld [vmem:[%s8347_s23 + $0x664] ss:$8 sps:$4 sm:$0xff]   ;;  %v7914_v5 = vld [vmem:[%s8347_s23 + $0x660] ss:$8 sps:$4 sm:$0xff]  }
 0xb47   : > { %4181 = vmatprep.subr.bf16.mxu1 %v9750_v3 }
 0xb48   : > { %v3663_v4 = vrot.slane %v3662_v11, 4 }
 0xb4a   : > { %v3664_v46 = vadd.f32 %v3663_v4, %v3662_v11  ;;  %4182 = vmatpush1.bf16.msra.mxu1 %v9756_v1  ;;  %v7919_v11 = vld [vmem:[%s8347_s23 + $0x674] ss:$8 sps:$4 sm:$0xff]   ;;  %v7917_v4 = vld [vmem:[%s8347_s23 + $0x670] ss:$8 sps:$4 sm:$0xff]  }
 0xb4b   : > { %4183 = vmatprep.subr.bf16.mxu1 %v9762_v54 }
 0xb4c   : > { %v3665_v57 = vrot.slane %v3664_v46, 2 }
 0xb4e   : > { %v3666_v47 = vadd.f32 %v3665_v57, %v3664_v46  ;;  %4184 = vmatpush1.bf16.msra.mxu1 %v9768_v45  ;;  %v7922_v46 = vld [vmem:[%s8347_s23 + $0x684] ss:$8 sps:$4 sm:$0xff]   ;;  %v7920_v57 = vld [vmem:[%s8347_s23 + $0x680] ss:$8 sps:$4 sm:$0xff]  }
 0xb4f   : > { %4185 = vmatprep.subr.bf16.mxu1 %v9774_v50 }
 0xb50   : > { %v3667_v24 = vrot.slane %v3666_v47, 1 }
 0xb52   : > { %v3668_v30 = vadd.f32 %v3667_v24, %v3666_v47  ;;  %4186 = vmatpush1.bf16.msra.mxu1 %v9782_v8  ;;  %v7925_v47 = vld [vmem:[%s8347_s23 + $0x694] ss:$8 sps:$4 sm:$0xff]   ;;  %v7923_v24 = vld [vmem:[%s8347_s23 + $0x690] ss:$8 sps:$4 sm:$0xff]  }
 0xb53   : > { %4222 = vmatprep.subr.bf16.mxu1 %v10541_v39 }
 0xb54   : > { %6979 = vmatmul.mubr.msk.f32.vlgmr.msra.gmra.mrb[64].mxu0 %vm1075_vm4, %v3668_v30  ;;  %v7926_v30 = vld [vmem:[%s8347_s23 + $0x6a0] ss:$8 sps:$4 sm:$0xff]  }
 0xb55   : > { %4046 = vmatpush1.bf16.msra.mxu0 %v7893_v38  ;;  %4077 = vmatprep.mubr.bf16.mxu0 %v9581_v62  ;;  %v7928_v38 = vld [vmem:[%s8347_s23 + $0x6a4] ss:$8 sps:$4 sm:$0xff]  }
 0xb56   : > { %4047 = vmatprep.subr.bf16.mxu0 %v7898_v26  ;;  %v7931_v26 = vld [vmem:[%s8347_s23 + $0x6b4] ss:$8 sps:$4 sm:$0xff]  }
 0xb59   : > { %4048 = vmatpush1.bf16.msra.mxu0 %v7896_v58  ;;  %v7929_v58 = vld [vmem:[%s8347_s23 + $0x6b0] ss:$8 sps:$4 sm:$0xff]  }
 0xb5a   : > { %4049 = vmatprep.subr.bf16.mxu0 %v7901_v52  ;;  %v7934_v52 = vld [vmem:[%s8347_s23 + $0x6c4] ss:$8 sps:$4 sm:$0xff]  }
 0xb5d   : > { %4050 = vmatpush1.bf16.msra.mxu0 %v7899_v17  ;;  %v7932_v17 = vld [vmem:[%s8347_s23 + $0x6c0] ss:$8 sps:$4 sm:$0xff]  }
 0xb5e   : > { %4051 = vmatprep.subr.bf16.mxu0 %v7904_v27  ;;  %v7937_v27 = vld [vmem:[%s8347_s23 + $0x6d4] ss:$8 sps:$4 sm:$0xff]  }
 0xb61   : > { %4052 = vmatpush1.bf16.msra.mxu0 %v7902_v51  ;;  %v7935_v51 = vld [vmem:[%s8347_s23 + $0x6d0] ss:$8 sps:$4 sm:$0xff]  }
 0xb62   : > { %4053 = vmatprep.subr.bf16.mxu0 %v7907_v28  ;;  %v7940_v28 = vld [vmem:[%s8347_s23 + $0x6e4] ss:$8 sps:$4 sm:$0xff]  }
 0xb65   : > { %4054 = vmatpush1.bf16.msra.mxu0 %v7905_v9  ;;  %v7938_v9 = vld [vmem:[%s8347_s23 + $0x6e0] ss:$8 sps:$4 sm:$0xff]  }
 0xb66   : > { %4055 = vmatprep.subr.bf16.mxu0 %v7910_v61  ;;  %v7943_v61 = vld [vmem:[%s8347_s23 + $0x6f4] ss:$8 sps:$4 sm:$0xff]  }
 0xb69   : > { %4056 = vmatpush1.bf16.msra.mxu0 %v7908_v16  ;;  %v7941_v16 = vld [vmem:[%s8347_s23 + $0x6f0] ss:$8 sps:$4 sm:$0xff]  }
 0xb6a   : > { %4057 = vmatprep.subr.bf16.mxu0 %v7913_v34  ;;  %v7946_v34 = vld [vmem:[%s8347_s23 + $0x704] ss:$8 sps:$4 sm:$0xff]  }
 0xb6d   : > { %4058 = vmatpush1.bf16.msra.mxu0 %v7911_v41  ;;  %v7944_v41 = vld [vmem:[%s8347_s23 + $0x700] ss:$8 sps:$4 sm:$0xff]  }
 0xb6e   : > { %4059 = vmatprep.subr.bf16.mxu0 %v7916_v44  ;;  %v7947_v44 = vld [vmem:[%s8347_s23 + $0x714] ss:$8 sps:$4 sm:$0x3f]  }
 0xb71   : > { %4060 = vmatpush1.bf16.msra.mxu0 %v7914_v5  ;;  %v7949_v5 = vld [vmem:[%s8347_s23 + $0x710] ss:$8 sps:$4 sm:$0x3f]  }
 0xb72   : > { %4061 = vmatprep.subr.bf16.mxu0 %v7919_v11  ;;  %v4040_v11 = vsel %vm667_vm0, %v7949_v5, 0 }
 0xb75   : > { %4062 = vmatpush1.bf16.msra.mxu0 %v7917_v4  ;;  %v10621_v4 = vld [vmem:[#allocation10_spill] sm:$0xff] }
 0xb76   : > { %4063 = vmatprep.subr.bf16.mxu0 %v7922_v46  ;;  %v10622_v46 = vld [vmem:[#allocation11_spill] sm:$0xff] }
 0xb79   : > { %4064 = vmatpush1.bf16.msra.mxu0 %v7920_v57  ;;  %v10623_v57 = vld [vmem:[#allocation12_spill] sm:$0xff] }
 0xb7a   : > { %4065 = vmatprep.subr.bf16.mxu0 %v7925_v47  ;;  %v10624_v47 = vld [vmem:[#allocation13_spill] sm:$0xff] }
 0xb7d   : > { %4066 = vmatpush1.bf16.msra.mxu0 %v7923_v24  ;;  %v10625_v24 = vld [vmem:[#allocation14_spill] sm:$0xff] }
 0xb7e   : > { %4067 = vmatprep.subr.bf16.mxu0 %v7928_v38  ;;  %v10626_v38 = vld [vmem:[#allocation28_spill] sm:$0xff] }
 0xb81   : > { %4068 = vmatpush1.bf16.msra.mxu0 %v7926_v30 }
 0xb82   : > { %4069 = vmatprep.subr.bf16.mxu0 %v7931_v26 }
 0xb85   : > { %4070 = vmatpush1.bf16.msra.mxu0 %v7929_v58 }
 0xb86   : > { %4071 = vmatprep.subr.bf16.mxu0 %v7934_v52  ;;  %v10627_v52 = vld [vmem:[#allocation26_spill] sm:$0xff] }
 0xb89   : > { %4072 = vmatpush1.bf16.msra.mxu0 %v7932_v17 }
 0xb8a   : > { %4073 = vmatprep.subr.bf16.mxu0 %v7937_v27 }
 0xb8d   : > { %4074 = vmatpush1.bf16.msra.mxu0 %v7935_v51 }
 0xb8e   : > { %4075 = vmatprep.subr.bf16.mxu0 %v7940_v28 }
 0xb91   : > { %4076 = vmatpush1.bf16.msra.mxu0 %v7938_v9 }
 0xb92   : > { %4098 = vmatprep.subr.bf16.mxu0 %v7943_v61  ;;  %v10628_v61 = vld [vmem:[#allocation20_spill] sm:$0xff] }
 0xb94   : > { %4078 = vmatmul.mubr.bf16.vlgmr.msra.gmra.mrb[68].mxu0 %v9618_v21 }
 0xb95   : > { %4099 = vmatpush1.bf16.msra.mxu0 %v7941_v16  ;;  %4087 = vmatprep.mubr.bf16.mxu0 %v9625_v42 }
 0xb96   : > { %4100 = vmatprep.subr.bf16.mxu0 %v7946_v34 }
 0xb99   : > { %4101 = vmatpush1.bf16.msra.mxu0 %v7944_v41 }
 0xb9a   : > { %6354 = vmatprep.subr.msk.bf16.mxu0 %vm667_vm0, %v7947_v44 }
 0xb9c   : > { %4088 = vmatmul.mubr.bf16.gmra.mrb[72].mxu0 %v9635_v35 }
 0xb9d   : > { %4103 = vmatpush1.bf16.msra.mxu0 %v4040_v11  ;;  %4130 = vmatprep.mubr.bf16.mxu0 %v10541_v39 }
 0xb9e   : > { %7259 = vmatprep.subr.bf16.mxu0 %v8572_v7 }
 0xba4   : > { %6355 = vmatmul.mubr.msk.bf16.vlgmr.msra.gmra.mrb[68].mxu0 %vm660_vm1, %v9643_v43 }
 0xba5   : > { %4140 = vmatprep.mubr.bf16.mxu0 %v10541_v39  ;;  %7261 = vmatpush3.bf16.msra.mxu0 %v8581_v10 }
 0xba6   : > { %7263 = vmatprep.subr.bf16.mxu0 %v8592_v14 }
 0xba9   : > { %7265 = vmatpush3.bf16.msra.mxu0 %v8600_v18 }
 0xbaa   : > { %7267 = vmatprep.subr.bf16.mxu0 %v8610_v22 }
 0xbac   : > { %6356 = vmatmul.mubr.msk.bf16.gmra.mrb[72].mxu0 %vm660_vm1, %v9655_v48 }
 0xbad   : > { %7269 = vmatpush3.bf16.msra.mxu0 %v8618_v25 }
 0xbae   : > { %7271 = vmatprep.subr.bf16.mxu0 %v10553_v2 }
 0xbb1   : > { %7273 = vmatpush3.bf16.msra.mxu0 %v10554_v6 }
 0xbb2   : > { %7275 = vmatprep.subr.bf16.mxu0 %v10555_v53 }
 0xbb5   : > { %7277 = vmatpush3.bf16.msra.mxu0 %v10556_v32 }
 0xbb6   : > { %7279 = vmatprep.subr.bf16.mxu0 %v10557_v63 }
 0xbb9   : > { %7281 = vmatpush3.bf16.msra.mxu0 %v10621_v4 }
 0xbba   : > { %7283 = vmatprep.subr.bf16.mxu0 %v10622_v46 }
 0xbbd   : > { %7285 = vmatpush3.bf16.msra.mxu0 %v10623_v57 }
 0xbbe   : > { %7287 = vmatprep.subr.bf16.mxu0 %v10624_v47 }
 0xbc1   : > { %7289 = vmatpush3.bf16.msra.mxu0 %v10625_v24 }
 0xbc2   : > { %4814 = vmatprep.subr.bf16.mxu0 %v10626_v38 }
 0xc04   : > { %v6742_v30 = vpop.f32.mrb[80].mxu1 }
 0xc05   : > { %v6743_v26 = vpop.f32.mrb[81].mxu1 }
 0xc06   : > { %v6744_v58 = vadd.f32 %v6743_v26, %v6742_v30 }
 0xc08   : > { %v3739_v17 = vadd.f32 %v10627_v52, %v6744_v58 }
 0xc27   : > { %v3808_v27 = vpop.f32.mrb[64].mxu0 }
 0xc28   : > { %v3809_v51 = vadd.f32 %v3808_v27, %v3739_v17  ;;  %v6980_v28 = vpop.f32.mrb[65].mxu0 }
 0xc2a   : > { %v5757_v9 = vrot.slane %v3809_v51, 4 }
 0xc2c   : > { %v9853_v16 = vsel %vm5774_vm8, %v10628_v61, %v5757_v9 }
 0xc2d   : > { %10629 = vst [vmem:[#allocation21_spill] sm:$0xff] %v9853_v16 }
 0xc77   : > { %v4132_v34 = vpop.f32.mrb[68].mxu0 }
 0xc78   : > { %v7438_v41 = vadd.f32 %v4132_v34, %v8486_v13  ;;  %v4134_v44 = vpop.f32.mrb[69].mxu0 }
 0xc79   : > { %v7439_v5 = vadd.f32 %v4134_v44, %v8486_v13  ;;  %v4136_v11 = vpop.f32.mrb[70].mxu0 }
 0xc7a   : > { %v7440_v38 = vadd.f32 %v4136_v11, %v8488_v15  ;;  %v4138_v30 = vpop.f32.mrb[71].mxu0  ;;  %v4151_v58 = vmax.f32 %v7438_v41, 0.0 }
 0xc7b   : > { %v7441_v26 = vadd.f32 %v4138_v30, %v8488_v15  ;;  %v4152_v27 = vmax.f32 %v7439_v5, 0.0  ;;  %v9867_v5 = vld [vmem:[%s10399_s3 + $0x8] ss:$12 sps:$4 sm:$0xff]  }
 0xc7c   : > { %v4153_v17 = vmax.f32 %v7440_v38, 0.0  ;;  %10630 = vst [vmem:[#allocation22_spill] sm:$0xff] %v9867_v5 }
 0xc7d   : > { %v4154_v28 = vmax.f32 %v7441_v26, 0.0 }
 0xc7e   : > { %v4159_v51 = vpack.c.bf16 %v4153_v17, %v4151_v58 }
 0xc7f   : > { %v4160_v52 = vpack.c.bf16 %v4154_v28, %v4152_v27  ;;  %v4142_v9 = vpop.f32.mrb[72].mxu0  ;;  %v9882_v27 = vld [vmem:[%s10399_s3 + $0x38] ss:$12 sps:$4 sm:$0xff]   ;;  %v9890_v28 = vld [vmem:[%s10399_s3 + $0x50] ss:$12 sps:$4 sm:$0xff]  }
 0xc80   : > { %v7442_v61 = vadd.f32 %v4142_v9, %v8492_v20  ;;  %v4144_v16 = vpop.f32.mrb[73].mxu0  ;;  %10632 = vst [vmem:[#allocation27_spill] sm:$0xff] %v9882_v27  ;;  %10633 = vst [vmem:[#allocation24_spill] sm:$0xff] %v9890_v28  ;;  %v9897_v9 = vld [vmem:[%s10399_s3 + $0x68] ss:$12 sps:$4 sm:$0xff]  }
 0xc81   : > { %v7443_v34 = vadd.f32 %v4144_v16, %v8492_v20  ;;  %v4146_v24 = vpop.f32.mrb[74].mxu0  ;;  %6357 = vmatprep.mubr.msk.bf16.mxu1 %vm936_vm2, %v4160_v52  ;;  %10634 = vst [vmem:[#allocation25_spill] sm:$0xff] %v9897_v9 }
 0xc82   : > { %v7444_v44 = vadd.f32 %v4146_v24, %v8496_v33  ;;  %v4148_v11 = vpop.f32.mrb[75].mxu0  ;;  %4202 = vmatmul.mubr.bf16.vlgmr.msra.gmra.mrb[84].mxu1 %v4159_v51  ;;  %v4155_v38 = vmax.f32 %v7442_v61, 0.0  ;;  %v9874_v24 = vld [vmem:[%s10399_s3 + $0x20] ss:$12 sps:$4 sm:$0xff]   ;;  %v9911_v61 = vld [vmem:[%s10399_s3 + $0x98] ss:$12 sps:$4 sm:$0xff]  }
 0xc83   : > { %v7445_v41 = vadd.f32 %v4148_v11, %v8496_v33  ;;  %4223 = vmatpush1.bf16.msra.mxu1 %v9867_v5  ;;  %v4156_v16 = vmax.f32 %v7443_v34, 0.0  ;;  %10631 = vst [vmem:[#allocation23_spill] sm:$0xff] %v9874_v24  ;;  %10636 = vst [vmem:[#allocation6_spill] sm:$0xff] %v9911_v61  ;;  %v9918_v34 = vld [vmem:[%s10399_s3 + $0xb0] ss:$12 sps:$4 sm:$0xff]  }
 0xc84   : > { %v4157_v30 = vmax.f32 %v7444_v44, 0.0  ;;  %4224 = vmatprep.subr.bf16.mxu1 %v10541_v39  ;;  %10637 = vst [vmem:[#allocation7_spill] sm:$0xff] %v9918_v34  ;;  %v9925_v44 = vld [vmem:[%s10399_s3 + $0xc8] ss:$12 sps:$4 sm:$0xff]  }
 0xc85   : > { %v4158_v26 = vmax.f32 %v7445_v41, 0.0  ;;  %10638 = vst [vmem:[#allocation8_spill] sm:$0xff] %v9925_v44  ;;  %v10639_v11 = vld [vmem:[#allocation17_spill] sm:$0xff]  ;;  %v10640_v41 = vld [vmem:[#allocation18_spill] sm:$0xff] }
 0xc86   : > { %v4161_v58 = vpack.c.bf16 %v4157_v30, %v4155_v38  ;;  %v10641_v38 = vmov 0.0   ;;  %v10642_v30 = vld [vmem:[#allocation19_spill] sm:$0xff] }
 0xc87   : > { %v4162_v17 = vpack.c.bf16 %v4158_v26, %v4156_v16  ;;  %4225 = vmatpush1.bf16.msra.mxu1 %v9874_v24 }
 0xc88   : > { %4226 = vmatprep.subr.bf16.mxu1 %v10541_v39 }
 0xc89   : > { %6358 = vmatprep.mubr.msk.bf16.mxu1 %vm936_vm2, %v4162_v17 }
 0xc8a   : > { %4212 = vmatmul.mubr.bf16.gmra.mrb[88].mxu1 %v4161_v58 }
 0xc8b   : > { %4227 = vmatpush1.bf16.msra.mxu1 %v9882_v27  ;;  %6359 = vmatprep.mubr.msk.bf16.mxu1 %vm936_vm2, %v4160_v52  ;;  %v9904_v52 = vld [vmem:[%s10399_s3 + $0x80] ss:$12 sps:$4 sm:$0xff]  }
 0xc8c   : > { %4228 = vmatprep.subr.bf16.mxu1 %v10541_v39  ;;  %10635 = vst [vmem:[#allocation5_spill] sm:$0xff] %v9904_v52 }
 0xc8f   : > { %4229 = vmatpush1.bf16.msra.mxu1 %v9890_v28 }
 0xc90   : > { %4230 = vmatprep.subr.bf16.mxu1 %v10541_v39 }
 0xc93   : > { %4231 = vmatpush1.bf16.msra.mxu1 %v9897_v9 }
 0xc94   : > { %4232 = vmatprep.subr.bf16.mxu1 %v10541_v39 }
 0xc97   : > { %4233 = vmatpush1.bf16.msra.mxu1 %v9904_v52 }
 0xc98   : > { %4234 = vmatprep.subr.bf16.mxu1 %v10541_v39 }
 0xc9b   : > { %4235 = vmatpush1.bf16.msra.mxu1 %v9911_v61 }
 0xc9c   : > { %4236 = vmatprep.subr.bf16.mxu1 %v10541_v39 }
 0xc9f   : > { %4237 = vmatpush1.bf16.msra.mxu1 %v9918_v34 }
 0xca0   : > { %4238 = vmatprep.subr.bf16.mxu1 %v10541_v39 }
 0xca3   : > { %4239 = vmatpush1.bf16.msra.mxu1 %v9925_v44 }
 0xca4   : > { %7290 = vmatprep.subr.bf16.mxu1 %v10609_v0 }
 0xca6   : > { %4255 = vmatmul.mubr.bf16.vlgmr.msra.gmra.mrb[92].mxu1 %v4159_v51  ;;  %v7952_v51 = vld [vmem:[%s8347_s23 + $0x724] ss:$8 sps:$4 sm:$0xff]  }
 0xca7   : > { %6360 = vmatprep.mubr.msk.bf16.mxu1 %vm936_vm2, %v4162_v17  ;;  %7292 = vmatpush3.bf16.msra.mxu1 %v10610_v59 }
 0xca8   : > { %7293 = vmatprep.subr.bf16.mxu1 %v10609_v0 }
 0xcab   : > { %7295 = vmatpush3.bf16.msra.mxu1 %v10639_v11  ;;  %v9943_v11 = vld [vmem:[%s10400_s4] sm:$0xff] }
 0xcac   : > { %7296 = vmatprep.subr.bf16.mxu1 %v10609_v0  ;;  %10643 = vst [vmem:[#allocation9_spill] sm:$0xff] %v9943_v11 }
 0xcae   : > { %4263 = vmatmul.mubr.bf16.gmra.mrb[96].mxu1 %v4161_v58 }
 0xcaf   : > { %7298 = vmatpush3.bf16.msra.mxu1 %v10640_v41  ;;  %6997 = vmatprep.mubr.msk.f32.mxu1 %vm8240_vm3, %v10641_v38  ;;  %v9949_v38 = vld [vmem:[%s10400_s4 + $0x18] sm:$0xff] }
 0xcb0   : > { %7299 = vmatprep.subr.bf16.mxu1 %v10609_v0  ;;  %10644 = vst [vmem:[#allocation15_spill] sm:$0xff] %v9949_v38  ;;  %v9961_v0 = vld [vmem:[%s10400_s4 + $0x20] sm:$0xff] }
 0xcb1   : > { %10646 = vst [vmem:[#allocation11_spill] sm:$0xff] %v9961_v0 }
 0xcb3   : > { %7301 = vmatpush3.bf16.msra.mxu1 %v10642_v30 }
 0xcb4   : > { %4690 = vmatprep.subr.bf16.mxu1 %v7952_v51  ;;  %v9955_v51 = vld [vmem:[%s10400_s4 + $0x8] sm:$0xff] }
 0xcb5   : > { %10645 = vst [vmem:[#allocation10_spill] sm:$0xff] %v9955_v51 }
 0xd55   : > { %v4203_v16 = vpop.f32.mrb[84].mxu1 }
 0xd56   : > { %v4205_v26 = vpop.f32.mrb[85].mxu1  ;;  %v4271_v58 = vmul.f32 %v9943_v11, %v4203_v16 }
 0xd57   : > { %v4207_v17 = vpop.f32.mrb[86].mxu1  ;;  %v4272_v59 = vmul.f32 %v9955_v51, %v4205_v26  ;;  %v9973_v26 = vld [vmem:[%s10400_s4 + $0x38] sm:$0xff] }
 0xd58   : > { %v4274_v41 = vmul.f32 %v9949_v38, %v4207_v17  ;;  %v4209_v30 = vpop.f32.mrb[87].mxu1  ;;  %v9967_v17 = vld [vmem:[%s10400_s4 + $0x30] sm:$0xff]  ;;  %10648 = vst [vmem:[#allocation13_spill] sm:$0xff] %v9973_v26 }
 0xd59   : > { %v4275_v16 = vmul.f32 %v9961_v0, %v4209_v30  ;;  %10647 = vst [vmem:[#allocation12_spill] sm:$0xff] %v9967_v17 }
 0xd5a   : > { %v4283_v11 = vadd.f32 %v4274_v41, %v4271_v58 }
 0xd5b   : > { %v4292_v44 = vadd.f32 %v4275_v16, %v4272_v59  ;;  %v9979_v59 = vld [vmem:[%s10400_s4 + $0x48] sm:$0xff] }
 0xd5c   : > { %10649 = vst [vmem:[#allocation28_spill] sm:$0xff] %v9979_v59 }
 0xd5d   : > { %v4213_v34 = vpop.f32.mrb[88].mxu1 }
 0xd5e   : > { %v4277_v38 = vmul.f32 %v9967_v17, %v4213_v34  ;;  %v4215_v61 = vpop.f32.mrb[89].mxu1  ;;  %v9985_v34 = vld [vmem:[%s10400_s4 + $0x50] sm:$0xff] }
 0xd5f   : > { %v4278_v51 = vmul.f32 %v9973_v26, %v4215_v61  ;;  %v4217_v52 = vpop.f32.mrb[90].mxu1 }
 0xd60   : > { %v4284_v30 = vadd.f32 %v4283_v11, %v4277_v38  ;;  %v4280_v41 = vmul.f32 %v9979_v59, %v4217_v52  ;;  %v4219_v58 = vpop.f32.mrb[91].mxu1 }
 0xd61   : > { %v4293_v16 = vadd.f32 %v4292_v44, %v4278_v51  ;;  %v4281_v17 = vmul.f32 %v9985_v34, %v4219_v58 }
 0xd62   : > { %v4285_v0 = vadd.f32 %v4284_v30, %v4280_v41 }
 0xd63   : > { %v4294_v61 = vadd.f32 %v4293_v16, %v4281_v17 }
 0xd64   : > { %v4286_v26 = vrot.slane %v4285_v0, 4 }
 0xd65   : > { %v4295_v11 = vrot.slane %v4294_v61, 4 }
 0xd66   : > { %v4287_v38 = vadd.f32 %v4286_v26, %v4285_v0 }
 0xd67   : > { %v4296_v9 = vadd.f32 %v4295_v11, %v4294_v61 }
 0xd68   : > { %v4288_v28 = vrot.slane %v4287_v38, 2 }
 0xd69   : > { %v4297_v27 = vrot.slane %v4296_v9, 2 }
 0xd6a   : > { %v4289_v24 = vadd.f32 %v4288_v28, %v4287_v38  ;;  %v9995_v28 = vld [vmem:[%s10400_s4 + $0x10] sm:$0xff] }
 0xd6b   : > { %v4298_v5 = vadd.f32 %v4297_v27, %v4296_v9 }
 0xd6c   : > { %v4290_v52 = vrot.slane %v4289_v24, 1 }
 0xd6d   : > { %v4299_v59 = vrot.slane %v4298_v5, 1 }
 0xd6e   : > { %v4291_v51 = vadd.f32 %v4290_v52, %v4289_v24 }
 0xd6f   : > { %v4300_v44 = vadd.f32 %v4299_v59, %v4298_v5 }
 0xd71   : > { %4381 = vmatprep.mubr.f32.mxu0 %v4300_v44  ;;  %v7955_v44 = vld [vmem:[%s8347_s23 + $0x734] ss:$8 sps:$4 sm:$0xff]  }
 0xd72   : > { %4382 = vmatmul.mubr.f32.vlgmr.msra.gmra.mrb[66].mxu0 %v4291_v51  ;;  %v7953_v51 = vld [vmem:[%s8347_s23 + $0x730] ss:$8 sps:$4 sm:$0xff]  }
 0xd73   : > { %4815 = vmatpush1.bf16.msra.mxu0 %v9491_v12  ;;  %v10002_v12 = vld [vmem:[%s10400_s4 + $0x28] sm:$0xff] }
 0xd74   : > { %4816 = vmatprep.subr.bf16.mxu0 %v9497_v31 }
 0xd77   : > { %4817 = vmatpush1.bf16.msra.mxu0 %v9503_v49 }
 0xd78   : > { %4818 = vmatprep.subr.bf16.mxu0 %v9509_v40 }
 0xd79   : > { %v4256_v0 = vpop.f32.mrb[92].mxu1 }
 0xd7a   : > { %v4273_v27 = vmul.f32 %v9995_v28, %v4256_v0  ;;  %v4258_v5 = vpop.f32.mrb[93].mxu1  ;;  %v7958_v0 = vld [vmem:[%s8347_s23 + $0x744] ss:$8 sps:$4 sm:$0xff]  }
 0xd7b   : > { %v4259_v24 = vpop.f32.mrb[94].mxu1  ;;  %4819 = vmatpush1.bf16.msra.mxu0 %v9516_v55  ;;  %v7961_v5 = vld [vmem:[%s8347_s23 + $0x754] ss:$8 sps:$4 sm:$0xff]  }
 0xd7c   : > { %v4276_v31 = vmul.f32 %v10002_v12, %v4259_v24  ;;  %v4261_v49 = vpop.f32.mrb[95].mxu1  ;;  %4820 = vmatprep.subr.bf16.mxu0 %v9523_v60  ;;  %v4301_v40 = vsel %vm1075_vm4, %v4273_v27, 0.0  ;;  %v10016_v60 = vld [vmem:[%s10400_s4 + $0x58] sm:$0xff]  ;;  %v7956_v27 = vld [vmem:[%s8347_s23 + $0x740] ss:$8 sps:$4 sm:$0xff]  }
 0xd7d   : > { %v7959_v24 = vld [vmem:[%s8347_s23 + $0x750] ss:$8 sps:$4 sm:$0xff]   ;;  %v7962_v49 = vld [vmem:[%s8347_s23 + $0x760] ss:$8 sps:$4 sm:$0xff]  }
 0xd7e   : > { %v4302_v9 = vsel %vm1075_vm4, %v4276_v31, 0.0  ;;  %v7964_v31 = vld [vmem:[%s8347_s23 + $0x764] ss:$8 sps:$4 sm:$0xff]  }
 0xd7f   : > { %v4303_v17 = vadd.f32 %v4302_v9, %v4301_v40  ;;  %4821 = vmatpush1.bf16.msra.mxu0 %v9531_v23  ;;  %v7965_v40 = vld [vmem:[%s8347_s23 + $0x770] ss:$8 sps:$4 sm:$0xff]   ;;  %v7970_v9 = vld [vmem:[%s8347_s23 + $0x784] ss:$8 sps:$4 sm:$0xff]  }
 0xd80   : > { %4822 = vmatprep.subr.bf16.mxu0 %v9537_v37 }
 0xd81   : > { %v4264_v55 = vpop.f32.mrb[96].mxu1 }
 0xd82   : > { %v4279_v26 = vmul.f32 %v9543_v56, %v4264_v55  ;;  %v4266_v30 = vpop.f32.mrb[97].mxu1  ;;  %v7973_v55 = vld [vmem:[%s8347_s23 + $0x794] ss:$8 sps:$4 sm:$0xff]  }
 0xd83   : > { %v4267_v59 = vpop.f32.mrb[98].mxu1  ;;  %4823 = vmatpush1.bf16.msra.mxu0 %v9549_v29  ;;  %v7976_v30 = vld [vmem:[%s8347_s23 + $0x7a4] ss:$8 sps:$4 sm:$0xff]  }
 0xd84   : > { %v4304_v41 = vsel %vm1075_vm4, %v4279_v26, 0.0  ;;  %v4282_v58 = vmul.f32 %v10016_v60, %v4267_v59  ;;  %v4269_v16 = vpop.f32.mrb[99].mxu1  ;;  %4824 = vmatprep.subr.bf16.mxu0 %v9557_v36  ;;  %v7971_v26 = vld [vmem:[%s8347_s23 + $0x790] ss:$8 sps:$4 sm:$0xff]   ;;  %v7974_v59 = vld [vmem:[%s8347_s23 + $0x7a0] ss:$8 sps:$4 sm:$0xff]  }
 0xd85   : > { %v4305_v23 = vadd.f32 %v4304_v41, %v4303_v17  ;;  %v7968_v17 = vld [vmem:[%s8347_s23 + $0x780] ss:$8 sps:$4 sm:$0xff]   ;;  %v7979_v41 = vld [vmem:[%s8347_s23 + $0x7b4] ss:$8 sps:$4 sm:$0xff]   ;;  %v7982_v16 = vld [vmem:[%s8347_s23 + $0x7c4] ss:$8 sps:$4 sm:$0xff]  }
 0xd86   : > { %v4306_v37 = vsel %vm1075_vm4, %v4282_v58, 0.0  ;;  %v7977_v58 = vld [vmem:[%s8347_s23 + $0x7b0] ss:$8 sps:$4 sm:$0xff]  }
 0xd87   : > { %v4307_v56 = vadd.f32 %v4306_v37, %v4305_v23  ;;  %4825 = vmatpush1.bf16.msra.mxu0 %v9564_v19  ;;  %v7950_v19 = vld [vmem:[%s8347_s23 + $0x720] ss:$8 sps:$4 sm:$0xff]   ;;  %v7985_v37 = vld [vmem:[%s8347_s23 + $0x7d4] ss:$8 sps:$4 sm:$0xff]  }
 0xd88   : > { %4826 = vmatprep.subr.bf16.mxu0 %v9750_v3  ;;  %v7980_v23 = vld [vmem:[%s8347_s23 + $0x7c0] ss:$8 sps:$4 sm:$0xff]  }
 0xd89   : > { %v4308_v29 = vrot.slane %v4307_v56, 4 }
 0xd8b   : > { %v4309_v61 = vadd.f32 %v4308_v29, %v4307_v56  ;;  %4827 = vmatpush1.bf16.msra.mxu0 %v9756_v1  ;;  %v7983_v56 = vld [vmem:[%s8347_s23 + $0x7d0] ss:$8 sps:$4 sm:$0xff]   ;;  %v7988_v29 = vld [vmem:[%s8347_s23 + $0x7e4] ss:$8 sps:$4 sm:$0xff]  }
 0xd8c   : > { %4828 = vmatprep.subr.bf16.mxu0 %v9762_v54 }
 0xd8d   : > { %v4310_v11 = vrot.slane %v4309_v61, 2 }
 0xd8f   : > { %v4311_v38 = vadd.f32 %v4310_v11, %v4309_v61  ;;  %4829 = vmatpush1.bf16.msra.mxu0 %v9768_v45  ;;  %v7986_v61 = vld [vmem:[%s8347_s23 + $0x7e0] ss:$8 sps:$4 sm:$0xff]   ;;  %v7991_v11 = vld [vmem:[%s8347_s23 + $0x7f4] ss:$8 sps:$4 sm:$0xff]  }
 0xd90   : > { %4830 = vmatprep.subr.bf16.mxu0 %v9774_v50 }
 0xd91   : > { %v4312_v36 = vrot.slane %v4311_v38, 1 }
 0xd93   : > { %v4313_v52 = vadd.f32 %v4312_v36, %v4311_v38  ;;  %4831 = vmatpush1.bf16.msra.mxu0 %v9782_v8  ;;  %v7989_v38 = vld [vmem:[%s8347_s23 + $0x7f0] ss:$8 sps:$4 sm:$0xff]   ;;  %v7994_v36 = vld [vmem:[%s8347_s23 + $0x804] ss:$8 sps:$4 sm:$0xff]  }
 0xd94   : > { %4867 = vmatprep.subr.bf16.mxu0 %v10541_v39 }
 0xd95   : > { %6998 = vmatmul.mubr.msk.f32.vlgmr.msra.gmra.mrb[82].mxu1 %vm1075_vm4, %v4313_v52  ;;  %v7997_v52 = vld [vmem:[%s8347_s23 + $0x814] ss:$8 sps:$4 sm:$0xff]  }
 0xd96   : > { %4691 = vmatpush1.bf16.msra.mxu1 %v7950_v19  ;;  %4722 = vmatprep.mubr.bf16.mxu1 %v9581_v62  ;;  %v7967_v62 = vld [vmem:[%s8347_s23 + $0x774] ss:$8 sps:$4 sm:$0xff]   ;;  %v7992_v19 = vld [vmem:[%s8347_s23 + $0x800] ss:$8 sps:$4 sm:$0xff]  }
 0xd97   : > { %4692 = vmatprep.subr.bf16.mxu1 %v7955_v44  ;;  %v7995_v44 = vld [vmem:[%s8347_s23 + $0x810] ss:$8 sps:$4 sm:$0xff]  }
 0xd9a   : > { %4693 = vmatpush1.bf16.msra.mxu1 %v7953_v51  ;;  %v8000_v51 = vld [vmem:[%s8347_s23 + $0x824] ss:$8 sps:$4 sm:$0xff]  }
 0xd9b   : > { %4694 = vmatprep.subr.bf16.mxu1 %v7958_v0  ;;  %v7998_v0 = vld [vmem:[%s8347_s23 + $0x820] ss:$8 sps:$4 sm:$0xff]  }
 0xd9e   : > { %4695 = vmatpush1.bf16.msra.mxu1 %v7956_v27  ;;  %v8003_v27 = vld [vmem:[%s8347_s23 + $0x834] ss:$8 sps:$4 sm:$0xff]  }
 0xd9f   : > { %4696 = vmatprep.subr.bf16.mxu1 %v7961_v5  ;;  %v8001_v5 = vld [vmem:[%s8347_s23 + $0x830] ss:$8 sps:$4 sm:$0xff]  }
 0xda2   : > { %4697 = vmatpush1.bf16.msra.mxu1 %v7959_v24  ;;  %v8004_v24 = vld [vmem:[%s8347_s23 + $0x844] ss:$8 sps:$4 sm:$0x3f]  }
 0xda3   : > { %4698 = vmatprep.subr.bf16.mxu1 %v7964_v31  ;;  %v8006_v31 = vld [vmem:[%s8347_s23 + $0x840] ss:$8 sps:$4 sm:$0x3f]  }
 0xda6   : > { %4699 = vmatpush1.bf16.msra.mxu1 %v7962_v49  ;;  %v4685_v49 = vsel %vm667_vm0, %v8006_v31, 0 }
 0xda7   : > { %4700 = vmatprep.subr.bf16.mxu1 %v7967_v62  ;;  %v10651_v62 = vld [vmem:[#allocation26_spill] sm:$0xff] }
 0xdaa   : > { %4701 = vmatpush1.bf16.msra.mxu1 %v7965_v40 }
 0xdab   : > { %4702 = vmatprep.subr.bf16.mxu1 %v7970_v9 }
 0xdae   : > { %4703 = vmatpush1.bf16.msra.mxu1 %v7968_v17 }
 0xdaf   : > { %4704 = vmatprep.subr.bf16.mxu1 %v7973_v55 }
 0xdb2   : > { %4705 = vmatpush1.bf16.msra.mxu1 %v7971_v26 }
 0xdb3   : > { %4706 = vmatprep.subr.bf16.mxu1 %v7976_v30  ;;  %v10652_v30 = vld [vmem:[#allocation21_spill] sm:$0xff] }
 0xdb6   : > { %4707 = vmatpush1.bf16.msra.mxu1 %v7974_v59 }
 0xdb7   : > { %4708 = vmatprep.subr.bf16.mxu1 %v7979_v41 }
 0xdba   : > { %4709 = vmatpush1.bf16.msra.mxu1 %v7977_v58 }
 0xdbb   : > { %4710 = vmatprep.subr.bf16.mxu1 %v7982_v16 }
 0xdbe   : > { %4711 = vmatpush1.bf16.msra.mxu1 %v7980_v23 }
 0xdbf   : > { %4712 = vmatprep.subr.bf16.mxu1 %v7985_v37 }
 0xdc2   : > { %4713 = vmatpush1.bf16.msra.mxu1 %v7983_v56 }
 0xdc3   : > { %4714 = vmatprep.subr.bf16.mxu1 %v7988_v29 }
 0xdc6   : > { %4715 = vmatpush1.bf16.msra.mxu1 %v7986_v61 }
 0xdc7   : > { %4716 = vmatprep.subr.bf16.mxu1 %v7991_v11 }
 0xdca   : > { %4717 = vmatpush1.bf16.msra.mxu1 %v7989_v38 }
 0xdcb   : > { %4718 = vmatprep.subr.bf16.mxu1 %v7994_v36 }
 0xdce   : > { %4719 = vmatpush1.bf16.msra.mxu1 %v7992_v19 }
 0xdcf   : > { %4720 = vmatprep.subr.bf16.mxu1 %v7997_v52 }
 0xdd2   : > { %4721 = vmatpush1.bf16.msra.mxu1 %v7995_v44 }
 0xdd3   : > { %4743 = vmatprep.subr.bf16.mxu1 %v8000_v51 }
 0xdd5   : > { %4723 = vmatmul.mubr.bf16.vlgmr.msra.gmra.mrb[100].mxu1 %v9618_v21  ;;  %v10650_v21 = vld [vmem:[#allocation14_spill] sm:$0xff] }
 0xdd6   : > { %4744 = vmatpush1.bf16.msra.mxu1 %v7998_v0  ;;  %4732 = vmatprep.mubr.bf16.mxu1 %v9625_v42  ;;  %v8154_v42 = vld [vmem:[%s10399_s3 + $0x4] ss:$12 sps:$4 sm:$0xff]  }
 0xdd7   : > { %4745 = vmatprep.subr.bf16.mxu1 %v8003_v27 }
 0xdda   : > { %4746 = vmatpush1.bf16.msra.mxu1 %v8001_v5 }
 0xddb   : > { %6438 = vmatprep.subr.msk.bf16.mxu1 %vm667_vm0, %v8004_v24 }
 0xddd   : > { %4733 = vmatmul.mubr.bf16.gmra.mrb[104].mxu1 %v9635_v35 }
 0xdde   : > { %4748 = vmatpush1.bf16.msra.mxu1 %v4685_v49  ;;  %4775 = vmatprep.mubr.bf16.mxu1 %v10541_v39 }
 0xddf   : > { %7303 = vmatprep.subr.bf16.mxu1 %v8572_v7 }
 0xde5   : > { %6439 = vmatmul.mubr.msk.bf16.vlgmr.msra.gmra.mrb[100].mxu1 %vm660_vm1, %v9643_v43 }
 0xde6   : > { %4785 = vmatprep.mubr.bf16.mxu1 %v10541_v39  ;;  %7305 = vmatpush3.bf16.msra.mxu1 %v8581_v10 }
 0xde7   : > { %7307 = vmatprep.subr.bf16.mxu1 %v8592_v14 }
 0xdea   : > { %7309 = vmatpush3.bf16.msra.mxu1 %v8600_v18 }
 0xdeb   : > { %7311 = vmatprep.subr.bf16.mxu1 %v8610_v22 }
 0xded   : > { %6440 = vmatmul.mubr.msk.bf16.gmra.mrb[104].mxu1 %vm660_vm1, %v9655_v48 }
 0xdee   : > { %7313 = vmatpush3.bf16.msra.mxu1 %v8618_v25 }
 0xdef   : > { %7315 = vmatprep.subr.bf16.mxu1 %v10553_v2 }
 0xdf2   : > { %7317 = vmatpush3.bf16.msra.mxu1 %v10554_v6 }
 0xdf3   : > { %7319 = vmatprep.subr.bf16.mxu1 %v10555_v53 }
 0xdf6   : > { %7321 = vmatpush3.bf16.msra.mxu1 %v10556_v32 }
 0xdf7   : > { %7323 = vmatprep.subr.bf16.mxu1 %v10557_v63 }
 0xdfa   : > { %7325 = vmatpush3.bf16.msra.mxu1 %v10621_v4 }
 0xdfb   : > { %7327 = vmatprep.subr.bf16.mxu1 %v10622_v46 }
 0xdfe   : > { %7329 = vmatpush3.bf16.msra.mxu1 %v10623_v57 }
 0xdff   : > { %7331 = vmatprep.subr.bf16.mxu1 %v10624_v47 }
 0xe02   : > { %7333 = vmatpush3.bf16.msra.mxu1 %v10650_v21 }
 0xe03   : > { %5459 = vmatprep.subr.bf16.mxu1 %v8154_v42 }
 0xe45   : > { %v6786_v35 = vpop.f32.mrb[66].mxu0 }
 0xe46   : > { %v6787_v43 = vpop.f32.mrb[67].mxu0 }
 0xe47   : > { %v6788_v48 = vadd.f32 %v6787_v43, %v6786_v35  ;;  %v10653_v35 = vld [vmem:[#allocation22_spill] sm:$0xff] }
 0xe49   : > { %v4384_v40 = vadd.f32 %v10651_v62, %v6788_v48 }
 0xe68   : > { %v4453_v9 = vpop.f32.mrb[82].mxu1 }
 0xe69   : > { %v4454_v17 = vadd.f32 %v4453_v9, %v4384_v40  ;;  %v6999_v55 = vpop.f32.mrb[83].mxu1 }
 0xe6a   : > { %v10654_v55 = vld [vmem:[#allocation23_spill] sm:$0xff] }
 0xe6b   : > { %v5760_v26 = vrot.slane %v4454_v17, 3 }
 0xe6d   : > { %v10100_v59 = vsel %vm5776_vm9, %v10652_v30, %v5760_v26  ;;  %v10655_v26 = vld [vmem:[#allocation27_spill] sm:$0xff]  ;;  %v10656_v30 = vld [vmem:[#allocation24_spill] sm:$0xff] }
 0xeb8   : > { %v4777_v41 = vpop.f32.mrb[100].mxu1 }
 0xeb9   : > { %v7446_v58 = vadd.f32 %v4777_v41, %v8486_v13  ;;  %v4779_v16 = vpop.f32.mrb[101].mxu1  ;;  %v10657_v41 = vld [vmem:[#allocation25_spill] sm:$0xff] }
 0xeba   : > { %v7447_v23 = vadd.f32 %v4779_v16, %v8486_v13  ;;  %v4781_v37 = vpop.f32.mrb[102].mxu1  ;;  %v10659_v16 = vld [vmem:[#allocation6_spill] sm:$0xff] }
 0xebb   : > { %v7448_v56 = vadd.f32 %v4781_v37, %v8488_v15  ;;  %v4783_v29 = vpop.f32.mrb[103].mxu1  ;;  %v4796_v11 = vmax.f32 %v7446_v58, 0.0  ;;  %v10658_v58 = vld [vmem:[#allocation5_spill] sm:$0xff]  ;;  %v10661_v37 = vld [vmem:[#allocation8_spill] sm:$0xff] }
 0xebc   : > { %v7449_v61 = vadd.f32 %v4783_v29, %v8488_v15  ;;  %v4797_v36 = vmax.f32 %v7447_v23, 0.0  ;;  %v10660_v23 = vld [vmem:[#allocation7_spill] sm:$0xff]  ;;  %v10663_v29 = vld [vmem:[#allocation16_spill] sm:$0xff] }
 0xebd   : > { %v4798_v38 = vmax.f32 %v7448_v56, 0.0  ;;  %v10662_v56 = vmov 0.0|0.0  }
 0xebe   : > { %v4799_v19 = vmax.f32 %v7449_v61, 0.0  ;;  %v10664_v61 = vld [vmem:[#allocation17_spill] sm:$0xff] }
 0xebf   : > { %v4804_v52 = vpack.c.bf16 %v4798_v38, %v4796_v11  ;;  %v10665_v11 = vld [vmem:[#allocation18_spill] sm:$0xff]  ;;  %v10666_v38 = vmov 0.0  }
 0xec0   : > { %v4805_v44 = vpack.c.bf16 %v4799_v19, %v4797_v36  ;;  %v4787_v51 = vpop.f32.mrb[104].mxu1  ;;  %v10667_v36 = vld [vmem:[#allocation19_spill] sm:$0xff]  ;;  %v8009_v19 = vld [vmem:[%s8347_s23 + $0x854] ss:$8 sps:$4 sm:$0xff]  }
 0xec1   : > { %v7450_v0 = vadd.f32 %v4787_v51, %v8492_v20  ;;  %v4789_v27 = vpop.f32.mrb[105].mxu1 }
 0xec2   : > { %v7451_v5 = vadd.f32 %v4789_v27, %v8492_v20  ;;  %v4791_v24 = vpop.f32.mrb[106].mxu1  ;;  %6441 = vmatprep.mubr.msk.bf16.mxu0 %vm936_vm2, %v4805_v44 }
 0xec3   : > { %v7452_v31 = vadd.f32 %v4791_v24, %v8496_v33  ;;  %v4793_v49 = vpop.f32.mrb[107].mxu1  ;;  %4847 = vmatmul.mubr.bf16.vlgmr.msra.gmra.mrb[76].mxu0 %v4804_v52  ;;  %v4800_v43 = vmax.f32 %v7450_v0, 0.0  ;;  %v10668_v0 = vld [vmem:[#allocation9_spill] sm:$0xff] }
 0xec4   : > { %v7453_v42 = vadd.f32 %v4793_v49, %v8496_v33  ;;  %4868 = vmatpush1.bf16.msra.mxu0 %v10653_v35  ;;  %v4801_v62 = vmax.f32 %v7451_v5, 0.0  ;;  %v10669_v5 = vld [vmem:[#allocation15_spill] sm:$0xff]  ;;  %v10670_v49 = vld [vmem:[#allocation10_spill] sm:$0xff] }
 0xec5   : > { %v4802_v48 = vmax.f32 %v7452_v31, 0.0  ;;  %4869 = vmatprep.subr.bf16.mxu0 %v10541_v39 }
 0xec6   : > { %v4803_v40 = vmax.f32 %v7453_v42, 0.0 }
 0xec7   : > { %v4806_v9 = vpack.c.bf16 %v4802_v48, %v4800_v43  ;;  %v10671_v43 = vld [vmem:[#allocation11_spill] sm:$0xff] }
 0xec8   : > { %v4807_v17 = vpack.c.bf16 %v4803_v40, %v4801_v62  ;;  %4870 = vmatpush1.bf16.msra.mxu0 %v10654_v55 }
 0xec9   : > { %4871 = vmatprep.subr.bf16.mxu0 %v10541_v39 }
 0xeca   : > { %6442 = vmatprep.mubr.msk.bf16.mxu0 %vm936_vm2, %v4807_v17 }
 0xecb   : > { %4857 = vmatmul.mubr.bf16.gmra.mrb[80].mxu0 %v4806_v9 }
 0xecc   : > { %4872 = vmatpush1.bf16.msra.mxu0 %v10655_v26  ;;  %6443 = vmatprep.mubr.msk.bf16.mxu0 %vm936_vm2, %v4805_v44 }
 0xecd   : > { %4873 = vmatprep.subr.bf16.mxu0 %v10541_v39 }
 0xed0   : > { %4874 = vmatpush1.bf16.msra.mxu0 %v10656_v30 }
 0xed1   : > { %4875 = vmatprep.subr.bf16.mxu0 %v10541_v39 }
 0xed4   : > { %4876 = vmatpush1.bf16.msra.mxu0 %v10657_v41 }
 0xed5   : > { %4877 = vmatprep.subr.bf16.mxu0 %v10541_v39 }
 0xed8   : > { %4878 = vmatpush1.bf16.msra.mxu0 %v10658_v58 }
 0xed9   : > { %4879 = vmatprep.subr.bf16.mxu0 %v10541_v39 }
 0xedc   : > { %4880 = vmatpush1.bf16.msra.mxu0 %v10659_v16 }
 0xedd   : > { %4881 = vmatprep.subr.bf16.mxu0 %v10541_v39 }
 0xee0   : > { %4882 = vmatpush1.bf16.msra.mxu0 %v10660_v23 }
 0xee1   : > { %4883 = vmatprep.subr.bf16.mxu0 %v10541_v39 }
 0xee4   : > { %4884 = vmatpush1.bf16.msra.mxu0 %v10661_v37 }
 0xee5   : > { %7334 = vmatprep.subr.bf16.mxu0 %v10662_v56 }
 0xee7   : > { %4900 = vmatmul.mubr.bf16.vlgmr.msra.gmra.mrb[84].mxu0 %v4804_v52 }
 0xee8   : > { %6444 = vmatprep.mubr.msk.bf16.mxu0 %vm936_vm2, %v4807_v17  ;;  %7336 = vmatpush3.bf16.msra.mxu0 %v10663_v29  ;;  %v10672_v17 = vld [vmem:[#allocation12_spill] sm:$0xff] }
 0xee9   : > { %7337 = vmatprep.subr.bf16.mxu0 %v10662_v56 }
 0xeec   : > { %7339 = vmatpush3.bf16.msra.mxu0 %v10664_v61 }
 0xeed   : > { %7340 = vmatprep.subr.bf16.mxu0 %v10662_v56 }
 0xeef   : > { %4908 = vmatmul.mubr.bf16.gmra.mrb[88].mxu0 %v4806_v9 }
 0xef0   : > { %7342 = vmatpush3.bf16.msra.mxu0 %v10665_v11  ;;  %7016 = vmatprep.mubr.msk.f32.mxu0 %vm8240_vm3, %v10666_v38  ;;  %v10673_v11 = vld [vmem:[#allocation13_spill] sm:$0xff] }
 0xef1   : > { %7343 = vmatprep.subr.bf16.mxu0 %v10662_v56  ;;  %v10674_v56 = vld [vmem:[#allocation28_spill] sm:$0xff] }
 0xef4   : > { %7345 = vmatpush3.bf16.msra.mxu0 %v10667_v36 }
 0xef5   : > { %5335 = vmatprep.subr.bf16.mxu0 %v8009_v19 }
 0xf96   : > { %v4848_v52 = vpop.f32.mrb[76].mxu0 }
 0xf97   : > { %v4850_v44 = vpop.f32.mrb[77].mxu0  ;;  %v4916_v27 = vmul.f32 %v10668_v0, %v4848_v52 }
 0xf98   : > { %v4852_v51 = vpop.f32.mrb[78].mxu0  ;;  %v4917_v42 = vmul.f32 %v10670_v49, %v4850_v44 }
 0xf99   : > { %v4919_v24 = vmul.f32 %v10669_v5, %v4852_v51  ;;  %v4854_v31 = vpop.f32.mrb[79].mxu0 }
 0xf9a   : > { %v4920_v48 = vmul.f32 %v10671_v43, %v4854_v31 }
 0xf9b   : > { %v4928_v62 = vadd.f32 %v4919_v24, %v4916_v27 }
 0xf9c   : > { %v4937_v40 = vadd.f32 %v4920_v48, %v4917_v42 }
 0xf9e   : > { %v4858_v9 = vpop.f32.mrb[80].mxu0 }
 0xf9f   : > { %v4922_v38 = vmul.f32 %v10672_v17, %v4858_v9  ;;  %v4860_v36 = vpop.f32.mrb[81].mxu0 }
 0xfa0   : > { %v4923_v19 = vmul.f32 %v10673_v11, %v4860_v36  ;;  %v4862_v61 = vpop.f32.mrb[82].mxu0 }
 0xfa1   : > { %v4929_v29 = vadd.f32 %v4928_v62, %v4922_v38  ;;  %v4925_v37 = vmul.f32 %v10674_v56, %v4862_v61  ;;  %v4864_v52 = vpop.f32.mrb[83].mxu0  ;;  %v8155_v61 = vld [vmem:[%s10399_s3] ss:$12 sps:$4 sm:$0xff]   ;;  %v8159_v62 = vld [vmem:[%s10399_s3 + $0x30] ss:$12 sps:$4 sm:$0xff]  }
 0xfa2   : > { %v4938_v0 = vadd.f32 %v4937_v40, %v4923_v19  ;;  %v4926_v51 = vmul.f32 %v9985_v34, %v4864_v52  ;;  %v8160_v19 = vld [vmem:[%s10399_s3 + $0x4c] ss:$12 sps:$4 sm:$0xff]  }
 0xfa3   : > { %v4930_v5 = vadd.f32 %v4929_v29, %v4925_v37  ;;  %v8156_v37 = vld [vmem:[%s10399_s3 + $0x1c] ss:$12 sps:$4 sm:$0xff]   ;;  %v8157_v29 = vld [vmem:[%s10399_s3 + $0x18] ss:$12 sps:$4 sm:$0xff]  }
 0xfa4   : > { %v4939_v44 = vadd.f32 %v4938_v0, %v4926_v51 }
 0xfa5   : > { %v4931_v49 = vrot.slane %v4930_v5, 4 }
 0xfa6   : > { %v4940_v31 = vrot.slane %v4939_v44, 4 }
 0xfa7   : > { %v4932_v27 = vadd.f32 %v4931_v49, %v4930_v5 }
 0xfa8   : > { %v4941_v24 = vadd.f32 %v4940_v31, %v4939_v44  ;;  %v8161_v31 = vld [vmem:[%s10399_s3 + $0x48] ss:$12 sps:$4 sm:$0xff]  }
 0xfa9   : > { %v4933_v42 = vrot.slane %v4932_v27, 2 }
 0xfaa   : > { %v4942_v48 = vrot.slane %v4941_v24, 2 }
 0xfab   : > { %v4934_v9 = vadd.f32 %v4933_v42, %v4932_v27  ;;  %v8162_v27 = vld [vmem:[%s10399_s3 + $0x64] ss:$12 sps:$4 sm:$0xff]  }
 0xfac   : > { %v4943_v17 = vadd.f32 %v4942_v48, %v4941_v24  ;;  %v10181_v42 = vld [vmem:[%s10400_s4 + $0x40] sm:$0xff] }
 0xfad   : > { %v4935_v43 = vrot.slane %v4934_v9, 1 }
 0xfae   : > { %v4944_v36 = vrot.slane %v4943_v17, 1 }
 0xfaf   : > { %v4936_v38 = vadd.f32 %v4935_v43, %v4934_v9 }
 0xfb0   : > { %v4945_v11 = vadd.f32 %v4944_v36, %v4943_v17 }
 0xfb2   : > { %5026 = vmatprep.mubr.f32.mxu1 %v4945_v11  ;;  %v8158_v11 = vld [vmem:[%s10399_s3 + $0x34] ss:$12 sps:$4 sm:$0xff]  }
 0xfb3   : > { %5027 = vmatmul.mubr.f32.vlgmr.msra.gmra.mrb[108].mxu1 %v4936_v38  ;;  %v8164_v38 = vld [vmem:[%s10399_s3 + $0x60] ss:$12 sps:$4 sm:$0xff]  }
 0xfb4   : > { %5460 = vmatpush1.bf16.msra.mxu1 %v8155_v61 }
 0xfb5   : > { %5461 = vmatprep.subr.bf16.mxu1 %v8156_v37 }
 0xfb8   : > { %5462 = vmatpush1.bf16.msra.mxu1 %v8157_v29 }
 0xfb9   : > { %5463 = vmatprep.subr.bf16.mxu1 %v8158_v11  ;;  %v8165_v11 = vld [vmem:[%s10399_s3 + $0x7c] ss:$12 sps:$4 sm:$0xff]  }
 0xfba   : > { %v4901_v0 = vpop.f32.mrb[84].mxu0 }
 0xfbb   : > { %v4918_v5 = vmul.f32 %v9995_v28, %v4901_v0  ;;  %v4903_v49 = vpop.f32.mrb[85].mxu0 }
 0xfbc   : > { %v4904_v43 = vpop.f32.mrb[86].mxu0  ;;  %5464 = vmatpush1.bf16.msra.mxu1 %v8159_v62 }
 0xfbd   : > { %v4921_v40 = vmul.f32 %v10002_v12, %v4904_v43  ;;  %v4906_v17 = vpop.f32.mrb[87].mxu0  ;;  %5465 = vmatprep.subr.bf16.mxu1 %v8160_v19  ;;  %v4946_v52 = vsel %vm1075_vm4, %v4918_v5, 0.0  ;;  %v8166_v43 = vld [vmem:[%s10399_s3 + $0x78] ss:$12 sps:$4 sm:$0xff]  }
 0xfbf   : > { %v4947_v51 = vsel %vm1075_vm4, %v4921_v40, 0.0 }
 0xfc0   : > { %v4948_v44 = vadd.f32 %v4947_v51, %v4946_v52  ;;  %5466 = vmatpush1.bf16.msra.mxu1 %v8161_v31  ;;  %v8007_v51 = vld [vmem:[%s8347_s23 + $0x850] ss:$8 sps:$4 sm:$0xff]   ;;  %v8016_v31 = vld [vmem:[%s8347_s23 + $0x880] ss:$8 sps:$4 sm:$0xff]  }
 0xfc1   : > { %5467 = vmatprep.subr.bf16.mxu1 %v8162_v27  ;;  %v8021_v27 = vld [vmem:[%s8347_s23 + $0x894] ss:$8 sps:$4 sm:$0xff]  }
 0xfc2   : > { %v4909_v24 = vpop.f32.mrb[88].mxu0 }
 0xfc3   : > { %v4924_v48 = vmul.f32 %v10181_v42, %v4909_v24  ;;  %v4911_v9 = vpop.f32.mrb[89].mxu0  ;;  %v8019_v24 = vld [vmem:[%s8347_s23 + $0x890] ss:$8 sps:$4 sm:$0xff]  }
 0xfc4   : > { %v4912_v36 = vpop.f32.mrb[90].mxu0  ;;  %5468 = vmatpush1.bf16.msra.mxu1 %v8164_v38  ;;  %v8022_v9 = vld [vmem:[%s8347_s23 + $0x8a0] ss:$8 sps:$4 sm:$0xff]   ;;  %v8025_v38 = vld [vmem:[%s8347_s23 + $0x8b0] ss:$8 sps:$4 sm:$0xff]  }
 0xfc5   : > { %v4949_v61 = vsel %vm1075_vm4, %v4924_v48, 0.0  ;;  %v4927_v37 = vmul.f32 %v10016_v60, %v4912_v36  ;;  %v4914_v29 = vpop.f32.mrb[91].mxu0  ;;  %5469 = vmatprep.subr.bf16.mxu1 %v8165_v11  ;;  %v8024_v48 = vld [vmem:[%s8347_s23 + $0x8a4] ss:$8 sps:$4 sm:$0xff]   ;;  %v8027_v36 = vld [vmem:[%s8347_s23 + $0x8b4] ss:$8 sps:$4 sm:$0xff]  }
 0xfc6   : > { %v4950_v0 = vadd.f32 %v4949_v61, %v4948_v44  ;;  %v8030_v61 = vld [vmem:[%s8347_s23 + $0x8c4] ss:$8 sps:$4 sm:$0xff]   ;;  %v8033_v29 = vld [vmem:[%s8347_s23 + $0x8d4] ss:$8 sps:$4 sm:$0xff]   ;;  %v8031_v11 = vld [vmem:[%s8347_s23 + $0x8d0] ss:$8 sps:$4 sm:$0xff]  }
 0xfc7   : > { %v4951_v5 = vsel %vm1075_vm4, %v4927_v37, 0.0  ;;  %v8028_v37 = vld [vmem:[%s8347_s23 + $0x8c0] ss:$8 sps:$4 sm:$0xff]  }
 0xfc8   : > { %v4952_v49 = vadd.f32 %v4951_v5, %v4950_v0  ;;  %5470 = vmatpush1.bf16.msra.mxu1 %v8166_v43  ;;  %v8036_v0 = vld [vmem:[%s8347_s23 + $0x8e4] ss:$8 sps:$4 sm:$0xff]   ;;  %v8034_v5 = vld [vmem:[%s8347_s23 + $0x8e0] ss:$8 sps:$4 sm:$0xff]   ;;  %v8037_v43 = vld [vmem:[%s8347_s23 + $0x8f0] ss:$8 sps:$4 sm:$0xff]  }
 0xfc9   : > { %5471 = vmatprep.subr.bf16.mxu1 %v9750_v3  ;;  %v8012_v3 = vld [vmem:[%s8347_s23 + $0x864] ss:$8 sps:$4 sm:$0xff]  }
 0xfca   : > { %v4953_v62 = vrot.slane %v4952_v49, 4 }
 0xfcc   : > { %v4954_v40 = vadd.f32 %v4953_v62, %v4952_v49  ;;  %5472 = vmatpush1.bf16.msra.mxu1 %v9756_v1  ;;  %v8010_v1 = vld [vmem:[%s8347_s23 + $0x860] ss:$8 sps:$4 sm:$0xff]   ;;  %v8039_v49 = vld [vmem:[%s8347_s23 + $0x8f4] ss:$8 sps:$4 sm:$0xff]   ;;  %v8042_v62 = vld [vmem:[%s8347_s23 + $0x904] ss:$8 sps:$4 sm:$0xff]  }
 0xfcd   : > { %5473 = vmatprep.subr.bf16.mxu1 %v9762_v54  ;;  %v8167_v54 = vld [vmem:[%s10397_s1 + $0x4] ss:$12 sps:$4 sm:$0xff]  }
 0xfce   : > { %v4955_v17 = vrot.slane %v4954_v40, 2 }
 0xfd0   : > { %v4956_v19 = vadd.f32 %v4955_v17, %v4954_v40  ;;  %5474 = vmatpush1.bf16.msra.mxu1 %v9768_v45  ;;  %v8015_v45 = vld [vmem:[%s8347_s23 + $0x874] ss:$8 sps:$4 sm:$0xff]   ;;  %v8040_v40 = vld [vmem:[%s8347_s23 + $0x900] ss:$8 sps:$4 sm:$0xff]  }
 0xfd1   : > { %5475 = vmatprep.subr.bf16.mxu1 %v9774_v50  ;;  %v8013_v50 = vld [vmem:[%s8347_s23 + $0x870] ss:$8 sps:$4 sm:$0xff]   ;;  %v8045_v17 = vld [vmem:[%s8347_s23 + $0x914] ss:$8 sps:$4 sm:$0xff]  }
 0xfd2   : > { %v4957_v52 = vrot.slane %v4956_v19, 1 }
 0xfd4   : > { %v4958_v44 = vadd.f32 %v4957_v52, %v4956_v19  ;;  %5476 = vmatpush1.bf16.msra.mxu1 %v9782_v8  ;;  %v8018_v8 = vld [vmem:[%s8347_s23 + $0x884] ss:$8 sps:$4 sm:$0xff]   ;;  %v8043_v19 = vld [vmem:[%s8347_s23 + $0x910] ss:$8 sps:$4 sm:$0xff]  }
 0xfd5   : > { %5512 = vmatprep.subr.bf16.mxu1 %v10541_v39  ;;  %v8048_v52 = vld [vmem:[%s8347_s23 + $0x924] ss:$8 sps:$4 sm:$0xff]  }
 0xfd6   : > { %7017 = vmatmul.mubr.msk.f32.vlgmr.msra.gmra.mrb[92].mxu0 %vm1075_vm4, %v4958_v44  ;;  %v8051_v44 = vld [vmem:[%s8347_s23 + $0x934] ss:$8 sps:$4 sm:$0xff]  }
 0xfd7   : > { %5336 = vmatpush1.bf16.msra.mxu0 %v8007_v51  ;;  %5367 = vmatprep.mubr.bf16.mxu0 %v8167_v54  ;;  %v8046_v51 = vld [vmem:[%s8347_s23 + $0x920] ss:$8 sps:$4 sm:$0xff]  }
 0xfd8   : > { %5337 = vmatprep.subr.bf16.mxu0 %v8012_v3  ;;  %v8049_v3 = vld [vmem:[%s8347_s23 + $0x930] ss:$8 sps:$4 sm:$0xff]   ;;  %v8052_v54 = vld [vmem:[%s8347_s23 + $0x940] ss:$8 sps:$4 sm:$0xff]  }
 0xfdb   : > { %5338 = vmatpush1.bf16.msra.mxu0 %v8010_v1  ;;  %v8054_v1 = vld [vmem:[%s8347_s23 + $0x944] ss:$8 sps:$4 sm:$0xff]  }
 0xfdc   : > { %5339 = vmatprep.subr.bf16.mxu0 %v8015_v45  ;;  %v8057_v45 = vld [vmem:[%s8347_s23 + $0x954] ss:$8 sps:$4 sm:$0xff]  }
 0xfdf   : > { %5340 = vmatpush1.bf16.msra.mxu0 %v8013_v50  ;;  %v8055_v50 = vld [vmem:[%s8347_s23 + $0x950] ss:$8 sps:$4 sm:$0xff]  }
 0xfe0   : > { %5341 = vmatprep.subr.bf16.mxu0 %v8018_v8  ;;  %v8060_v8 = vld [vmem:[%s8347_s23 + $0x964] ss:$8 sps:$4 sm:$0xff]  }
 0xfe3   : > { %5342 = vmatpush1.bf16.msra.mxu0 %v8016_v31  ;;  %v8168_v31 = vld [vmem:[%s10397_s1] ss:$12 sps:$4 sm:$0xff]  }
 0xfe4   : > { %5343 = vmatprep.subr.bf16.mxu0 %v8021_v27  ;;  %v8058_v27 = vld [vmem:[%s8347_s23 + $0x960] ss:$8 sps:$4 sm:$0xff]  }
 0xfe7   : > { %5344 = vmatpush1.bf16.msra.mxu0 %v8019_v24  ;;  %v8169_v24 = vld [vmem:[%s10397_s1 + $0x1c] ss:$12 sps:$4 sm:$0xff]  }
 0xfe8   : > { %5345 = vmatprep.subr.bf16.mxu0 %v8024_v48  ;;  %v8061_v48 = vld [vmem:[%s8347_s23 + $0x974] ss:$8 sps:$4 sm:$0x3f]  }
 0xfeb   : > { %5346 = vmatpush1.bf16.msra.mxu0 %v8022_v9  ;;  %v8063_v9 = vld [vmem:[%s8347_s23 + $0x970] ss:$8 sps:$4 sm:$0x3f]   ;;  %s8178_s23 = sshll.u32 %s8242_s22, 4  ;;  %s8179_s23 = int_to_ptr.vmem [resolvable:$false] %s8178_s23 }
 0xfec   : > { %5347 = vmatprep.subr.bf16.mxu0 %v8027_v36  ;;  %v5330_v36 = vsel %vm667_vm0, %v8063_v9, 0  ;;  %v10684_v9 = vld [vmem:[#allocation10_spill] sm:$0xff]  ;;  %s8180_s29 = scalar_lea.vmem %s8179_s23, 256  ;;  %p8181_p0 = scmp.lt.s32.totalorder %s10355_s17, %s8179_s23 }
 0xfed   : > { %p8182_p1 = scmp.lt.s32.totalorder %s8180_s29, %s8174_s28 }
 0xfef   : > { %5348 = vmatpush1.bf16.msra.mxu0 %v8025_v38  ;;  %v8170_v38 = vld [vmem:[%s10397_s1 + $0x18] ss:$12 sps:$4 sm:$0xff]   ;;  %p8183_p2 = por %p8182_p1, %p8181_p0 }
 0xff0   : > { %5349 = vmatprep.subr.bf16.mxu0 %v8030_v61  ;;  %v8171_v61 = vld [vmem:[%s10397_s1 + $0x8] ss:$12 sps:$4 sm:$0xff]  }
 0xff1   : > { %p8184_p3 = pnand %p8183_p2, %p8177_p13 }
 0xff3   : > { %5350 = vmatpush1.bf16.msra.mxu0 %v8028_v37 }
 0xff4   : > { %5351 = vmatprep.subr.bf16.mxu0 %v8033_v29 }
 0xff7   : > { %5352 = vmatpush1.bf16.msra.mxu0 %v8031_v11 }
 0xff8   : > { %5353 = vmatprep.subr.bf16.mxu0 %v8036_v0 }
 0xffb   : > { %5354 = vmatpush1.bf16.msra.mxu0 %v8034_v5 }
 0xffc   : > { %5355 = vmatprep.subr.bf16.mxu0 %v8039_v49 }
 0xfff   : > { %5356 = vmatpush1.bf16.msra.mxu0 %v8037_v43 }
0x1000   : > { %5357 = vmatprep.subr.bf16.mxu0 %v8042_v62 }
0x1003   : > { %5358 = vmatpush1.bf16.msra.mxu0 %v8040_v40 }
0x1004   : > { %5359 = vmatprep.subr.bf16.mxu0 %v8045_v17 }
0x1007   : > { %5360 = vmatpush1.bf16.msra.mxu0 %v8043_v19 }
0x1008   : > { %5361 = vmatprep.subr.bf16.mxu0 %v8048_v52 }
0x100b   : > { %5362 = vmatpush1.bf16.msra.mxu0 %v8046_v51 }
0x100c   : > { %5363 = vmatprep.subr.bf16.mxu0 %v8051_v44 }
0x100f   : > { %5364 = vmatpush1.bf16.msra.mxu0 %v8049_v3 }
0x1010   : > { %5365 = vmatprep.subr.bf16.mxu0 %v8054_v1 }
0x1013   : > { %5366 = vmatpush1.bf16.msra.mxu0 %v8052_v54 }
0x1014   : > { %5388 = vmatprep.subr.bf16.mxu0 %v8057_v45 }
0x1016   : > { %5368 = vmatmul.mubr.bf16.vlgmr.msra.gmra.mrb[96].mxu0 %v8168_v31 }
0x1017   : > { %5389 = vmatpush1.bf16.msra.mxu0 %v8055_v50  ;;  %5377 = vmatprep.mubr.bf16.mxu0 %v8169_v24 }
0x1018   : > { %5390 = vmatprep.subr.bf16.mxu0 %v8060_v8 }
0x101b   : > { %5391 = vmatpush1.bf16.msra.mxu0 %v8058_v27  ;;  %v10683_v27 = vld [vmem:[#allocation15_spill] sm:$0xff] }
0x101c   : > { %6522 = vmatprep.subr.msk.bf16.mxu0 %vm667_vm0, %v8061_v48 }
0x101e   : > { %5378 = vmatmul.mubr.bf16.gmra.mrb[100].mxu0 %v8170_v38  ;;  %v10685_v38 = vld [vmem:[#allocation11_spill] sm:$0xff] }
0x101f   : > { %5393 = vmatpush1.bf16.msra.mxu0 %v5330_v36  ;;  %5420 = vmatprep.mubr.bf16.mxu0 %v10541_v39 }
0x1020   : > { %7347 = vmatprep.subr.bf16.mxu0 %v8572_v7  ;;  %v8172_v7 = vld [vmem:[%s10397_s1 + $0x20] ss:$12 sps:$4 sm:$0xff]  }
0x1026   : > { %6523 = vmatmul.mubr.msk.bf16.vlgmr.msra.gmra.mrb[96].mxu0 %vm660_vm1, %v8171_v61 }
0x1027   : > { %5430 = vmatprep.mubr.bf16.mxu0 %v10541_v39  ;;  %7349 = vmatpush3.bf16.msra.mxu0 %v8581_v10 }
0x1028   : > { %7351 = vmatprep.subr.bf16.mxu0 %v8592_v14 }
0x102b   : > { %7353 = vmatpush3.bf16.msra.mxu0 %v8600_v18 }
0x102c   : > { %7355 = vmatprep.subr.bf16.mxu0 %v8610_v22  ;;  %v10284_v22 = vld [vmem:[%s10402_s6] sm:$0x1] }
0x102e   : > { %6524 = vmatmul.mubr.msk.bf16.gmra.mrb[100].mxu0 %vm660_vm1, %v8172_v7 }
0x102f   : > { %7357 = vmatpush3.bf16.msra.mxu0 %v8618_v25 }
0x1030   : > { %7359 = vmatprep.subr.bf16.mxu0 %v10553_v2 }
0x1033   : > { %7361 = vmatpush3.bf16.msra.mxu0 %v10554_v6 }
0x1034   : > { %7363 = vmatprep.subr.bf16.mxu0 %v10555_v53 }
0x1037   : > { %7365 = vmatpush3.bf16.msra.mxu0 %v10556_v32 }
0x1038   : > { %7367 = vmatprep.subr.bf16.mxu0 %v10557_v63 }
0x103b   : > { %7369 = vmatpush3.bf16.msra.mxu0 %v10621_v4 }
0x103c   : > { %7371 = vmatprep.subr.bf16.mxu0 %v10622_v46 }
0x103f   : > { %7373 = vmatpush3.bf16.msra.mxu0 %v10623_v57 }
0x1040   : > { %7375 = vmatprep.subr.bf16.mxu0 %v10624_v47 }
0x1043   : > { %7377 = vmatpush3.bf16.msra.mxu0 %v10650_v21 }
0x1086   : > { %v6830_v10 = vpop.f32.mrb[108].mxu1 }
0x1087   : > { %v6831_v14 = vpop.f32.mrb[109].mxu1 }
0x1088   : > { %v6832_v18 = vadd.f32 %v6831_v14, %v6830_v10 }
0x108a   : > { %v5029_v25 = vadd.f32 %v10284_v22, %v6832_v18  ;;  %v10686_v18 = vld [vmem:[#allocation12_spill] sm:$0xff] }
0x10a9   : > { %v5098_v2 = vpop.f32.mrb[92].mxu0 }
0x10aa   : > { %v5099_v6 = vadd.f32 %v5098_v2, %v5029_v25  ;;  %v7018_v53 = vpop.f32.mrb[93].mxu0 }
0x10ac   : > { %v5763_v32 = vrot.slane %v5099_v6, 2  ;;  %v10687_v6 = vld [vmem:[#allocation13_spill] sm:$0xff] }
0x10ae   : > { %v10289_v63 = vsel %vm667_vm0, %v10100_v59, %v5763_v32 }
0x10f9   : > { %v5422_v4 = vpop.f32.mrb[96].mxu0 }
0x10fa   : > { %v7454_v46 = vadd.f32 %v5422_v4, %v8486_v13  ;;  %v5424_v57 = vpop.f32.mrb[97].mxu0 }
0x10fb   : > { %v7455_v47 = vadd.f32 %v5424_v57, %v8486_v13  ;;  %v5426_v21 = vpop.f32.mrb[98].mxu0 }
0x10fc   : > { %v7456_v37 = vadd.f32 %v5426_v21, %v8488_v15  ;;  %v5428_v29 = vpop.f32.mrb[99].mxu0  ;;  %v5441_v0 = vmax.f32 %v7454_v46, 0.0 }
0x10fd   : > { %v7457_v11 = vadd.f32 %v5428_v29, %v8488_v15  ;;  %v5442_v49 = vmax.f32 %v7455_v47, 0.0 }
0x10fe   : > { %v5443_v5 = vmax.f32 %v7456_v37, 0.0 }
0x10ff   : > { %v5444_v43 = vmax.f32 %v7457_v11, 0.0 }
0x1100   : > { %v5449_v62 = vpack.c.bf16 %v5443_v5, %v5441_v0 }
0x1101   : > { %v5450_v40 = vpack.c.bf16 %v5444_v43, %v5442_v49  ;;  %v5432_v59 = vpop.f32.mrb[100].mxu0 }
0x1102   : > { %v7458_v17 = vadd.f32 %v5432_v59, %v8492_v20  ;;  %v5434_v19 = vpop.f32.mrb[101].mxu0 }
0x1103   : > { %v7459_v52 = vadd.f32 %v5434_v19, %v8492_v20  ;;  %v5436_v51 = vpop.f32.mrb[102].mxu0  ;;  %6525 = vmatprep.mubr.msk.bf16.mxu1 %vm936_vm2, %v5450_v40  ;;  %v10675_v20 = vld [vmem:[#allocation8_spill] sm:$0xff] }
0x1104   : > { %v7460_v13 = vadd.f32 %v5436_v51, %v8496_v33  ;;  %v5438_v44 = vpop.f32.mrb[103].mxu0  ;;  %5492 = vmatmul.mubr.bf16.vlgmr.msra.gmra.mrb[112].mxu1 %v5449_v62  ;;  %v5445_v3 = vmax.f32 %v7458_v17, 0.0 }
0x1105   : > { %v7461_v15 = vadd.f32 %v5438_v44, %v8496_v33  ;;  %5513 = vmatpush1.bf16.msra.mxu1 %v10653_v35  ;;  %v5446_v54 = vmax.f32 %v7459_v52, 0.0  ;;  %v10676_v33 = vmov 0.0|0.0   ;;  %v10677_v35 = vld [vmem:[#allocation16_spill] sm:$0xff] }
0x1106   : > { %v5447_v1 = vmax.f32 %v7460_v13, 0.0  ;;  %5514 = vmatprep.subr.bf16.mxu1 %v10541_v39 }
0x1107   : > { %v5448_v45 = vmax.f32 %v7461_v15, 0.0 }
0x1108   : > { %v5451_v50 = vpack.c.bf16 %v5447_v1, %v5445_v3 }
0x1109   : > { %v5452_v8 = vpack.c.bf16 %v5448_v45, %v5446_v54  ;;  %5515 = vmatpush1.bf16.msra.mxu1 %v10654_v55  ;;  %v10678_v55 = vld [vmem:[#allocation17_spill] sm:$0xff] }
0x110a   : > { %5516 = vmatprep.subr.bf16.mxu1 %v10541_v39 }
0x110b   : > { %6526 = vmatprep.mubr.msk.bf16.mxu1 %vm936_vm2, %v5452_v8 }
0x110c   : > { %5502 = vmatmul.mubr.bf16.gmra.mrb[116].mxu1 %v5451_v50 }
0x110d   : > { %5517 = vmatpush1.bf16.msra.mxu1 %v10655_v26  ;;  %6527 = vmatprep.mubr.msk.bf16.mxu1 %vm936_vm2, %v5450_v40  ;;  %v10679_v26 = vld [vmem:[#allocation18_spill] sm:$0xff] }
0x110e   : > { %5518 = vmatprep.subr.bf16.mxu1 %v10541_v39 }
0x1111   : > { %5519 = vmatpush1.bf16.msra.mxu1 %v10656_v30  ;;  %v10680_v30 = vmov 0.0  }
0x1112   : > { %5520 = vmatprep.subr.bf16.mxu1 %v10541_v39 }
0x1115   : > { %5521 = vmatpush1.bf16.msra.mxu1 %v10657_v41 }
0x1116   : > { %5522 = vmatprep.subr.bf16.mxu1 %v10541_v39 }
0x1119   : > { %5523 = vmatpush1.bf16.msra.mxu1 %v10658_v58 }
0x111a   : > { %5524 = vmatprep.subr.bf16.mxu1 %v10541_v39 }
0x111d   : > { %5525 = vmatpush1.bf16.msra.mxu1 %v10659_v16 }
0x111e   : > { %5526 = vmatprep.subr.bf16.mxu1 %v10541_v39 }
0x1121   : > { %5527 = vmatpush1.bf16.msra.mxu1 %v10660_v23  ;;  %v10682_v23 = vld [vmem:[#allocation9_spill] sm:$0xff] }
0x1122   : > { %5528 = vmatprep.subr.bf16.mxu1 %v10541_v39  ;;  %v10681_v39 = vld [vmem:[#allocation19_spill] sm:$0xff] }
0x1125   : > { %5529 = vmatpush1.bf16.msra.mxu1 %v10675_v20 }
0x1126   : > { %7378 = vmatprep.subr.bf16.mxu1 %v10676_v33 }
0x1128   : > { %5545 = vmatmul.mubr.bf16.vlgmr.msra.gmra.mrb[120].mxu1 %v5449_v62 }
0x1129   : > { %6528 = vmatprep.mubr.msk.bf16.mxu1 %vm936_vm2, %v5452_v8  ;;  %7380 = vmatpush3.bf16.msra.mxu1 %v10677_v35 }
0x112a   : > { %7381 = vmatprep.subr.bf16.mxu1 %v10676_v33 }
0x112d   : > { %7383 = vmatpush3.bf16.msra.mxu1 %v10678_v55 }
0x112e   : > { %7384 = vmatprep.subr.bf16.mxu1 %v10676_v33 }
0x1130   : > { %5553 = vmatmul.mubr.bf16.gmra.mrb[124].mxu1 %v5451_v50 }
0x1131   : > { %7386 = vmatpush3.bf16.msra.mxu1 %v10679_v26  ;;  %7035 = vmatprep.mubr.msk.f32.mxu1 %vm8240_vm3, %v10680_v30 }
0x1132   : > { %7387 = vmatprep.subr.bf16.mxu1 %v10676_v33 }
0x1135   : > { %7389 = vmatpush3.bf16.msra.mxu1 %v10681_v39 }
0x11d7   : > { %v5493_v41 = vpop.f32.mrb[112].mxu1 }
0x11d8   : > { %v5495_v58 = vpop.f32.mrb[113].mxu1  ;;  %v5561_v31 = vmul.f32 %v10682_v23, %v5493_v41 }
0x11d9   : > { %v5497_v16 = vpop.f32.mrb[114].mxu1  ;;  %v5562_v36 = vmul.f32 %v10684_v9, %v5495_v58 }
0x11da   : > { %v5564_v24 = vmul.f32 %v10683_v27, %v5497_v16  ;;  %v5499_v48 = vpop.f32.mrb[115].mxu1 }
0x11db   : > { %v5565_v61 = vmul.f32 %v10685_v38, %v5499_v48 }
0x11dc   : > { %v5573_v7 = vadd.f32 %v5564_v24, %v5561_v31 }
0x11dd   : > { %v5582_v10 = vadd.f32 %v5565_v61, %v5562_v36 }
0x11df   : > { %v5503_v14 = vpop.f32.mrb[116].mxu1 }
0x11e0   : > { %v5567_v25 = vmul.f32 %v10686_v18, %v5503_v14  ;;  %v5505_v2 = vpop.f32.mrb[117].mxu1 }
0x11e1   : > { %v5568_v53 = vmul.f32 %v10687_v6, %v5505_v2  ;;  %v5507_v32 = vpop.f32.mrb[118].mxu1 }
0x11e2   : > { %v5574_v4 = vadd.f32 %v5573_v7, %v5567_v25  ;;  %v5570_v46 = vmul.f32 %v10674_v56, %v5507_v32  ;;  %v5509_v57 = vpop.f32.mrb[119].mxu1 }
0x11e3   : > { %v5583_v47 = vadd.f32 %v5582_v10, %v5568_v53  ;;  %v5571_v21 = vmul.f32 %v9985_v34, %v5509_v57 }
0x11e4   : > { %v5575_v37 = vadd.f32 %v5574_v4, %v5570_v46 }
0x11e5   : > { %v5584_v29 = vadd.f32 %v5583_v47, %v5571_v21 }
0x11e6   : > { %v5576_v11 = vrot.slane %v5575_v37, 4 }
0x11e7   : > { %v5585_v0 = vrot.slane %v5584_v29, 4 }
0x11e8   : > { %v5577_v5 = vadd.f32 %v5576_v11, %v5575_v37 }
0x11e9   : > { %v5586_v49 = vadd.f32 %v5585_v0, %v5584_v29 }
0x11ea   : > { %v5578_v43 = vrot.slane %v5577_v5, 2 }
0x11eb   : > { %v5587_v62 = vrot.slane %v5586_v49, 2 }
0x11ec   : > { %v5579_v40 = vadd.f32 %v5578_v43, %v5577_v5 }
0x11ed   : > { %v5588_v59 = vadd.f32 %v5587_v62, %v5586_v49 }
0x11ee   : > { %v5580_v17 = vrot.slane %v5579_v40, 1 }
0x11ef   : > { %v5589_v19 = vrot.slane %v5588_v59, 1 }
0x11f0   : > { %v5581_v51 = vadd.f32 %v5580_v17, %v5579_v40 }
0x11f1   : > { %v5590_v52 = vadd.f32 %v5589_v19, %v5588_v59 }
0x11f3   : > { %5671 = vmatprep.mubr.f32.mxu0 %v5590_v52 }
0x11f4   : > { %5672 = vmatmul.mubr.f32.vlgmr.msra.gmra.mrb[94].mxu0 %v5581_v51 }
0x11fb   : > { %v5546_v56 = vpop.f32.mrb[120].mxu1 }
0x11fc   : > { %v5563_v13 = vmul.f32 %v9995_v28, %v5546_v56  ;;  %v5548_v34 = vpop.f32.mrb[121].mxu1 }
0x11fd   : > { %v5549_v44 = vpop.f32.mrb[122].mxu1 }
0x11fe   : > { %v5566_v15 = vmul.f32 %v10002_v12, %v5549_v44  ;;  %v5551_v3 = vpop.f32.mrb[123].mxu1  ;;  %v5591_v1 = vsel %vm1075_vm4, %v5563_v13, 0.0 }
0x1200   : > { %v5592_v54 = vsel %vm1075_vm4, %v5566_v15, 0.0 }
0x1201   : > { %v5593_v45 = vadd.f32 %v5592_v54, %v5591_v1 }
0x1203   : > { %v5554_v50 = vpop.f32.mrb[124].mxu1 }
0x1204   : > { %v5569_v8 = vmul.f32 %v10181_v42, %v5554_v50  ;;  %v5556_v20 = vpop.f32.mrb[125].mxu1 }
0x1205   : > { %v5557_v33 = vpop.f32.mrb[126].mxu1 }
0x1206   : > { %v5594_v35 = vsel %vm1075_vm4, %v5569_v8, 0.0  ;;  %v5572_v28 = vmul.f32 %v10016_v60, %v5557_v33  ;;  %v5559_v55 = vpop.f32.mrb[127].mxu1 }
0x1207   : > { %v5595_v26 = vadd.f32 %v5594_v35, %v5593_v45 }
0x1208   : > { %v5596_v12 = vsel %vm1075_vm4, %v5572_v28, 0.0 }
0x1209   : > { %v5597_v30 = vadd.f32 %v5596_v12, %v5595_v26 }
0x120b   : > { %v5598_v39 = vrot.slane %v5597_v30, 4 }
0x120d   : > { %v5599_v41 = vadd.f32 %v5598_v39, %v5597_v30 }
0x120f   : > { %v5600_v58 = vrot.slane %v5599_v41, 2 }
0x1211   : > { %v5601_v16 = vadd.f32 %v5600_v58, %v5599_v41 }
0x1213   : > { %v5602_v23 = vrot.slane %v5601_v16, 1 }
0x1215   : > { %v5603_v31 = vadd.f32 %v5602_v23, %v5601_v16 }
0x1217   : > { %7036 = vmatmul.mubr.msk.f32.vlgmr.msra.gmra.mrb[110].mxu1 %vm1075_vm4, %v5603_v31 }
0x12c7   : > { %v6874_v42 = vpop.f32.mrb[94].mxu0 }
0x12c8   : > { %v6875_v27 = vpop.f32.mrb[95].mxu0 }
0x12c9   : > { %v6876_v24 = vadd.f32 %v6875_v27, %v6874_v42 }
0x12cb   : > { %v5674_v60 = vadd.f32 %v10284_v22, %v6876_v24 }
0x12ea   : > { %v5743_v48 = vpop.f32.mrb[110].mxu1 }
0x12eb   : > { %v5744_v9 = vadd.f32 %v5743_v48, %v5674_v60  ;;  %v7037_v36 = vpop.f32.mrb[111].mxu1 }
0x12ed   : > { %v5766_v38 = vrot.slane %v5744_v9, 1 }
0x12ef   : > { %v5780_v22 = vsel %vm5779_vm10, %v10289_v63, %v5766_v38 }
0x12f0   : > { %5782 = vst.msk [vmem:[%s274_s16] sm:$0xff] %vm5781_vm11, %v5780_v22 }
0x12f1   : > { %8187 = shalt.err (!%p8184_p3)
}
0x12f2   : > { %s8188_s8 = scalar_lea.hbm %s10353_s20, 128  ;;  %s8192_s14 = scalar_lea.hbm %s10403_s7, 256 }
0x12f3   : > { %p8189_p4 = scmp.ne.s32.totalorder %s10353_s20, %s8188_s8  ;;  %p8193_p9 = scmp.lt.u32.totalorder %s10353_s20, %s10403_s7 }
0x12f4   : > { %p8194_p10 = scmp.lt.u32.totalorder %s8192_s14, %s8188_s8  ;;  %p8196_p12 = scmp.lt.u32.totalorder %s8188_s8, %s10353_s20 }
0x12f5   : > { %p8190_p7 = pnand %p8189_p4, %p8321_p5 }
0x12f6   : > { %p8195_p11 = por %p8194_p10, %p8193_p9 }
0x12f7   : > { %p8191_p8 = pneg %p8190_p7 }
0x12f8   : > { %p8197_p13 = por %p8196_p12, %p8195_p11 }
0x12fa   : > { %p8198_p0 = pnand %p8197_p13, %p8191_p8 }
0x12fc   : > { %8201 = shalt.err (!%p8198_p0)
}
0x12fd   : > { %7519 = dma.vmem_to_hbm [thread:$0]  (%p8321_p5), %s10355_s17, 128, %s10353_s20, %s5784_s21  }
0x12fe PF: > { %p7525_p1 = scmp.ge.s32.totalorder %s8236_s27, 2  ;;  %s5809_s18 = sand.u32 1, %s8224_s24  }
0x12ff   : > { %s5810_s19 = scalar_lea.sflag [#allocation3], %s5809_s18 }
0x1300   : > { %p7522_p2 = pnand %p7525_p1, %p8325_p6 }
0x1302   : > { %8219 = dma.done.wait (!%p7522_p2), %s5810_s19, 128  }
0x1303   : > { %8221 = vsyncadd (!%p7522_p2), %s5810_s19, 4294967168  ;;  %p17_p3 = scmp.ge.s32.totalorder %s8308_s30, 4   ;;  %s10688_s24 = smov %s8228_s25 }
0x1304   : > { %s10689_s25 = smov %s8232_s26  ;;  %s10690_s26 = smov %s8319_s10 }
0x1305   : > { %s10691_s27 = smov %s8308_s30  ;;  %19 = sbr.rel (!%p17_p3) target bundleno = 3 (0x3), region = 90 }
0x130c   :  { %5815 = vsyncpa [#allocation3], 1 }
0x130d   :  { %5817 = vsyncpa [#allocation3 + $0x1], 1 }

</bundles_post_ra>
